<compile_context>
chip_gen: v7x
topology: tpu7x:2x2x1
jax: 0.10.0
libtpu: 0.0.40
codegen_flags: <defaults>
</compile_context>

<pallas_src>
import functools

import jax
import jax.numpy as jnp
import numpy as np
from jax.experimental import pallas as pl
from jax.experimental.pallas import tpu as pltpu

_BN_EPS = 1e-5
_LANE = 128
_VMEM_LIMIT = 32 * 1024 * 1024  # explicit scoped-VMEM budget (safe on v5e/v6e/v7x)


def _round_up(x, m):
    return (x + m - 1) // m * m


def _row_tile(h):
    for t in (8, 4, 2, 1):
        if h % t == 0:
            return t
    return 1


def _conv_stats_kernel(xm_ref, xt_ref, xb_ref, w_ref, b_ref, scale_ref, shift_ref,
                       conv_ref, sum_ref, sumsq_ref, xpad_ref, patch_ref,
                       *, apply_act):
    """(optional input BN-affine+ReLU) + 3x3 conv + streaming BN statistics.

    xm_ref   : (1, TH, W, Cin)   current row tile of the input
    xt_ref   : (1, 1,  W, Cin)   row just above the tile (clamped at the boundary)
    xb_ref   : (1, 1,  W, Cin)   row just below the tile (clamped at the boundary)
    w_ref    : (9*Cin, Cout_p)   bf16 im2col weight
    b_ref    : (1, Cout_p)       f32 conv bias (zero padded)
    scale_ref/shift_ref : (1, Cin)  folded BN affine for the *input* (iff apply_act)
    conv_ref : (1, TH, W, Cout_p)   raw conv output (pre-BN)
    sum_ref / sumsq_ref : (1, 1, Cout_p)  per-image streaming channel stats
    xpad_ref : (TH+2, W+2, Cin)  f32 halo scratch
    patch_ref: (TH*W, 9*Cin)     bf16 im2col scratch
    """
    h = pl.program_id(1)
    nh = pl.num_programs(1)
    _, th, wd, cin = xm_ref.shape
    coutp = conv_ref.shape[-1]

    def act(v):
        v = v.astype(jnp.float32)
        if apply_act:
            v = jnp.maximum(v * scale_ref[...] + shift_ref[...], 0.0)
        return v

    # Zero the left/right halo columns (the conv's padding=1) every step — cheap,
    # and megacore-safe (no reliance on "first grid step" scratch state).
    xpad_ref[:, 0:1, :] = jnp.zeros((th + 2, 1, cin), jnp.float32)
    xpad_ref[:, wd + 1:wd + 2, :] = jnp.zeros((th + 2, 1, cin), jnp.float32)

    # Stage the halo window: interior rows plus one row above / below (zeros at
    # the image boundary).  For the fused stage-2 call the previous stage's
    # BN+ReLU is applied right here, while the data is being staged for im2col.
    xpad_ref[1:th + 1, 1:wd + 1, :] = act(xm_ref[...]).reshape(th, wd, cin)
    top = jnp.where(h > 0, act(xt_ref[...]), 0.0).reshape(1, wd, cin)
    bot = jnp.where(h < nh - 1, act(xb_ref[...]), 0.0).reshape(1, wd, cin)
    xpad_ref[0:1, 1:wd + 1, :] = top
    xpad_ref[th + 1:th + 2, 1:wd + 1, :] = bot

    # im2col -> single MXU matmul with K = 9*Cin (bf16 inputs, f32 accumulation).
    for dy in range(3):
        for dx in range(3):
            k = dy * 3 + dx
            piece = xpad_ref[dy:dy + th, dx:dx + wd, :]
            patch_ref[:, k * cin:(k + 1) * cin] = (
                piece.astype(jnp.bfloat16).reshape(th * wd, cin))

    acc = jnp.dot(patch_ref[...], w_ref[...],
                  preferred_element_type=jnp.float32) + b_ref[...]
    conv_ref[...] = acc.reshape(1, th, wd, coutp)

    # Streaming per-channel statistics, accumulated across the row-tile axis.
    @pl.when(h == 0)
    def _init_stats():
        sum_ref[...] = jnp.zeros_like(sum_ref)
        sumsq_ref[...] = jnp.zeros_like(sumsq_ref)

    sum_ref[...] += jnp.sum(acc, axis=0).reshape(1, 1, coutp)
    sumsq_ref[...] += jnp.sum(acc * acc, axis=0).reshape(1, 1, coutp)


def _affine_relu_kernel(x_ref, scale_ref, shift_ref, o_ref):
    """Folded BatchNorm (single affine) + ReLU, lane-dense elementwise pass."""
    o_ref[...] = jnp.maximum(
        x_ref[...] * scale_ref[...] + shift_ref[...], 0.0).astype(o_ref.dtype)


def _conv_pass(x, w_mat, bias, in_scale, in_shift, cout_p, apply_act, th):
    """Tiled conv (+ optional fused input activation) + streaming BN stats."""
    n, hgt, wd, cin = x.shape
    nh = hgt // th
    kernel = functools.partial(_conv_stats_kernel, apply_act=apply_act)
    conv, s, ss = pl.pallas_call(
        kernel,
        grid=(n, nh),
        in_specs=[
            pl.BlockSpec((1, th, wd, cin), lambda i, j: (i, j, 0, 0)),
            pl.BlockSpec((1, 1, wd, cin),
                         lambda i, j: (i, jnp.maximum(j * th - 1, 0), 0, 0)),
            pl.BlockSpec((1, 1, wd, cin),
                         lambda i, j: (i, jnp.minimum(j * th + th, hgt - 1), 0, 0)),
            pl.BlockSpec(w_mat.shape, lambda i, j: (0, 0)),
            pl.BlockSpec((1, cout_p), lambda i, j: (0, 0)),
            pl.BlockSpec((1, cin), lambda i, j: (0, 0)),
            pl.BlockSpec((1, cin), lambda i, j: (0, 0)),
        ],
        out_specs=[
            pl.BlockSpec((1, th, wd, cout_p), lambda i, j: (i, j, 0, 0)),
            pl.BlockSpec((1, 1, cout_p), lambda i, j: (i, 0, 0)),
            pl.BlockSpec((1, 1, cout_p), lambda i, j: (i, 0, 0)),
        ],
        out_shape=[
            jax.ShapeDtypeStruct((n, hgt, wd, cout_p), jnp.float32),
            jax.ShapeDtypeStruct((n, 1, cout_p), jnp.float32),
            jax.ShapeDtypeStruct((n, 1, cout_p), jnp.float32),
        ],
        scratch_shapes=[
            pltpu.VMEM((th + 2, wd + 2, cin), jnp.float32),   # halo scratch
            pltpu.VMEM((th * wd, 9 * cin), jnp.bfloat16),     # im2col scratch
        ],
        compiler_params=pltpu.CompilerParams(
            dimension_semantics=("parallel", "arbitrary"),
            vmem_limit_bytes=_VMEM_LIMIT,
        ),
    )(x, x, x, w_mat, bias, in_scale, in_shift)
    return conv, s, ss


def _affine_relu(x, scale, shift, th):
    n, hgt, wd, cp = x.shape
    return pl.pallas_call(
        _affine_relu_kernel,
        grid=(n, hgt // th),
        in_specs=[
            pl.BlockSpec((1, th, wd, cp), lambda i, j: (i, j, 0, 0)),
            pl.BlockSpec((1, cp), lambda i, j: (0, 0)),
            pl.BlockSpec((1, cp), lambda i, j: (0, 0)),
        ],
        out_specs=pl.BlockSpec((1, th, wd, cp), lambda i, j: (i, j, 0, 0)),
        out_shape=jax.ShapeDtypeStruct((n, hgt, wd, cp), jnp.float32),
        compiler_params=pltpu.CompilerParams(
            dimension_semantics=("parallel", "parallel"),
            vmem_limit_bytes=_VMEM_LIMIT,
        ),
    )(x, scale, shift)


def _pad_channels(v, cp):
    v = v.reshape(-1).astype(jnp.float32)
    return jnp.pad(v, (0, cp - v.shape[0]))


def _prep_weight(w_hwio, cin_pad, cout_pad):
    """HWIO (3,3,Ci,Co) -> im2col (9*Ci_pad, Co_pad) in bf16 (zero padded)."""
    kh, kw, ci, co = w_hwio.shape
    w = w_hwio.astype(jnp.float32)
    if cin_pad is not None and cin_pad > ci:
        w = jnp.pad(w, ((0, 0), (0, 0), (0, cin_pad - ci), (0, 0)))
        ci = cin_pad
    w = w.reshape(kh * kw * ci, co)
    if cout_pad > co:
        w = jnp.pad(w, ((0, 0), (0, cout_pad - co)))
    return w.astype(jnp.bfloat16)


def _bn_affine(sums, sumsqs, gamma_p, beta_p, count):
    """Fold training-mode BatchNorm into y = x*scale + shift (per channel)."""
    total = jnp.sum(sums, axis=0).reshape(-1)
    total_sq = jnp.sum(sumsqs, axis=0).reshape(-1)
    mean = total / count
    var = jnp.maximum(total_sq / count - mean * mean, 0.0)   # biased variance
    scale = gamma_p * jax.lax.rsqrt(var + _BN_EPS)
    shift = beta_p - mean * scale
    return scale.reshape(1, -1), shift.reshape(1, -1)


@jax.jit
def double_conv(x_nchw, params):
    """Pallas implementation of DoubleConv.forward; input/output are NCHW f32."""
    x = jnp.transpose(x_nchw, (0, 2, 3, 1)).astype(jnp.float32)  # NCHW -> NHWC
    n, hgt, wd, cin = x.shape
    c1 = params["w1"].shape[-1]
    c2 = params["w2"].shape[-1]
    c1p = _round_up(c1, _LANE)
    c2p = _round_up(c2, _LANE)
    th = _row_tile(hgt)
    count = n * hgt * wd

    # ---- stage 1: raw conv1 + streaming BN stats ---------------------------
    w1m = _prep_weight(params["w1"], None, c1p)
    b1 = _pad_channels(params["b1"], c1p).reshape(1, -1)
    conv1, s1, ss1 = _conv_pass(
        x, w1m, b1,
        jnp.ones((1, cin), jnp.float32), jnp.zeros((1, cin), jnp.float32),
        c1p, apply_act=False, th=th)
    scale1, shift1 = _bn_affine(s1, ss1,
                                _pad_channels(params["g1"], c1p),
                                _pad_channels(params["beta1"], c1p), count)

    # ---- stage 2: BN1+ReLU fused into conv2's im2col staging ---------------
    w2m = _prep_weight(params["w2"], c1p, c2p)
    b2 = _pad_channels(params["b2"], c2p).reshape(1, -1)
    conv2, s2, ss2 = _conv_pass(
        conv1, w2m, b2, scale1, shift1, c2p, apply_act=True, th=th)
    scale2, shift2 = _bn_affine(s2, ss2,
                                _pad_channels(params["g2"], c2p),
                                _pad_channels(params["beta2"], c2p), count)

    # ---- BN2 + ReLU (lane-dense elementwise pass) --------------------------
    y = _affine_relu(conv2, scale2, shift2, th)
    return jnp.transpose(y[..., :c2], (0, 3, 1, 2))  # NHWC -> NCHW


def _reference_double_conv(x_nchw, params):
    """Pure-JAX f32 reference with identical semantics."""
    x = jnp.transpose(x_nchw, (0, 2, 3, 1)).astype(jnp.float32)

    def stage(x, w, b, g, beta):
        y = jax.lax.conv_general_dilated(
            x, w, window_strides=(1, 1), padding="SAME",
            dimension_numbers=("NHWC", "HWIO", "NHWC"),
        ) + b
        mean = jnp.mean(y, axis=(0, 1, 2), keepdims=True)
        var = jnp.mean((y - mean) ** 2, axis=(0, 1, 2), keepdims=True)
        y = (y - mean) * jax.lax.rsqrt(var + _BN_EPS) * g + beta
        return jnp.maximum(y, 0.0)

    x = stage(x, params["w1"], params["b1"], params["g1"], params["beta1"])
    x = stage(x, params["w2"], params["b2"], params["g2"], params["beta2"])
    return jnp.transpose(x, (0, 3, 1, 2))


def init_params(key, in_channels, out_channels):
    """Deterministic init; shapes match nn.Conv2d (as HWIO) / nn.BatchNorm2d."""
    k1, k2, k3, k4 = jax.random.split(key, 4)
    fan1 = in_channels * 9
    fan2 = out_channels * 9
    return {
        "w1": jax.random.uniform(k1, (3, 3, in_channels, out_channels),
                                 jnp.float32, -1.0, 1.0) / np.sqrt(fan1),
        "b1": jax.random.uniform(k2, (out_channels,), jnp.float32, -1.0, 1.0)
              / np.sqrt(fan1),
        "g1": jnp.ones((out_channels,), jnp.float32),
        "beta1": jnp.zeros((out_channels,), jnp.float32),
        "w2": jax.random.uniform(k3, (3, 3, out_channels, out_channels),
                                 jnp.float32, -1.0, 1.0) / np.sqrt(fan2),
        "b2": jax.random.uniform(k4, (out_channels,), jnp.float32, -1.0, 1.0)
              / np.sqrt(fan2),
        "g2": jnp.ones((out_channels,), jnp.float32),
        "beta2": jnp.zeros((out_channels,), jnp.float32),
    }


if __name__ == "__main__":
    key = jax.random.PRNGKey(0)
    kx, kp = jax.random.split(key)

    N, C_IN, C_OUT, HW = 2, 4, 8, 16
    x = jax.random.normal(kx, (N, C_IN, HW, HW), jnp.float32)  # NCHW like PyTorch
    params = init_params(kp, C_IN, C_OUT)

    out = jax.block_until_ready(double_conv(x, params))
    assert out.shape == (N, C_OUT, HW, HW), out.shape

    ref = jax.block_until_ready(_reference_double_conv(x, params))
    # bf16 MXU inputs (f32 accumulation / f32 BN math) => relaxed tolerance vs
    # the full-f32 reference.
    np.testing.assert_allclose(np.asarray(out), np.asarray(ref),
                               rtol=3e-2, atol=3e-2)

    print("KERNEL_OK")
</pallas_src>

<mosaic_0001>
module attributes {stable_mosaic.version = 11 : i64} {
  func.func @_conv_stats_kernel(%arg0: i32, %arg1: i32, %arg2: memref<1x8x16x4xf32, #tpu.memory_space<vmem>>, %arg3: memref<1x1x16x4xf32, #tpu.memory_space<vmem>>, %arg4: memref<1x1x16x4xf32, #tpu.memory_space<vmem>>, %arg5: memref<36x128xbf16, #tpu.memory_space<vmem>>, %arg6: memref<1x128xf32, #tpu.memory_space<vmem>>, %arg7: memref<1x4xf32, #tpu.memory_space<vmem>>, %arg8: memref<1x4xf32, #tpu.memory_space<vmem>>, %arg9: memref<1x8x16x128xf32, #tpu.memory_space<vmem>>, %arg10: memref<1x1x128xf32, #tpu.memory_space<vmem>>, %arg11: memref<1x1x128xf32, #tpu.memory_space<vmem>>, %arg12: memref<10x18x4xf32, #tpu.memory_space<vmem>>, %arg13: memref<128x36xbf16, #tpu.memory_space<vmem>>) attributes {dimension_semantics = [#tpu.dimension_semantics<parallel>, #tpu.dimension_semantics<arbitrary>], iteration_bounds = array<i64: 2, 2>, scalar_prefetch = 0 : i64, scratch_operands = 2 : i64, tpu.core_type = #tpu.core_type<tc>, window_params = [{transform_indices = @transform_0, window_bounds = array<i64: 1, 8, 16, 4>}, {transform_indices = @transform_1, window_bounds = array<i64: 1, 1, 16, 4>}, {transform_indices = @transform_2, window_bounds = array<i64: 1, 1, 16, 4>}, {pipeline_mode = #tpu.pipeline_mode<synchronous>, transform_indices = @transform_3, window_bounds = array<i64: 36, 128>}, {pipeline_mode = #tpu.pipeline_mode<synchronous>, transform_indices = @transform_4, window_bounds = array<i64: 1, 128>}, {pipeline_mode = #tpu.pipeline_mode<synchronous>, transform_indices = @transform_5, window_bounds = array<i64: 1, 4>}, {pipeline_mode = #tpu.pipeline_mode<synchronous>, transform_indices = @transform_6, window_bounds = array<i64: 1, 4>}, {transform_indices = @transform_7, window_bounds = array<i64: 1, 8, 16, 128>}, {transform_indices = @transform_8, window_bounds = array<i64: 1, 1, 128>}, {transform_indices = @transform_9, window_bounds = array<i64: 1, 1, 128>}]} {
    %cst = arith.constant 0.000000e+00 : f32
    %0 = vector.broadcast %cst : f32 to vector<10x1x4xf32>
    %c0 = arith.constant 0 : index
    %c0_0 = arith.constant 0 : index
    %c0_1 = arith.constant 0 : index
    %1 = vector.load %arg12[%c0, %c0_0, %c0_1] : memref<10x18x4xf32, #tpu.memory_space<vmem>>, vector<10x1x4xf32>
    tpu.vector_store %arg12[%c0, %c0_0, %c0_1], %0 {strides = array<i32>} : memref<10x18x4xf32, #tpu.memory_space<vmem>>, vector<10x1x4xf32>,
    %cst_2 = arith.constant 0.000000e+00 : f32
    %2 = vector.broadcast %cst_2 : f32 to vector<10x1x4xf32>
    %c0_3 = arith.constant 0 : index
    %c17 = arith.constant 17 : index
    %c0_4 = arith.constant 0 : index
    %3 = vector.load %arg12[%c0_3, %c17, %c0_4] : memref<10x18x4xf32, #tpu.memory_space<vmem>>, vector<10x1x4xf32>
    tpu.vector_store %arg12[%c0_3, %c17, %c0_4], %2 {strides = array<i32>} : memref<10x18x4xf32, #tpu.memory_space<vmem>>, vector<10x1x4xf32>,
    %c0_5 = arith.constant 0 : index
    %c0_6 = arith.constant 0 : index
    %c0_7 = arith.constant 0 : index
    %c0_8 = arith.constant 0 : index
    %4 = vector.load %arg2[%c0_5, %c0_6, %c0_7, %c0_8] : memref<1x8x16x4xf32, #tpu.memory_space<vmem>>, vector<1x8x16x4xf32>
    %5 = vector.shape_cast %4 : vector<1x8x16x4xf32> to vector<8x16x4xf32>
    %c1 = arith.constant 1 : index
    %c1_9 = arith.constant 1 : index
    %c0_10 = arith.constant 0 : index
    %6 = vector.load %arg12[%c1, %c1_9, %c0_10] : memref<10x18x4xf32, #tpu.memory_space<vmem>>, vector<8x16x4xf32>
    tpu.vector_store %arg12[%c1, %c1_9, %c0_10], %5 {strides = array<i32>} : memref<10x18x4xf32, #tpu.memory_space<vmem>>, vector<8x16x4xf32>,
    %c0_i32 = arith.constant 0 : i32
    %7 = arith.cmpi sgt, %arg1, %c0_i32 : i32
    %c0_11 = arith.constant 0 : index
    %c0_12 = arith.constant 0 : index
    %c0_13 = arith.constant 0 : index
    %c0_14 = arith.constant 0 : index
    %8 = vector.load %arg3[%c0_11, %c0_12, %c0_13, %c0_14] : memref<1x1x16x4xf32, #tpu.memory_space<vmem>>, vector<1x1x16x4xf32>
    %cst_15 = arith.constant 0.000000e+00 : f32
    %9 = vector.broadcast %cst_15 : f32 to vector<1x1x16x4xf32>
    %10 = arith.select %7, %8, %9 : vector<1x1x16x4xf32>
    %11 = vector.shape_cast %10 : vector<1x1x16x4xf32> to vector<1x16x4xf32>
    %c1_i32 = arith.constant 1 : i32
    %12 = arith.cmpi slt, %arg1, %c1_i32 : i32
    %c0_16 = arith.constant 0 : index
    %c0_17 = arith.constant 0 : index
    %c0_18 = arith.constant 0 : index
    %c0_19 = arith.constant 0 : index
    %13 = vector.load %arg4[%c0_16, %c0_17, %c0_18, %c0_19] : memref<1x1x16x4xf32, #tpu.memory_space<vmem>>, vector<1x1x16x4xf32>
    %cst_20 = arith.constant 0.000000e+00 : f32
    %14 = vector.broadcast %cst_20 : f32 to vector<1x1x16x4xf32>
    %15 = arith.select %12, %13, %14 : vector<1x1x16x4xf32>
    %16 = vector.shape_cast %15 : vector<1x1x16x4xf32> to vector<1x16x4xf32>
    %c0_21 = arith.constant 0 : index
    %c1_22 = arith.constant 1 : index
    %c0_23 = arith.constant 0 : index
    %17 = vector.load %arg12[%c0_21, %c1_22, %c0_23] : memref<10x18x4xf32, #tpu.memory_space<vmem>>, vector<1x16x4xf32>
    tpu.vector_store %arg12[%c0_21, %c1_22, %c0_23], %11 {strides = array<i32>} : memref<10x18x4xf32, #tpu.memory_space<vmem>>, vector<1x16x4xf32>,
    %c9 = arith.constant 9 : index
    %c1_24 = arith.constant 1 : index
    %c0_25 = arith.constant 0 : index
    %18 = vector.load %arg12[%c9, %c1_24, %c0_25] : memref<10x18x4xf32, #tpu.memory_space<vmem>>, vector<1x16x4xf32>
    tpu.vector_store %arg12[%c9, %c1_24, %c0_25], %16 {strides = array<i32>} : memref<10x18x4xf32, #tpu.memory_space<vmem>>, vector<1x16x4xf32>,
    %c0_26 = arith.constant 0 : index
    %c0_27 = arith.constant 0 : index
    %c0_28 = arith.constant 0 : index
    %19 = vector.load %arg12[%c0_26, %c0_27, %c0_28] : memref<10x18x4xf32, #tpu.memory_space<vmem>>, vector<8x16x4xf32>
    %20 = arith.truncf %19 : vector<8x16x4xf32> to vector<8x16x4xbf16>
    %21 = vector.shape_cast %20 : vector<8x16x4xbf16> to vector<128x4xbf16>
    %c0_29 = arith.constant 0 : index
    %c0_30 = arith.constant 0 : index
    %22 = vector.load %arg13[%c0_29, %c0_30] : memref<128x36xbf16, #tpu.memory_space<vmem>>, vector<128x4xbf16>
    tpu.vector_store %arg13[%c0_29, %c0_30], %21 {strides = array<i32>} : memref<128x36xbf16, #tpu.memory_space<vmem>>, vector<128x4xbf16>,
    %c0_31 = arith.constant 0 : index
    %c1_32 = arith.constant 1 : index
    %c0_33 = arith.constant 0 : index
    %23 = vector.load %arg12[%c0_31, %c1_32, %c0_33] : memref<10x18x4xf32, #tpu.memory_space<vmem>>, vector<8x16x4xf32>
    %24 = arith.truncf %23 : vector<8x16x4xf32> to vector<8x16x4xbf16>
    %25 = vector.shape_cast %24 : vector<8x16x4xbf16> to vector<128x4xbf16>
    %c0_34 = arith.constant 0 : index
    %c4 = arith.constant 4 : index
    %26 = vector.load %arg13[%c0_34, %c4] : memref<128x36xbf16, #tpu.memory_space<vmem>>, vector<128x4xbf16>
    tpu.vector_store %arg13[%c0_34, %c4], %25 {strides = array<i32>} : memref<128x36xbf16, #tpu.memory_space<vmem>>, vector<128x4xbf16>,
    %c0_35 = arith.constant 0 : index
    %c2 = arith.constant 2 : index
    %c0_36 = arith.constant 0 : index
    %27 = vector.load %arg12[%c0_35, %c2, %c0_36] : memref<10x18x4xf32, #tpu.memory_space<vmem>>, vector<8x16x4xf32>
    %28 = arith.truncf %27 : vector<8x16x4xf32> to vector<8x16x4xbf16>
    %29 = vector.shape_cast %28 : vector<8x16x4xbf16> to vector<128x4xbf16>
    %c0_37 = arith.constant 0 : index
    %c8 = arith.constant 8 : index
    %30 = vector.load %arg13[%c0_37, %c8] : memref<128x36xbf16, #tpu.memory_space<vmem>>, vector<128x4xbf16>
    tpu.vector_store %arg13[%c0_37, %c8], %29 {strides = array<i32>} : memref<128x36xbf16, #tpu.memory_space<vmem>>, vector<128x4xbf16>,
    %c1_38 = arith.constant 1 : index
    %c0_39 = arith.constant 0 : index
    %c0_40 = arith.constant 0 : index
    %31 = vector.load %arg12[%c1_38, %c0_39, %c0_40] : memref<10x18x4xf32, #tpu.memory_space<vmem>>, vector<8x16x4xf32>
    %32 = arith.truncf %31 : vector<8x16x4xf32> to vector<8x16x4xbf16>
    %33 = vector.shape_cast %32 : vector<8x16x4xbf16> to vector<128x4xbf16>
    %c0_41 = arith.constant 0 : index
    %c12 = arith.constant 12 : index
    %34 = vector.load %arg13[%c0_41, %c12] : memref<128x36xbf16, #tpu.memory_space<vmem>>, vector<128x4xbf16>
    tpu.vector_store %arg13[%c0_41, %c12], %33 {strides = array<i32>} : memref<128x36xbf16, #tpu.memory_space<vmem>>, vector<128x4xbf16>,
    %c1_42 = arith.constant 1 : index
    %c1_43 = arith.constant 1 : index
    %c0_44 = arith.constant 0 : index
    %35 = vector.load %arg12[%c1_42, %c1_43, %c0_44] : memref<10x18x4xf32, #tpu.memory_space<vmem>>, vector<8x16x4xf32>
    %36 = arith.truncf %35 : vector<8x16x4xf32> to vector<8x16x4xbf16>
    %37 = vector.shape_cast %36 : vector<8x16x4xbf16> to vector<128x4xbf16>
    %c0_45 = arith.constant 0 : index
    %c16 = arith.constant 16 : index
    %38 = vector.load %arg13[%c0_45, %c16] : memref<128x36xbf16, #tpu.memory_space<vmem>>, vector<128x4xbf16>
    tpu.vector_store %arg13[%c0_45, %c16], %37 {strides = array<i32>} : memref<128x36xbf16, #tpu.memory_space<vmem>>, vector<128x4xbf16>,
    %c1_46 = arith.constant 1 : index
    %c2_47 = arith.constant 2 : index
    %c0_48 = arith.constant 0 : index
    %39 = vector.load %arg12[%c1_46, %c2_47, %c0_48] : memref<10x18x4xf32, #tpu.memory_space<vmem>>, vector<8x16x4xf32>
    %40 = arith.truncf %39 : vector<8x16x4xf32> to vector<8x16x4xbf16>
    %41 = vector.shape_cast %40 : vector<8x16x4xbf16> to vector<128x4xbf16>
    %c0_49 = arith.constant 0 : index
    %c20 = arith.constant 20 : index
    %42 = vector.load %arg13[%c0_49, %c20] : memref<128x36xbf16, #tpu.memory_space<vmem>>, vector<128x4xbf16>
    tpu.vector_store %arg13[%c0_49, %c20], %41 {strides = array<i32>} : memref<128x36xbf16, #tpu.memory_space<vmem>>, vector<128x4xbf16>,
    %c2_50 = arith.constant 2 : index
    %c0_51 = arith.constant 0 : index
    %c0_52 = arith.constant 0 : index
    %43 = vector.load %arg12[%c2_50, %c0_51, %c0_52] : memref<10x18x4xf32, #tpu.memory_space<vmem>>, vector<8x16x4xf32>
    %44 = arith.truncf %43 : vector<8x16x4xf32> to vector<8x16x4xbf16>
    %45 = vector.shape_cast %44 : vector<8x16x4xbf16> to vector<128x4xbf16>
    %c0_53 = arith.constant 0 : index
    %c24 = arith.constant 24 : index
    %46 = vector.load %arg13[%c0_53, %c24] : memref<128x36xbf16, #tpu.memory_space<vmem>>, vector<128x4xbf16>
    tpu.vector_store %arg13[%c0_53, %c24], %45 {strides = array<i32>} : memref<128x36xbf16, #tpu.memory_space<vmem>>, vector<128x4xbf16>,
    %c2_54 = arith.constant 2 : index
    %c1_55 = arith.constant 1 : index
    %c0_56 = arith.constant 0 : index
    %47 = vector.load %arg12[%c2_54, %c1_55, %c0_56] : memref<10x18x4xf32, #tpu.memory_space<vmem>>, vector<8x16x4xf32>
    %48 = arith.truncf %47 : vector<8x16x4xf32> to vector<8x16x4xbf16>
    %49 = vector.shape_cast %48 : vector<8x16x4xbf16> to vector<128x4xbf16>
    %c0_57 = arith.constant 0 : index
    %c28 = arith.constant 28 : index
    %50 = vector.load %arg13[%c0_57, %c28] : memref<128x36xbf16, #tpu.memory_space<vmem>>, vector<128x4xbf16>
    tpu.vector_store %arg13[%c0_57, %c28], %49 {strides = array<i32>} : memref<128x36xbf16, #tpu.memory_space<vmem>>, vector<128x4xbf16>,
    %c2_58 = arith.constant 2 : index
    %c2_59 = arith.constant 2 : index
    %c0_60 = arith.constant 0 : index
    %51 = vector.load %arg12[%c2_58, %c2_59, %c0_60] : memref<10x18x4xf32, #tpu.memory_space<vmem>>, vector<8x16x4xf32>
    %52 = arith.truncf %51 : vector<8x16x4xf32> to vector<8x16x4xbf16>
    %53 = vector.shape_cast %52 : vector<8x16x4xbf16> to vector<128x4xbf16>
    %c0_61 = arith.constant 0 : index
    %c32 = arith.constant 32 : index
    %54 = vector.load %arg13[%c0_61, %c32] : memref<128x36xbf16, #tpu.memory_space<vmem>>, vector<128x4xbf16>
    tpu.vector_store %arg13[%c0_61, %c32], %53 {strides = array<i32>} : memref<128x36xbf16, #tpu.memory_space<vmem>>, vector<128x4xbf16>,
    %c0_62 = arith.constant 0 : index
    %c0_63 = arith.constant 0 : index
    %55 = vector.load %arg13[%c0_62, %c0_63] : memref<128x36xbf16, #tpu.memory_space<vmem>>, vector<128x36xbf16>
    %c0_64 = arith.constant 0 : index
    %c0_65 = arith.constant 0 : index
    %56 = vector.load %arg5[%c0_64, %c0_65] : memref<36x128xbf16, #tpu.memory_space<vmem>>, vector<36x128xbf16>
    %cst_66 = arith.constant dense<0.000000e+00> : vector<128x128xf32>
    %57 = tpu.matmul %55, %56, %cst_66 {dimension_numbers = #tpu.dot_dimension_numbers<[1], [0], [0], [1], [0, 0, 1, 1], [], []>} : vector<128x36xbf16>, vector<36x128xbf16>, vector<128x128xf32> -> vector<128x128xf32>
    %c0_67 = arith.constant 0 : index
    %c0_68 = arith.constant 0 : index
    %58 = vector.load %arg6[%c0_67, %c0_68] : memref<1x128xf32, #tpu.memory_space<vmem>>, vector<1x128xf32>
    %59 = vector.broadcast %58 : vector<1x128xf32> to vector<128x128xf32>
    %60 = arith.addf %57, %59 : vector<128x128xf32>
    %61 = vector.shape_cast %60 : vector<128x128xf32> to vector<1x8x16x128xf32>
    %c0_69 = arith.constant 0 : index
    %c0_70 = arith.constant 0 : index
    %c0_71 = arith.constant 0 : index
    %c0_72 = arith.constant 0 : index
    %62 = vector.load %arg9[%c0_69, %c0_70, %c0_71, %c0_72] : memref<1x8x16x128xf32, #tpu.memory_space<vmem>>, vector<1x8x16x128xf32>
    tpu.vector_store %arg9[%c0_69, %c0_70, %c0_71, %c0_72], %61 {strides = array<i32>} : memref<1x8x16x128xf32, #tpu.memory_space<vmem>>, vector<1x8x16x128xf32>,
    %c0_i32_73 = arith.constant 0 : i32
    %63 = arith.cmpi eq, %arg1, %c0_i32_73 : i32
    %64 = arith.extui %63 : i1 to i32
    %c0_i32_74 = arith.constant 0 : i32
    %65 = arith.cmpi ne, %64, %c0_i32_74 : i32
    scf.if %65 {
      %cst_89 = arith.constant 0.000000e+00 : f32
      %77 = vector.broadcast %cst_89 : f32 to vector<1x1x128xf32>
      %c0_90 = arith.constant 0 : index
      %c0_91 = arith.constant 0 : index
      %c0_92 = arith.constant 0 : index
      %78 = vector.load %arg10[%c0_90, %c0_91, %c0_92] : memref<1x1x128xf32, #tpu.memory_space<vmem>>, vector<1x1x128xf32>
      tpu.vector_store %arg10[%c0_90, %c0_91, %c0_92], %77 {strides = array<i32>} : memref<1x1x128xf32, #tpu.memory_space<vmem>>, vector<1x1x128xf32>,
      %cst_93 = arith.constant 0.000000e+00 : f32
      %79 = vector.broadcast %cst_93 : f32 to vector<1x1x128xf32>
      %c0_94 = arith.constant 0 : index
      %c0_95 = arith.constant 0 : index
      %c0_96 = arith.constant 0 : index
      %80 = vector.load %arg11[%c0_94, %c0_95, %c0_96] : memref<1x1x128xf32, #tpu.memory_space<vmem>>, vector<1x1x128xf32>
      tpu.vector_store %arg11[%c0_94, %c0_95, %c0_96], %79 {strides = array<i32>} : memref<1x1x128xf32, #tpu.memory_space<vmem>>, vector<1x1x128xf32>,
    } else {
    }
    %c0_75 = arith.constant 0 : index
    %c0_76 = arith.constant 0 : index
    %c0_77 = arith.constant 0 : index
    %66 = vector.load %arg10[%c0_75, %c0_76, %c0_77] : memref<1x1x128xf32, #tpu.memory_space<vmem>>, vector<1x1x128xf32>
    %cst_78 = arith.constant dense<0.000000e+00> : vector<128xf32>
    %67 = vector.multi_reduction <add>, %60, %cst_78 [0] : vector<128x128xf32> to vector<128xf32>
    %68 = vector.shape_cast %67 : vector<128xf32> to vector<1x1x128xf32>
    %69 = arith.addf %66, %68 : vector<1x1x128xf32>
    %c0_79 = arith.constant 0 : index
    %c0_80 = arith.constant 0 : index
    %c0_81 = arith.constant 0 : index
    %70 = vector.load %arg10[%c0_79, %c0_80, %c0_81] : memref<1x1x128xf32, #tpu.memory_space<vmem>>, vector<1x1x128xf32>
    tpu.vector_store %arg10[%c0_79, %c0_80, %c0_81], %69 {strides = array<i32>} : memref<1x1x128xf32, #tpu.memory_space<vmem>>, vector<1x1x128xf32>,
    %c0_82 = arith.constant 0 : index
    %c0_83 = arith.constant 0 : index
    %c0_84 = arith.constant 0 : index
    %71 = vector.load %arg11[%c0_82, %c0_83, %c0_84] : memref<1x1x128xf32, #tpu.memory_space<vmem>>, vector<1x1x128xf32>
    %72 = arith.mulf %60, %60 : vector<128x128xf32>
    %cst_85 = arith.constant dense<0.000000e+00> : vector<128xf32>
    %73 = vector.multi_reduction <add>, %72, %cst_85 [0] : vector<128x128xf32> to vector<128xf32>
    %74 = vector.shape_cast %73 : vector<128xf32> to vector<1x1x128xf32>
    %75 = arith.addf %71, %74 : vector<1x1x128xf32>
    %c0_86 = arith.constant 0 : index
    %c0_87 = arith.constant 0 : index
    %c0_88 = arith.constant 0 : index
    %76 = vector.load %arg11[%c0_86, %c0_87, %c0_88] : memref<1x1x128xf32, #tpu.memory_space<vmem>>, vector<1x1x128xf32>
    tpu.vector_store %arg11[%c0_86, %c0_87, %c0_88], %75 {strides = array<i32>} : memref<1x1x128xf32, #tpu.memory_space<vmem>>, vector<1x1x128xf32>,
    return
  }
  func.func @transform_0(%arg0: i32, %arg1: i32) -> (i32, i32, i32, i32) {
    %c0_i32 = arith.constant 0 : i32
    %c0_i32_0 = arith.constant 0 : i32
    %c0_i32_1 = arith.constant 0 : i32
    return %arg0, %arg1, %c0_i32, %c0_i32_0 : i32, i32, i32, i32
  }
  func.func @transform_1(%arg0: i32, %arg1: i32) -> (i32, i32, i32, i32) {
    %c8_i32 = arith.constant 8 : i32
    %0 = arith.muli %arg1, %c8_i32 : i32
    %c1_i32 = arith.constant 1 : i32
    %1 = arith.subi %0, %c1_i32 : i32
    %c0_i32 = arith.constant 0 : i32
    %2 = arith.maxsi %1, %c0_i32 : i32
    %c0_i32_0 = arith.constant 0 : i32
    %c0_i32_1 = arith.constant 0 : i32
    %c0_i32_2 = arith.constant 0 : i32
    return %arg0, %2, %c0_i32_0, %c0_i32_1 : i32, i32, i32, i32
  }
  func.func @transform_2(%arg0: i32, %arg1: i32) -> (i32, i32, i32, i32) {
    %c8_i32 = arith.constant 8 : i32
    %0 = arith.muli %arg1, %c8_i32 : i32
    %c8_i32_0 = arith.constant 8 : i32
    %1 = arith.addi %0, %c8_i32_0 : i32
    %c15_i32 = arith.constant 15 : i32
    %2 = arith.minsi %1, %c15_i32 : i32
    %c0_i32 = arith.constant 0 : i32
    %c0_i32_1 = arith.constant 0 : i32
    %c0_i32_2 = arith.constant 0 : i32
    return %arg0, %2, %c0_i32, %c0_i32_1 : i32, i32, i32, i32
  }
  func.func @transform_3(%arg0: i32, %arg1: i32) -> (i32, i32) {
    %c0_i32 = arith.constant 0 : i32
    %c0_i32_0 = arith.constant 0 : i32
    %c0_i32_1 = arith.constant 0 : i32
    return %c0_i32, %c0_i32_0 : i32, i32
  }
  func.func @transform_4(%arg0: i32, %arg1: i32) -> (i32, i32) {
    %c0_i32 = arith.constant 0 : i32
    %c0_i32_0 = arith.constant 0 : i32
    %c0_i32_1 = arith.constant 0 : i32
    return %c0_i32, %c0_i32_0 : i32, i32
  }
  func.func @transform_5(%arg0: i32, %arg1: i32) -> (i32, i32) {
    %c0_i32 = arith.constant 0 : i32
    %c0_i32_0 = arith.constant 0 : i32
    %c0_i32_1 = arith.constant 0 : i32
    return %c0_i32, %c0_i32_0 : i32, i32
  }
  func.func @transform_6(%arg0: i32, %arg1: i32) -> (i32, i32) {
    %c0_i32 = arith.constant 0 : i32
    %c0_i32_0 = arith.constant 0 : i32
    %c0_i32_1 = arith.constant 0 : i32
    return %c0_i32, %c0_i32_0 : i32, i32
  }
  func.func @transform_7(%arg0: i32, %arg1: i32) -> (i32, i32, i32, i32) {
    %c0_i32 = arith.constant 0 : i32
    %c0_i32_0 = arith.constant 0 : i32
    %c0_i32_1 = arith.constant 0 : i32
    return %arg0, %arg1, %c0_i32, %c0_i32_0 : i32, i32, i32, i32
  }
  func.func @transform_8(%arg0: i32, %arg1: i32) -> (i32, i32, i32) {
    %c0_i32 = arith.constant 0 : i32
    %c0_i32_0 = arith.constant 0 : i32
    %c0_i32_1 = arith.constant 0 : i32
    return %arg0, %c0_i32, %c0_i32_0 : i32, i32, i32
  }
  func.func @transform_9(%arg0: i32, %arg1: i32) -> (i32, i32, i32) {
    %c0_i32 = arith.constant 0 : i32
    %c0_i32_0 = arith.constant 0 : i32
    %c0_i32_1 = arith.constant 0 : i32
    return %arg0, %c0_i32, %c0_i32_0 : i32, i32, i32
  }
}

module attributes {stable_mosaic.version = 11 : i64} {
  func.func @_conv_stats_kernel(%arg0: i32, %arg1: i32, %arg2: memref<1x8x16x128xf32, #tpu.memory_space<vmem>>, %arg3: memref<1x1x16x128xf32, #tpu.memory_space<vmem>>, %arg4: memref<1x1x16x128xf32, #tpu.memory_space<vmem>>, %arg5: memref<1152x128xbf16, #tpu.memory_space<vmem>>, %arg6: memref<1x128xf32, #tpu.memory_space<vmem>>, %arg7: memref<1x128xf32, #tpu.memory_space<vmem>>, %arg8: memref<1x128xf32, #tpu.memory_space<vmem>>, %arg9: memref<1x8x16x128xf32, #tpu.memory_space<vmem>>, %arg10: memref<1x1x128xf32, #tpu.memory_space<vmem>>, %arg11: memref<1x1x128xf32, #tpu.memory_space<vmem>>, %arg12: memref<10x18x128xf32, #tpu.memory_space<vmem>>, %arg13: memref<128x1152xbf16, #tpu.memory_space<vmem>>) attributes {dimension_semantics = [#tpu.dimension_semantics<parallel>, #tpu.dimension_semantics<arbitrary>], iteration_bounds = array<i64: 2, 2>, scalar_prefetch = 0 : i64, scratch_operands = 2 : i64, tpu.core_type = #tpu.core_type<tc>, window_params = [{transform_indices = @transform_0, window_bounds = array<i64: 1, 8, 16, 128>}, {transform_indices = @transform_1, window_bounds = array<i64: 1, 1, 16, 128>}, {transform_indices = @transform_2, window_bounds = array<i64: 1, 1, 16, 128>}, {pipeline_mode = #tpu.pipeline_mode<synchronous>, transform_indices = @transform_3, window_bounds = array<i64: 1152, 128>}, {pipeline_mode = #tpu.pipeline_mode<synchronous>, transform_indices = @transform_4, window_bounds = array<i64: 1, 128>}, {pipeline_mode = #tpu.pipeline_mode<synchronous>, transform_indices = @transform_5, window_bounds = array<i64: 1, 128>}, {pipeline_mode = #tpu.pipeline_mode<synchronous>, transform_indices = @transform_6, window_bounds = array<i64: 1, 128>}, {transform_indices = @transform_7, window_bounds = array<i64: 1, 8, 16, 128>}, {transform_indices = @transform_8, window_bounds = array<i64: 1, 1, 128>}, {transform_indices = @transform_9, window_bounds = array<i64: 1, 1, 128>}]} {
    %cst = arith.constant 0.000000e+00 : f32
    %0 = vector.broadcast %cst : f32 to vector<10x1x128xf32>
    %c0 = arith.constant 0 : index
    %c0_0 = arith.constant 0 : index
    %c0_1 = arith.constant 0 : index
    %1 = vector.load %arg12[%c0, %c0_0, %c0_1] : memref<10x18x128xf32, #tpu.memory_space<vmem>>, vector<10x1x128xf32>
    tpu.vector_store %arg12[%c0, %c0_0, %c0_1], %0 {strides = array<i32>} : memref<10x18x128xf32, #tpu.memory_space<vmem>>, vector<10x1x128xf32>,
    %cst_2 = arith.constant 0.000000e+00 : f32
    %2 = vector.broadcast %cst_2 : f32 to vector<10x1x128xf32>
    %c0_3 = arith.constant 0 : index
    %c17 = arith.constant 17 : index
    %c0_4 = arith.constant 0 : index
    %3 = vector.load %arg12[%c0_3, %c17, %c0_4] : memref<10x18x128xf32, #tpu.memory_space<vmem>>, vector<10x1x128xf32>
    tpu.vector_store %arg12[%c0_3, %c17, %c0_4], %2 {strides = array<i32>} : memref<10x18x128xf32, #tpu.memory_space<vmem>>, vector<10x1x128xf32>,
    %c0_5 = arith.constant 0 : index
    %c0_6 = arith.constant 0 : index
    %c0_7 = arith.constant 0 : index
    %c0_8 = arith.constant 0 : index
    %4 = vector.load %arg2[%c0_5, %c0_6, %c0_7, %c0_8] : memref<1x8x16x128xf32, #tpu.memory_space<vmem>>, vector<1x8x16x128xf32>
    %c0_9 = arith.constant 0 : index
    %c0_10 = arith.constant 0 : index
    %5 = vector.load %arg7[%c0_9, %c0_10] : memref<1x128xf32, #tpu.memory_space<vmem>>, vector<1x128xf32>
    %6 = vector.shape_cast %5 : vector<1x128xf32> to vector<1x1x1x128xf32>
    %7 = vector.broadcast %6 : vector<1x1x1x128xf32> to vector<1x8x16x128xf32>
    %8 = arith.mulf %4, %7 : vector<1x8x16x128xf32>
    %c0_11 = arith.constant 0 : index
    %c0_12 = arith.constant 0 : index
    %9 = vector.load %arg8[%c0_11, %c0_12] : memref<1x128xf32, #tpu.memory_space<vmem>>, vector<1x128xf32>
    %10 = vector.shape_cast %9 : vector<1x128xf32> to vector<1x1x1x128xf32>
    %11 = vector.broadcast %10 : vector<1x1x1x128xf32> to vector<1x8x16x128xf32>
    %12 = arith.addf %8, %11 : vector<1x8x16x128xf32>
    %cst_13 = arith.constant 0.000000e+00 : f32
    %13 = vector.broadcast %cst_13 : f32 to vector<1x8x16x128xf32>
    %14 = arith.maximumf %12, %13 : vector<1x8x16x128xf32>
    %15 = vector.shape_cast %14 : vector<1x8x16x128xf32> to vector<8x16x128xf32>
    %c1 = arith.constant 1 : index
    %c1_14 = arith.constant 1 : index
    %c0_15 = arith.constant 0 : index
    %16 = vector.load %arg12[%c1, %c1_14, %c0_15] : memref<10x18x128xf32, #tpu.memory_space<vmem>>, vector<8x16x128xf32>
    tpu.vector_store %arg12[%c1, %c1_14, %c0_15], %15 {strides = array<i32>} : memref<10x18x128xf32, #tpu.memory_space<vmem>>, vector<8x16x128xf32>,
    %c0_i32 = arith.constant 0 : i32
    %17 = arith.cmpi sgt, %arg1, %c0_i32 : i32
    %c0_16 = arith.constant 0 : index
    %c0_17 = arith.constant 0 : index
    %c0_18 = arith.constant 0 : index
    %c0_19 = arith.constant 0 : index
    %18 = vector.load %arg3[%c0_16, %c0_17, %c0_18, %c0_19] : memref<1x1x16x128xf32, #tpu.memory_space<vmem>>, vector<1x1x16x128xf32>
    %c0_20 = arith.constant 0 : index
    %c0_21 = arith.constant 0 : index
    %19 = vector.load %arg7[%c0_20, %c0_21] : memref<1x128xf32, #tpu.memory_space<vmem>>, vector<1x128xf32>
    %20 = vector.shape_cast %19 : vector<1x128xf32> to vector<1x1x1x128xf32>
    %21 = vector.broadcast %20 : vector<1x1x1x128xf32> to vector<1x1x16x128xf32>
    %22 = arith.mulf %18, %21 : vector<1x1x16x128xf32>
    %c0_22 = arith.constant 0 : index
    %c0_23 = arith.constant 0 : index
    %23 = vector.load %arg8[%c0_22, %c0_23] : memref<1x128xf32, #tpu.memory_space<vmem>>, vector<1x128xf32>
    %24 = vector.shape_cast %23 : vector<1x128xf32> to vector<1x1x1x128xf32>
    %25 = vector.broadcast %24 : vector<1x1x1x128xf32> to vector<1x1x16x128xf32>
    %26 = arith.addf %22, %25 : vector<1x1x16x128xf32>
    %cst_24 = arith.constant 0.000000e+00 : f32
    %27 = vector.broadcast %cst_24 : f32 to vector<1x1x16x128xf32>
    %28 = arith.maximumf %26, %27 : vector<1x1x16x128xf32>
    %cst_25 = arith.constant 0.000000e+00 : f32
    %29 = vector.broadcast %cst_25 : f32 to vector<1x1x16x128xf32>
    %30 = arith.select %17, %28, %29 : vector<1x1x16x128xf32>
    %31 = vector.shape_cast %30 : vector<1x1x16x128xf32> to vector<1x16x128xf32>
    %c1_i32 = arith.constant 1 : i32
    %32 = arith.cmpi slt, %arg1, %c1_i32 : i32
    %c0_26 = arith.constant 0 : index
    %c0_27 = arith.constant 0 : index
    %c0_28 = arith.constant 0 : index
    %c0_29 = arith.constant 0 : index
    %33 = vector.load %arg4[%c0_26, %c0_27, %c0_28, %c0_29] : memref<1x1x16x128xf32, #tpu.memory_space<vmem>>, vector<1x1x16x128xf32>
    %c0_30 = arith.constant 0 : index
    %c0_31 = arith.constant 0 : index
    %34 = vector.load %arg7[%c0_30, %c0_31] : memref<1x128xf32, #tpu.memory_space<vmem>>, vector<1x128xf32>
    %35 = vector.shape_cast %34 : vector<1x128xf32> to vector<1x1x1x128xf32>
    %36 = vector.broadcast %35 : vector<1x1x1x128xf32> to vector<1x1x16x128xf32>
    %37 = arith.mulf %33, %36 : vector<1x1x16x128xf32>
    %c0_32 = arith.constant 0 : index
    %c0_33 = arith.constant 0 : index
    %38 = vector.load %arg8[%c0_32, %c0_33] : memref<1x128xf32, #tpu.memory_space<vmem>>, vector<1x128xf32>
    %39 = vector.shape_cast %38 : vector<1x128xf32> to vector<1x1x1x128xf32>
    %40 = vector.broadcast %39 : vector<1x1x1x128xf32> to vector<1x1x16x128xf32>
    %41 = arith.addf %37, %40 : vector<1x1x16x128xf32>
    %cst_34 = arith.constant 0.000000e+00 : f32
    %42 = vector.broadcast %cst_34 : f32 to vector<1x1x16x128xf32>
    %43 = arith.maximumf %41, %42 : vector<1x1x16x128xf32>
    %cst_35 = arith.constant 0.000000e+00 : f32
    %44 = vector.broadcast %cst_35 : f32 to vector<1x1x16x128xf32>
    %45 = arith.select %32, %43, %44 : vector<1x1x16x128xf32>
    %46 = vector.shape_cast %45 : vector<1x1x16x128xf32> to vector<1x16x128xf32>
    %c0_36 = arith.constant 0 : index
    %c1_37 = arith.constant 1 : index
    %c0_38 = arith.constant 0 : index
    %47 = vector.load %arg12[%c0_36, %c1_37, %c0_38] : memref<10x18x128xf32, #tpu.memory_space<vmem>>, vector<1x16x128xf32>
    tpu.vector_store %arg12[%c0_36, %c1_37, %c0_38], %31 {strides = array<i32>} : memref<10x18x128xf32, #tpu.memory_space<vmem>>, vector<1x16x128xf32>,
    %c9 = arith.constant 9 : index
    %c1_39 = arith.constant 1 : index
    %c0_40 = arith.constant 0 : index
    %48 = vector.load %arg12[%c9, %c1_39, %c0_40] : memref<10x18x128xf32, #tpu.memory_space<vmem>>, vector<1x16x128xf32>
    tpu.vector_store %arg12[%c9, %c1_39, %c0_40], %46 {strides = array<i32>} : memref<10x18x128xf32, #tpu.memory_space<vmem>>, vector<1x16x128xf32>,
    %c0_41 = arith.constant 0 : index
    %c0_42 = arith.constant 0 : index
    %c0_43 = arith.constant 0 : index
    %49 = vector.load %arg12[%c0_41, %c0_42, %c0_43] : memref<10x18x128xf32, #tpu.memory_space<vmem>>, vector<8x16x128xf32>
    %50 = arith.truncf %49 : vector<8x16x128xf32> to vector<8x16x128xbf16>
    %51 = vector.shape_cast %50 : vector<8x16x128xbf16> to vector<128x128xbf16>
    %c0_44 = arith.constant 0 : index
    %c0_45 = arith.constant 0 : index
    %52 = vector.load %arg13[%c0_44, %c0_45] : memref<128x1152xbf16, #tpu.memory_space<vmem>>, vector<128x128xbf16>
    tpu.vector_store %arg13[%c0_44, %c0_45], %51 {strides = array<i32>} : memref<128x1152xbf16, #tpu.memory_space<vmem>>, vector<128x128xbf16>,
    %c0_46 = arith.constant 0 : index
    %c1_47 = arith.constant 1 : index
    %c0_48 = arith.constant 0 : index
    %53 = vector.load %arg12[%c0_46, %c1_47, %c0_48] : memref<10x18x128xf32, #tpu.memory_space<vmem>>, vector<8x16x128xf32>
    %54 = arith.truncf %53 : vector<8x16x128xf32> to vector<8x16x128xbf16>
    %55 = vector.shape_cast %54 : vector<8x16x128xbf16> to vector<128x128xbf16>
    %c0_49 = arith.constant 0 : index
    %c128 = arith.constant 128 : index
    %56 = vector.load %arg13[%c0_49, %c128] : memref<128x1152xbf16, #tpu.memory_space<vmem>>, vector<128x128xbf16>
    tpu.vector_store %arg13[%c0_49, %c128], %55 {strides = array<i32>} : memref<128x1152xbf16, #tpu.memory_space<vmem>>, vector<128x128xbf16>,
    %c0_50 = arith.constant 0 : index
    %c2 = arith.constant 2 : index
    %c0_51 = arith.constant 0 : index
    %57 = vector.load %arg12[%c0_50, %c2, %c0_51] : memref<10x18x128xf32, #tpu.memory_space<vmem>>, vector<8x16x128xf32>
    %58 = arith.truncf %57 : vector<8x16x128xf32> to vector<8x16x128xbf16>
    %59 = vector.shape_cast %58 : vector<8x16x128xbf16> to vector<128x128xbf16>
    %c0_52 = arith.constant 0 : index
    %c256 = arith.constant 256 : index
    %60 = vector.load %arg13[%c0_52, %c256] : memref<128x1152xbf16, #tpu.memory_space<vmem>>, vector<128x128xbf16>
    tpu.vector_store %arg13[%c0_52, %c256], %59 {strides = array<i32>} : memref<128x1152xbf16, #tpu.memory_space<vmem>>, vector<128x128xbf16>,
    %c1_53 = arith.constant 1 : index
    %c0_54 = arith.constant 0 : index
    %c0_55 = arith.constant 0 : index
    %61 = vector.load %arg12[%c1_53, %c0_54, %c0_55] : memref<10x18x128xf32, #tpu.memory_space<vmem>>, vector<8x16x128xf32>
    %62 = arith.truncf %61 : vector<8x16x128xf32> to vector<8x16x128xbf16>
    %63 = vector.shape_cast %62 : vector<8x16x128xbf16> to vector<128x128xbf16>
    %c0_56 = arith.constant 0 : index
    %c384 = arith.constant 384 : index
    %64 = vector.load %arg13[%c0_56, %c384] : memref<128x1152xbf16, #tpu.memory_space<vmem>>, vector<128x128xbf16>
    tpu.vector_store %arg13[%c0_56, %c384], %63 {strides = array<i32>} : memref<128x1152xbf16, #tpu.memory_space<vmem>>, vector<128x128xbf16>,
    %c1_57 = arith.constant 1 : index
    %c1_58 = arith.constant 1 : index
    %c0_59 = arith.constant 0 : index
    %65 = vector.load %arg12[%c1_57, %c1_58, %c0_59] : memref<10x18x128xf32, #tpu.memory_space<vmem>>, vector<8x16x128xf32>
    %66 = arith.truncf %65 : vector<8x16x128xf32> to vector<8x16x128xbf16>
    %67 = vector.shape_cast %66 : vector<8x16x128xbf16> to vector<128x128xbf16>
    %c0_60 = arith.constant 0 : index
    %c512 = arith.constant 512 : index
    %68 = vector.load %arg13[%c0_60, %c512] : memref<128x1152xbf16, #tpu.memory_space<vmem>>, vector<128x128xbf16>
    tpu.vector_store %arg13[%c0_60, %c512], %67 {strides = array<i32>} : memref<128x1152xbf16, #tpu.memory_space<vmem>>, vector<128x128xbf16>,
    %c1_61 = arith.constant 1 : index
    %c2_62 = arith.constant 2 : index
    %c0_63 = arith.constant 0 : index
    %69 = vector.load %arg12[%c1_61, %c2_62, %c0_63] : memref<10x18x128xf32, #tpu.memory_space<vmem>>, vector<8x16x128xf32>
    %70 = arith.truncf %69 : vector<8x16x128xf32> to vector<8x16x128xbf16>
    %71 = vector.shape_cast %70 : vector<8x16x128xbf16> to vector<128x128xbf16>
    %c0_64 = arith.constant 0 : index
    %c640 = arith.constant 640 : index
    %72 = vector.load %arg13[%c0_64, %c640] : memref<128x1152xbf16, #tpu.memory_space<vmem>>, vector<128x128xbf16>
    tpu.vector_store %arg13[%c0_64, %c640], %71 {strides = array<i32>} : memref<128x1152xbf16, #tpu.memory_space<vmem>>, vector<128x128xbf16>,
    %c2_65 = arith.constant 2 : index
    %c0_66 = arith.constant 0 : index
    %c0_67 = arith.constant 0 : index
    %73 = vector.load %arg12[%c2_65, %c0_66, %c0_67] : memref<10x18x128xf32, #tpu.memory_space<vmem>>, vector<8x16x128xf32>
    %74 = arith.truncf %73 : vector<8x16x128xf32> to vector<8x16x128xbf16>
    %75 = vector.shape_cast %74 : vector<8x16x128xbf16> to vector<128x128xbf16>
    %c0_68 = arith.constant 0 : index
    %c768 = arith.constant 768 : index
    %76 = vector.load %arg13[%c0_68, %c768] : memref<128x1152xbf16, #tpu.memory_space<vmem>>, vector<128x128xbf16>
    tpu.vector_store %arg13[%c0_68, %c768], %75 {strides = array<i32>} : memref<128x1152xbf16, #tpu.memory_space<vmem>>, vector<128x128xbf16>,
    %c2_69 = arith.constant 2 : index
    %c1_70 = arith.constant 1 : index
    %c0_71 = arith.constant 0 : index
    %77 = vector.load %arg12[%c2_69, %c1_70, %c0_71] : memref<10x18x128xf32, #tpu.memory_space<vmem>>, vector<8x16x128xf32>
    %78 = arith.truncf %77 : vector<8x16x128xf32> to vector<8x16x128xbf16>
    %79 = vector.shape_cast %78 : vector<8x16x128xbf16> to vector<128x128xbf16>
    %c0_72 = arith.constant 0 : index
    %c896 = arith.constant 896 : index
    %80 = vector.load %arg13[%c0_72, %c896] : memref<128x1152xbf16, #tpu.memory_space<vmem>>, vector<128x128xbf16>
    tpu.vector_store %arg13[%c0_72, %c896], %79 {strides = array<i32>} : memref<128x1152xbf16, #tpu.memory_space<vmem>>, vector<128x128xbf16>,
    %c2_73 = arith.constant 2 : index
    %c2_74 = arith.constant 2 : index
    %c0_75 = arith.constant 0 : index
    %81 = vector.load %arg12[%c2_73, %c2_74, %c0_75] : memref<10x18x128xf32, #tpu.memory_space<vmem>>, vector<8x16x128xf32>
    %82 = arith.truncf %81 : vector<8x16x128xf32> to vector<8x16x128xbf16>
    %83 = vector.shape_cast %82 : vector<8x16x128xbf16> to vector<128x128xbf16>
    %c0_76 = arith.constant 0 : index
    %c1024 = arith.constant 1024 : index
    %84 = vector.load %arg13[%c0_76, %c1024] : memref<128x1152xbf16, #tpu.memory_space<vmem>>, vector<128x128xbf16>
    tpu.vector_store %arg13[%c0_76, %c1024], %83 {strides = array<i32>} : memref<128x1152xbf16, #tpu.memory_space<vmem>>, vector<128x128xbf16>,
    %c0_77 = arith.constant 0 : index
    %c0_78 = arith.constant 0 : index
    %85 = vector.load %arg13[%c0_77, %c0_78] : memref<128x1152xbf16, #tpu.memory_space<vmem>>, vector<128x1152xbf16>
    %c0_79 = arith.constant 0 : index
    %c0_80 = arith.constant 0 : index
    %86 = vector.load %arg5[%c0_79, %c0_80] : memref<1152x128xbf16, #tpu.memory_space<vmem>>, vector<1152x128xbf16>
    %cst_81 = arith.constant dense<0.000000e+00> : vector<128x128xf32>
    %87 = tpu.matmul %85, %86, %cst_81 {dimension_numbers = #tpu.dot_dimension_numbers<[1], [0], [0], [1], [0, 0, 1, 1], [], []>} : vector<128x1152xbf16>, vector<1152x128xbf16>, vector<128x128xf32> -> vector<128x128xf32>
    %c0_82 = arith.constant 0 : index
    %c0_83 = arith.constant 0 : index
    %88 = vector.load %arg6[%c0_82, %c0_83] : memref<1x128xf32, #tpu.memory_space<vmem>>, vector<1x128xf32>
    %89 = vector.broadcast %88 : vector<1x128xf32> to vector<128x128xf32>
    %90 = arith.addf %87, %89 : vector<128x128xf32>
    %91 = vector.shape_cast %90 : vector<128x128xf32> to vector<1x8x16x128xf32>
    %c0_84 = arith.constant 0 : index
    %c0_85 = arith.constant 0 : index
    %c0_86 = arith.constant 0 : index
    %c0_87 = arith.constant 0 : index
    %92 = vector.load %arg9[%c0_84, %c0_85, %c0_86, %c0_87] : memref<1x8x16x128xf32, #tpu.memory_space<vmem>>, vector<1x8x16x128xf32>
    tpu.vector_store %arg9[%c0_84, %c0_85, %c0_86, %c0_87], %91 {strides = array<i32>} : memref<1x8x16x128xf32, #tpu.memory_space<vmem>>, vector<1x8x16x128xf32>,
    %c0_i32_88 = arith.constant 0 : i32
    %93 = arith.cmpi eq, %arg1, %c0_i32_88 : i32
    %94 = arith.extui %93 : i1 to i32
    %c0_i32_89 = arith.constant 0 : i32
    %95 = arith.cmpi ne, %94, %c0_i32_89 : i32
    scf.if %95 {
      %cst_104 = arith.constant 0.000000e+00 : f32
      %107 = vector.broadcast %cst_104 : f32 to vector<1x1x128xf32>
      %c0_105 = arith.constant 0 : index
      %c0_106 = arith.constant 0 : index
      %c0_107 = arith.constant 0 : index
      %108 = vector.load %arg10[%c0_105, %c0_106, %c0_107] : memref<1x1x128xf32, #tpu.memory_space<vmem>>, vector<1x1x128xf32>
      tpu.vector_store %arg10[%c0_105, %c0_106, %c0_107], %107 {strides = array<i32>} : memref<1x1x128xf32, #tpu.memory_space<vmem>>, vector<1x1x128xf32>,
      %cst_108 = arith.constant 0.000000e+00 : f32
      %109 = vector.broadcast %cst_108 : f32 to vector<1x1x128xf32>
      %c0_109 = arith.constant 0 : index
      %c0_110 = arith.constant 0 : index
      %c0_111 = arith.constant 0 : index
      %110 = vector.load %arg11[%c0_109, %c0_110, %c0_111] : memref<1x1x128xf32, #tpu.memory_space<vmem>>, vector<1x1x128xf32>
      tpu.vector_store %arg11[%c0_109, %c0_110, %c0_111], %109 {strides = array<i32>} : memref<1x1x128xf32, #tpu.memory_space<vmem>>, vector<1x1x128xf32>,
    } else {
    }
    %c0_90 = arith.constant 0 : index
    %c0_91 = arith.constant 0 : index
    %c0_92 = arith.constant 0 : index
    %96 = vector.load %arg10[%c0_90, %c0_91, %c0_92] : memref<1x1x128xf32, #tpu.memory_space<vmem>>, vector<1x1x128xf32>
    %cst_93 = arith.constant dense<0.000000e+00> : vector<128xf32>
    %97 = vector.multi_reduction <add>, %90, %cst_93 [0] : vector<128x128xf32> to vector<128xf32>
    %98 = vector.shape_cast %97 : vector<128xf32> to vector<1x1x128xf32>
    %99 = arith.addf %96, %98 : vector<1x1x128xf32>
    %c0_94 = arith.constant 0 : index
    %c0_95 = arith.constant 0 : index
    %c0_96 = arith.constant 0 : index
    %100 = vector.load %arg10[%c0_94, %c0_95, %c0_96] : memref<1x1x128xf32, #tpu.memory_space<vmem>>, vector<1x1x128xf32>
    tpu.vector_store %arg10[%c0_94, %c0_95, %c0_96], %99 {strides = array<i32>} : memref<1x1x128xf32, #tpu.memory_space<vmem>>, vector<1x1x128xf32>,
    %c0_97 = arith.constant 0 : index
    %c0_98 = arith.constant 0 : index
    %c0_99 = arith.constant 0 : index
    %101 = vector.load %arg11[%c0_97, %c0_98, %c0_99] : memref<1x1x128xf32, #tpu.memory_space<vmem>>, vector<1x1x128xf32>
    %102 = arith.mulf %90, %90 : vector<128x128xf32>
    %cst_100 = arith.constant dense<0.000000e+00> : vector<128xf32>
    %103 = vector.multi_reduction <add>, %102, %cst_100 [0] : vector<128x128xf32> to vector<128xf32>
    %104 = vector.shape_cast %103 : vector<128xf32> to vector<1x1x128xf32>
    %105 = arith.addf %101, %104 : vector<1x1x128xf32>
    %c0_101 = arith.constant 0 : index
    %c0_102 = arith.constant 0 : index
    %c0_103 = arith.constant 0 : index
    %106 = vector.load %arg11[%c0_101, %c0_102, %c0_103] : memref<1x1x128xf32, #tpu.memory_space<vmem>>, vector<1x1x128xf32>
    tpu.vector_store %arg11[%c0_101, %c0_102, %c0_103], %105 {strides = array<i32>} : memref<1x1x128xf32, #tpu.memory_space<vmem>>, vector<1x1x128xf32>,
    return
  }
  func.func @transform_0(%arg0: i32, %arg1: i32) -> (i32, i32, i32, i32) {
    %c0_i32 = arith.constant 0 : i32
    %c0_i32_0 = arith.constant 0 : i32
    %c0_i32_1 = arith.constant 0 : i32
    return %arg0, %arg1, %c0_i32, %c0_i32_0 : i32, i32, i32, i32
  }
  func.func @transform_1(%arg0: i32, %arg1: i32) -> (i32, i32, i32, i32) {
    %c8_i32 = arith.constant 8 : i32
    %0 = arith.muli %arg1, %c8_i32 : i32
    %c1_i32 = arith.constant 1 : i32
    %1 = arith.subi %0, %c1_i32 : i32
    %c0_i32 = arith.constant 0 : i32
    %2 = arith.maxsi %1, %c0_i32 : i32
    %c0_i32_0 = arith.constant 0 : i32
    %c0_i32_1 = arith.constant 0 : i32
    %c0_i32_2 = arith.constant 0 : i32
    return %arg0, %2, %c0_i32_0, %c0_i32_1 : i32, i32, i32, i32
  }
  func.func @transform_2(%arg0: i32, %arg1: i32) -> (i32, i32, i32, i32) {
    %c8_i32 = arith.constant 8 : i32
    %0 = arith.muli %arg1, %c8_i32 : i32
    %c8_i32_0 = arith.constant 8 : i32
    %1 = arith.addi %0, %c8_i32_0 : i32
    %c15_i32 = arith.constant 15 : i32
    %2 = arith.minsi %1, %c15_i32 : i32
    %c0_i32 = arith.constant 0 : i32
    %c0_i32_1 = arith.constant 0 : i32
    %c0_i32_2 = arith.constant 0 : i32
    return %arg0, %2, %c0_i32, %c0_i32_1 : i32, i32, i32, i32
  }
  func.func @transform_3(%arg0: i32, %arg1: i32) -> (i32, i32) {
    %c0_i32 = arith.constant 0 : i32
    %c0_i32_0 = arith.constant 0 : i32
    %c0_i32_1 = arith.constant 0 : i32
    return %c0_i32, %c0_i32_0 : i32, i32
  }
  func.func @transform_4(%arg0: i32, %arg1: i32) -> (i32, i32) {
    %c0_i32 = arith.constant 0 : i32
    %c0_i32_0 = arith.constant 0 : i32
    %c0_i32_1 = arith.constant 0 : i32
    return %c0_i32, %c0_i32_0 : i32, i32
  }
  func.func @transform_5(%arg0: i32, %arg1: i32) -> (i32, i32) {
    %c0_i32 = arith.constant 0 : i32
    %c0_i32_0 = arith.constant 0 : i32
    %c0_i32_1 = arith.constant 0 : i32
    return %c0_i32, %c0_i32_0 : i32, i32
  }
  func.func @transform_6(%arg0: i32, %arg1: i32) -> (i32, i32) {
    %c0_i32 = arith.constant 0 : i32
    %c0_i32_0 = arith.constant 0 : i32
    %c0_i32_1 = arith.constant 0 : i32
    return %c0_i32, %c0_i32_0 : i32, i32
  }
  func.func @transform_7(%arg0: i32, %arg1: i32) -> (i32, i32, i32, i32) {
    %c0_i32 = arith.constant 0 : i32
    %c0_i32_0 = arith.constant 0 : i32
    %c0_i32_1 = arith.constant 0 : i32
    return %arg0, %arg1, %c0_i32, %c0_i32_0 : i32, i32, i32, i32
  }
  func.func @transform_8(%arg0: i32, %arg1: i32) -> (i32, i32, i32) {
    %c0_i32 = arith.constant 0 : i32
    %c0_i32_0 = arith.constant 0 : i32
    %c0_i32_1 = arith.constant 0 : i32
    return %arg0, %c0_i32, %c0_i32_0 : i32, i32, i32
  }
  func.func @transform_9(%arg0: i32, %arg1: i32) -> (i32, i32, i32) {
    %c0_i32 = arith.constant 0 : i32
    %c0_i32_0 = arith.constant 0 : i32
    %c0_i32_1 = arith.constant 0 : i32
    return %arg0, %c0_i32, %c0_i32_0 : i32, i32, i32
  }
}

module attributes {stable_mosaic.version = 11 : i64} {
  func.func @_affine_relu_kernel(%arg0: i32, %arg1: i32, %arg2: memref<1x8x16x128xf32, #tpu.memory_space<vmem>>, %arg3: memref<1x128xf32, #tpu.memory_space<vmem>>, %arg4: memref<1x128xf32, #tpu.memory_space<vmem>>, %arg5: memref<1x8x16x128xf32, #tpu.memory_space<vmem>>) attributes {dimension_semantics = [#tpu.dimension_semantics<parallel>, #tpu.dimension_semantics<parallel>], iteration_bounds = array<i64: 2, 2>, scalar_prefetch = 0 : i64, scratch_operands = 0 : i64, tpu.core_type = #tpu.core_type<tc>, window_params = [{transform_indices = @transform_0, window_bounds = array<i64: 1, 8, 16, 128>}, {pipeline_mode = #tpu.pipeline_mode<synchronous>, transform_indices = @transform_1, window_bounds = array<i64: 1, 128>}, {pipeline_mode = #tpu.pipeline_mode<synchronous>, transform_indices = @transform_2, window_bounds = array<i64: 1, 128>}, {transform_indices = @transform_3, window_bounds = array<i64: 1, 8, 16, 128>}]} {
    %c0 = arith.constant 0 : index
    %c0_0 = arith.constant 0 : index
    %c0_1 = arith.constant 0 : index
    %c0_2 = arith.constant 0 : index
    %0 = vector.load %arg2[%c0, %c0_0, %c0_1, %c0_2] : memref<1x8x16x128xf32, #tpu.memory_space<vmem>>, vector<1x8x16x128xf32>
    %c0_3 = arith.constant 0 : index
    %c0_4 = arith.constant 0 : index
    %1 = vector.load %arg3[%c0_3, %c0_4] : memref<1x128xf32, #tpu.memory_space<vmem>>, vector<1x128xf32>
    %2 = vector.shape_cast %1 : vector<1x128xf32> to vector<1x1x1x128xf32>
    %3 = vector.broadcast %2 : vector<1x1x1x128xf32> to vector<1x8x16x128xf32>
    %4 = arith.mulf %0, %3 : vector<1x8x16x128xf32>
    %c0_5 = arith.constant 0 : index
    %c0_6 = arith.constant 0 : index
    %5 = vector.load %arg4[%c0_5, %c0_6] : memref<1x128xf32, #tpu.memory_space<vmem>>, vector<1x128xf32>
    %6 = vector.shape_cast %5 : vector<1x128xf32> to vector<1x1x1x128xf32>
    %7 = vector.broadcast %6 : vector<1x1x1x128xf32> to vector<1x8x16x128xf32>
    %8 = arith.addf %4, %7 : vector<1x8x16x128xf32>
    %cst = arith.constant 0.000000e+00 : f32
    %9 = vector.broadcast %cst : f32 to vector<1x8x16x128xf32>
    %10 = arith.maximumf %8, %9 : vector<1x8x16x128xf32>
    %c0_7 = arith.constant 0 : index
    %c0_8 = arith.constant 0 : index
    %c0_9 = arith.constant 0 : index
    %c0_10 = arith.constant 0 : index
    %11 = vector.load %arg5[%c0_7, %c0_8, %c0_9, %c0_10] : memref<1x8x16x128xf32, #tpu.memory_space<vmem>>, vector<1x8x16x128xf32>
    tpu.vector_store %arg5[%c0_7, %c0_8, %c0_9, %c0_10], %10 {strides = array<i32>} : memref<1x8x16x128xf32, #tpu.memory_space<vmem>>, vector<1x8x16x128xf32>,
    return
  }
  func.func @transform_0(%arg0: i32, %arg1: i32) -> (i32, i32, i32, i32) {
    %c0_i32 = arith.constant 0 : i32
    %c0_i32_0 = arith.constant 0 : i32
    %c0_i32_1 = arith.constant 0 : i32
    return %arg0, %arg1, %c0_i32, %c0_i32_0 : i32, i32, i32, i32
  }
  func.func @transform_1(%arg0: i32, %arg1: i32) -> (i32, i32) {
    %c0_i32 = arith.constant 0 : i32
    %c0_i32_0 = arith.constant 0 : i32
    %c0_i32_1 = arith.constant 0 : i32
    return %c0_i32, %c0_i32_0 : i32, i32
  }
  func.func @transform_2(%arg0: i32, %arg1: i32) -> (i32, i32) {
    %c0_i32 = arith.constant 0 : i32
    %c0_i32_0 = arith.constant 0 : i32
    %c0_i32_1 = arith.constant 0 : i32
    return %c0_i32, %c0_i32_0 : i32, i32
  }
  func.func @transform_3(%arg0: i32, %arg1: i32) -> (i32, i32, i32, i32) {
    %c0_i32 = arith.constant 0 : i32
    %c0_i32_0 = arith.constant 0 : i32
    %c0_i32_1 = arith.constant 0 : i32
    return %arg0, %arg1, %c0_i32, %c0_i32_0 : i32, i32, i32, i32
  }
}

</mosaic_0001>

<bundles_post_ra>
// kernel: double_conv.5
= control target key start
LH: loop header
LB: loop body
LE: loop exit
PB: predicated region body
PF: predicated region fallthrough
CT: control target
= control target key end

     0   :  { %s525_s12 = smov 0   ;;  %s527_s13 = smov 0   ;;  %s654_s0 = inlined_call_operand.vmem [shape: f32[2,16,16,128], index: 0, kind: input, shape index: {}]   ;;  %s655_s1 = inlined_call_operand.vmem [shape: f32[1,128], index: 1, kind: input, shape index: {}]   ;;  %s656_s2 = inlined_call_operand.vmem [shape: f32[1,128], index: 2, kind: input, shape index: {}]   ;;  %s657_s3 = inlined_call_operand.vmem [shape: f32[2,16,16,128], index: 3, kind: output, shape index: {}]  }
   0x1   :  { %s529_s14 = smov 0   ;;  %s531_s15 = smov 0  }
   0x2   :  { %s533_s16 = smov 0  }
   0x3 LB: > { %s22_s17 = sadd.s32 1, %s495_s14  ;;  %s25_s18 = sadd.s32 1, %s499_s15  ;;  %s503_s16 = sphi %s533_s16, %s13_s16   ;;  %s499_s15 = sphi %s531_s15, %s661_s15   ;;  %s495_s14 = sphi %s529_s14, %s660_s14   ;;  %s491_s13 = sphi %s527_s13, %s659_s13   ;;  %s487_s12 = sphi %s525_s12, %s658_s12  }
   0x4   : > { %p23_p0 = scmp.ge.s32.totalorder %s22_s17, 2  ;;  %p412_p1 = scmp.ge.s32.totalorder %s503_s16, 1 }
   0x5   : > { %p159_p2 = scmp.lt.s32.totalorder %s503_s16, 5 }
   0x6   : > { %s663_s17 = smov (%p23_p0, %s22_s17), 0  ;;  %s665_s18 = smov (!%p23_p0, %s25_s18), %s499_s15 }
   0x7   : > { %p160_p3 = pnand %p412_p1, %p159_p2  ;;  %p27_p4 = scmp.ge.s32.totalorder %s665_s18, 2 }
   0x8   : > { %s413_s19 = sshll.u32 (!%p160_p3), %s487_s12, 3  ;;  %p194_p5 = scmp.lt.s32.totalorder (!%p160_p3), %s491_s13, 1  ;;  %v558_v0 = vld [vmem:[%s655_s1] ss:$0 sm:$0xff] (!%p160_p3) }
   0x9   : > { %s667_s18 = smov (%p27_p4, %s665_s18), 0  ;;  %163 = sbr.rel (%p160_p3) target bundleno = 39 (0x27), region = 32 }
   0xa   : > { %p196_p6 = scmp.lt.s32.totalorder (!%p160_p3), %s413_s19, 15  ;;  %v568_v1 = vld [vmem:[%s656_s2] ss:$0 sm:$0xff] (!%p160_p3) }
  0x10   : > { %s669_s13 = smov (!%p194_p5, %s491_s13), 1  ;;  %s671_s19 = smov (!%p196_p6, %s413_s19), 15 }
  0x11   : > { %s415_s20 = sshll.u32 %s669_s13, 5  ;;  %s414_s21 = sshll.u32 %s671_s19, 1 }
  0x12   : > { %s200_s22 = sadd.s32 %s415_s20, %s414_s21 }
  0x13   : > { %s416_s23 = sshll.u32 %s200_s22, 3 }
  0x14   : > { %s563_s28 = scalar_lea.vmem %s654_s0, %s416_s23  ;;  %s591_s6 = scalar_lea.vmem %s657_s3, %s416_s23 }
  0x15   : > { %v215_v2 = vld [vmem:[%s563_s28] sm:$0xff]  ;;  %v216_v3 = vld [vmem:[%s563_s28 + $0x8] sm:$0xff]  ;;  %v217_v4 = vld [vmem:[%s563_s28 + $0x10] sm:$0xff] }
  0x16   : > { %v238_v5 = vmul.f32 %v558_v0, %v215_v2  ;;  %v239_v6 = vmul.f32 %v558_v0, %v216_v3  ;;  %v240_v7 = vmul.f32 %v558_v0, %v217_v4  ;;  %v218_v8 = vld [vmem:[%s563_s28 + $0x18] sm:$0xff]  ;;  %v219_v9 = vld [vmem:[%s563_s28 + $0x20] sm:$0xff]  ;;  %v220_v10 = vld [vmem:[%s563_s28 + $0x28] sm:$0xff] }
  0x17   : > { %v241_v11 = vmul.f32 %v558_v0, %v218_v8  ;;  %v242_v12 = vmul.f32 %v558_v0, %v219_v9  ;;  %v243_v13 = vmul.f32 %v558_v0, %v220_v10  ;;  %v221_v14 = vld [vmem:[%s563_s28 + $0x30] sm:$0xff]  ;;  %v222_v15 = vld [vmem:[%s563_s28 + $0x38] sm:$0xff]  ;;  %v223_v24 = vld [vmem:[%s563_s28 + $0x40] sm:$0xff] }
  0x18   : > { %v261_v16 = vadd.f32 %v568_v1, %v238_v5  ;;  %v262_v17 = vadd.f32 %v568_v1, %v239_v6  ;;  %v263_v18 = vadd.f32 %v568_v1, %v240_v7  ;;  %v244_v19 = vmul.f32 %v558_v0, %v221_v14  ;;  %v224_v25 = vld [vmem:[%s563_s28 + $0x48] sm:$0xff]  ;;  %v225_v26 = vld [vmem:[%s563_s28 + $0x50] sm:$0xff]  ;;  %v226_v31 = vld [vmem:[%s563_s28 + $0x58] sm:$0xff] }
  0x19   : > { %v264_v20 = vadd.f32 %v568_v1, %v241_v11  ;;  %v265_v21 = vadd.f32 %v568_v1, %v242_v12  ;;  %v266_v22 = vadd.f32 %v568_v1, %v243_v13  ;;  %v245_v23 = vmul.f32 %v558_v0, %v222_v15  ;;  %v227_v32 = vld [vmem:[%s563_s28 + $0x60] sm:$0xff]  ;;  %v228_v33 = vld [vmem:[%s563_s28 + $0x68] sm:$0xff]  ;;  %v229_v38 = vld [vmem:[%s563_s28 + $0x70] sm:$0xff] }
  0x1a   : > { %v277_v27 = vmax.f32 %v261_v16, 0.0  ;;  %v278_v28 = vmax.f32 %v262_v17, 0.0  ;;  %v279_v29 = vmax.f32 %v263_v18, 0.0  ;;  %v267_v30 = vadd.f32 %v568_v1, %v244_v19  ;;  %v230_v43 = vld [vmem:[%s563_s28 + $0x78] sm:$0xff] }
  0x1b   : > { %v280_v34 = vmax.f32 %v264_v20, 0.0  ;;  %v281_v35 = vmax.f32 %v265_v21, 0.0  ;;  %v282_v36 = vmax.f32 %v266_v22, 0.0  ;;  %v268_v37 = vadd.f32 %v568_v1, %v245_v23 }
  0x1c   : > { %293 = vst [vmem:[%s591_s6] sm:$0xff] %v277_v27  ;;  %294 = vst [vmem:[%s591_s6 + $0x8] sm:$0xff] %v278_v28  ;;  %v283_v39 = vmax.f32 %v267_v30, 0.0  ;;  %v246_v40 = vmul.f32 %v558_v0, %v223_v24  ;;  %v247_v41 = vmul.f32 %v558_v0, %v224_v25  ;;  %v248_v42 = vmul.f32 %v558_v0, %v225_v26 }
  0x1d   : > { %295 = vst [vmem:[%s591_s6 + $0x10] sm:$0xff] %v279_v29  ;;  %296 = vst [vmem:[%s591_s6 + $0x18] sm:$0xff] %v280_v34  ;;  %v284_v44 = vmax.f32 %v268_v37, 0.0  ;;  %v249_v45 = vmul.f32 %v558_v0, %v226_v31  ;;  %v250_v46 = vmul.f32 %v558_v0, %v227_v32  ;;  %v251_v47 = vmul.f32 %v558_v0, %v228_v33 }
  0x1e   : > { %297 = vst [vmem:[%s591_s6 + $0x20] sm:$0xff] %v281_v35  ;;  %298 = vst [vmem:[%s591_s6 + $0x28] sm:$0xff] %v282_v36  ;;  %v269_v48 = vadd.f32 %v568_v1, %v246_v40  ;;  %v270_v49 = vadd.f32 %v568_v1, %v247_v41  ;;  %v271_v50 = vadd.f32 %v568_v1, %v248_v42 }
  0x1f   : > { %299 = vst [vmem:[%s591_s6 + $0x30] sm:$0xff] %v283_v39  ;;  %v252_v51 = vmul.f32 %v558_v0, %v229_v38  ;;  %300 = vst [vmem:[%s591_s6 + $0x38] sm:$0xff] %v284_v44  ;;  %v272_v52 = vadd.f32 %v568_v1, %v249_v45  ;;  %v273_v53 = vadd.f32 %v568_v1, %v250_v46 }
  0x20   : > { %v274_v54 = vadd.f32 %v568_v1, %v251_v47  ;;  %v253_v55 = vmul.f32 %v558_v0, %v230_v43  ;;  %v285_v56 = vmax.f32 %v269_v48, 0.0  ;;  %v286_v57 = vmax.f32 %v270_v49, 0.0 }
  0x21   : > { %v287_v58 = vmax.f32 %v271_v50, 0.0  ;;  %v275_v59 = vadd.f32 %v568_v1, %v252_v51  ;;  %v288_v60 = vmax.f32 %v272_v52, 0.0  ;;  %v289_v61 = vmax.f32 %v273_v53, 0.0 }
  0x22   : > { %v290_v62 = vmax.f32 %v274_v54, 0.0  ;;  %v276_v63 = vadd.f32 %v568_v1, %v253_v55  ;;  %301 = vst [vmem:[%s591_s6 + $0x40] sm:$0xff] %v285_v56  ;;  %302 = vst [vmem:[%s591_s6 + $0x48] sm:$0xff] %v286_v57 }
  0x23   : > { %303 = vst [vmem:[%s591_s6 + $0x50] sm:$0xff] %v287_v58  ;;  %v291_v2 = vmax.f32 %v275_v59, 0.0  ;;  %304 = vst [vmem:[%s591_s6 + $0x58] sm:$0xff] %v288_v60 }
  0x24   : > { %305 = vst [vmem:[%s591_s6 + $0x60] sm:$0xff] %v289_v61  ;;  %306 = vst [vmem:[%s591_s6 + $0x68] sm:$0xff] %v290_v62  ;;  %v292_v0 = vmax.f32 %v276_v63, 0.0 }
  0x25   : > { %307 = vst [vmem:[%s591_s6 + $0x70] sm:$0xff] %v291_v2 }
  0x26   : > { %308 = vst [vmem:[%s591_s6 + $0x78] sm:$0xff] %v292_v0 }
  0x27 PF: > { %s13_s16 = sadd.s32 1, %s503_s16   ;;  %s658_s12 = smov %s495_s14 }
  0x28   : > { %p10_p7 = scmp.ge.s32.totalorder %s13_s16, 6   ;;  %s659_s13 = smov %s499_s15 }
  0x29   : > { %s660_s14 = smov %s663_s17  ;;  %s661_s15 = smov %s667_s18 }
  0x2a   :  { %12 = sbr.rel (!%p10_p7) target bundleno = 3 (0x3), region = 62 }

// kernel: double_conv.3
= control target key start
LH: loop header
LB: loop body
LE: loop exit
PB: predicated region body
PF: predicated region fallthrough
CT: control target
= control target key end

     0   :  { %s1845_s30 = smov 0   ;;  %s1847_s10 = smov 0   ;;  %s2287_s0 = inlined_call_operand.vmem [shape: f32[2,16,16,4], index: 0, kind: input, shape index: {}, may-alias: {0,1,2}]   ;;  %s2288_s1 = inlined_call_operand.vmem [shape: f32[2,16,16,4], index: 1, kind: input, shape index: {}, may-alias: {0,1,2}]   ;;  %s2289_s2 = inlined_call_operand.vmem [shape: f32[2,16,16,4], index: 2, kind: input, shape index: {}, may-alias: {0,1,2}]   ;;  %s2290_s3 = inlined_call_operand.vmem [shape: bf16[36,128], index: 3, kind: input, shape index: {}]   ;;  %s2291_s4 = inlined_call_operand.vmem [shape: f32[1,128], index: 4, kind: input, shape index: {}]   ;;  %s2292_s5 = inlined_call_operand.vmem [shape: f32[1,4], index: 5, kind: input, shape index: {}]   ;;  %s2293_s6 = inlined_call_operand.vmem [shape: f32[1,4], index: 6, kind: input, shape index: {}]   ;;  %s2294_s7 = inlined_call_operand.vmem [shape: f32[2,16,16,128], index: 7, kind: output, shape index: {0}]   ;;  %s2295_s8 = inlined_call_operand.vmem [shape: f32[2,1,128], index: 8, kind: output, shape index: {1}]   ;;  %s2296_s9 = inlined_call_operand.vmem [shape: f32[2,1,128], index: 9, kind: output, shape index: {2}]  }
   0x1   :  { %s1849_s11 = smov 0   ;;  %s1851_s12 = smov 0  }
   0x2   :  { %s1853_s5 = smov 0  }
   0x3 LB: > { %s29_s6 = sadd.s32 1, %s1775_s11  ;;  %s32_s13 = sadd.s32 1, %s1779_s12  ;;  %s1783_s5 = sphi %s1853_s5, %s20_s5   ;;  %s1779_s12 = sphi %s1851_s12, %s2301_s12   ;;  %s1775_s11 = sphi %s1849_s11, %s2300_s11   ;;  %s1771_s10 = sphi %s1847_s10, %s2299_s10   ;;  %s1767_s30 = sphi %s1845_s30, %s2298_s30  }
   0x4   : > { %p30_p0 = scmp.ge.s32.totalorder %s29_s6, 2  ;;  %p1596_p1 = scmp.ge.s32.totalorder %s1783_s5, 1 }
   0x5   : > { %p378_p2 = scmp.lt.s32.totalorder %s1783_s5, 5 }
   0x6   : > { %s2303_s6 = smov (%p30_p0, %s29_s6), 0  ;;  %s2305_s13 = smov (!%p30_p0, %s32_s13), %s1779_s12 }
   0x7   : > { %p379_p3 = pnand %p1596_p1, %p378_p2  ;;  %p34_p4 = scmp.ge.s32.totalorder %s2305_s13, 2 }
   0x8   : > { %s1880_s14 = sshll.u32 (!%p379_p3), %s1767_s30, 3  ;;  %p457_p5 = scmp.lt.s32.totalorder (!%p379_p3), %s1771_s10, 1  ;;  %vm519_vm0 = vcmask (!%p379_p3), 24576   ;;  %v1785_v0 = vmov (!%p379_p3), 0.0   ;;  %vm557_vm1 = vcmask (!%p379_p3), 31744   ;;  %vm1208_vm2 = vcmask (!%p379_p3), 1041408  }
   0x9   : > { %s2307_s13 = smov (%p34_p4, %s2305_s13), 0  ;;  %382 = sbr.rel (%p379_p3) target bundleno = 547 (0x223), region = 48 }
   0xa   : > { %p459_p6 = scmp.lt.s32.totalorder (!%p379_p3), %s1880_s14, 15  ;;  %531 = vst.msk [vmem:[#allocation2 + $0x29] sm:$0x1] (!%p379_p3), %vm519_vm0, %v1785_v0  ;;  %520 = vst.msk [vmem:[#allocation2] sm:$0x1] (!%p379_p3), %vm519_vm0, %v1785_v0  ;;  %s1937_s29 = sadd.s32 (!%p379_p3), 4294967295, %s1880_s14 }
   0xb   : > { %521 = vst.msk [vmem:[#allocation2 + $0x18] sm:$0x1] (!%p379_p3), %vm519_vm0, %v1785_v0  ;;  %522 = vst.msk [vmem:[#allocation2 + $0x30] sm:$0x1] (!%p379_p3), %vm519_vm0, %v1785_v0  ;;  %p574_p7 = scmp.gt.s32.totalorder (!%p379_p3), %s1767_s30, 0  ;;  %p469_p8 = scmp.gt.s32.totalorder (!%p379_p3), %s1937_s29, 0 }
   0xc   : > { %523 = vst.msk [vmem:[#allocation2 + $0x48] sm:$0x1] (!%p379_p3), %vm519_vm0, %v1785_v0  ;;  %524 = vst.msk [vmem:[#allocation2 + $0x60] sm:$0x1] (!%p379_p3), %vm519_vm0, %v1785_v0  ;;  %p1603_p9 = scmp.lt.s32.totalorder (!%p379_p3), %s1937_s29, 15  ;;  %s1786_s27 = smov (!%p379_p3), 4  }
   0xd   : > { %525 = vst.msk [vmem:[#allocation2 + $0x78] sm:$0x1] (!%p379_p3), %vm519_vm0, %v1785_v0  ;;  %526 = vst.msk [vmem:[#allocation2 + $0x90] sm:$0x1] (!%p379_p3), %vm519_vm0, %v1785_v0  ;;  %p582_p10 = scmp.lt.s32.totalorder (!%p379_p3), %s1767_s30, 1  ;;  %vm683_vm3 = vcmask (!%p379_p3), 64544  }
   0xe   : > { %527 = vst.msk [vmem:[#allocation2 + $0xa8] sm:$0x1] (!%p379_p3), %vm519_vm0, %v1785_v0  ;;  %528 = vst.msk [vmem:[#allocation2 + $0xc0] sm:$0x1] (!%p379_p3), %vm519_vm0, %v1785_v0  ;;  %vm748_vm4 = vcmask (!%p379_p3), 97344   ;;  %vm813_vm5 = vcmask (!%p379_p3), 130144  }
   0xf   : > { %529 = vst.msk [vmem:[#allocation2 + $0xd8] sm:$0x1] (!%p379_p3), %vm519_vm0, %v1785_v0  ;;  %530 = vst.msk [vmem:[#allocation2 + $0x11] sm:$0x1] (!%p379_p3), %vm519_vm0, %v1785_v0  ;;  %vm878_vm6 = vcmask (!%p379_p3), 162944   ;;  %vm943_vm7 = vcmask (!%p379_p3), 195744  }
  0x10   : > { %532 = vst.msk [vmem:[#allocation2 + $0x41] sm:$0x1] %vm519_vm0, %v1785_v0  ;;  %533 = vst.msk [vmem:[#allocation2 + $0x59] sm:$0x1] %vm519_vm0, %v1785_v0  ;;  %s2309_s10 = smov (!%p457_p5, %s1771_s10), 1  ;;  %vm1009_vm8 = vcmask 228544  }
  0x11   : > { %534 = vst.msk [vmem:[#allocation2 + $0x71] sm:$0x1] %vm519_vm0, %v1785_v0  ;;  %535 = vst.msk [vmem:[#allocation2 + $0x89] sm:$0x1] %vm519_vm0, %v1785_v0  ;;  %s460_s15 = scalar_select %p459_p6, %s1880_s14, 15  ;;  %vm1074_vm9 = vcmask 261344  }
  0x12   : > { %536 = vst.msk [vmem:[#allocation2 + $0xa1] sm:$0x1] %vm519_vm0, %v1785_v0  ;;  %537 = vst.msk [vmem:[#allocation2 + $0xb9] sm:$0x1] %vm519_vm0, %v1785_v0  ;;  %s1910_s16 = sshll.u32 %s2309_s10, 5  ;;  %s1915_s19 = scalar_lea.vmem %s2295_s8, %s2309_s10  ;;  %vm1139_vm10 = vcmask 294144  }
  0x13   : > { %538 = vst.msk [vmem:[#allocation2 + $0xd1] sm:$0x1] %vm519_vm0, %v1785_v0  ;;  %539 = vst.msk [vmem:[#allocation2 + $0xe9] sm:$0x1] %vm519_vm0, %v1785_v0  ;;  %s1598_s20 = sshll.u32 %s460_s15, 1  ;;  %s1920_s23 = scalar_lea.vmem %s2296_s9, %s2309_s10  ;;  %vm1183_vm11 = vcmask 293888  }
  0x14   : > { %s1923_s24 = sadd.s32 %s1910_s16, %s1598_s20  ;;  %p1634_p12 = scmp.ne.s32.totalorder %s1767_s30, 0 }
  0x15   : > { %s1600_s25 = sshll.u32 %s1923_s24, 3 }
  0x16   : > { %s1931_s28 = scalar_lea.vmem %s2287_s0, %s1600_s25 }
  0x17   : > { %v546_v1 = vld [vmem:[%s1931_s28 + $0x30] sm:$0xff]  ;;  %v547_v2 = vld [vmem:[%s1931_s28 + $0x38] sm:$0xff]  ;;  %v540_v3 = vld [vmem:[%s1931_s28] sm:$0xff]  ;;  %s470_s10 = scalar_select %p469_p8, %s1937_s29, 0 }
  0x18   : > { %564 = vst.msk [vmem:[#allocation2 + $0x61] sm:$0xff] %vm557_vm1, %v546_v1  ;;  %565 = vst.msk [vmem:[#allocation2 + $0x69] sm:$0xff] %vm557_vm1, %v547_v2  ;;  %v541_v4 = vld [vmem:[%s1931_s28 + $0x8] sm:$0xff]  ;;  %v548_v5 = vld [vmem:[%s1931_s28 + $0x40] sm:$0xff]  ;;  %s1975_s15 = scalar_select %p574_p7, 255, 0 }
  0x19   : > { %558 = vst.msk [vmem:[#allocation2 + $0x19] sm:$0xff] %vm557_vm1, %v540_v3  ;;  %v549_v6 = vld [vmem:[%s1931_s28 + $0x48] sm:$0xff]  ;;  %559 = vst.msk [vmem:[#allocation2 + $0x21] sm:$0xff] %vm557_vm1, %v541_v4  ;;  %v542_v7 = vld [vmem:[%s1931_s28 + $0x10] sm:$0xff]  ;;  %s2311_s10 = smov (!%p1603_p9, %s470_s10), 15  ;;  %s1791_s29 = smov 24  }
  0x1a   : > { %566 = vst.msk [vmem:[#allocation2 + $0x79] sm:$0xff] %vm557_vm1, %v548_v5  ;;  %567 = vst.msk [vmem:[#allocation2 + $0x81] sm:$0xff] %vm557_vm1, %v549_v6  ;;  %v543_v8 = vld [vmem:[%s1931_s28 + $0x18] sm:$0xff]  ;;  %v550_v9 = vld [vmem:[%s1931_s28 + $0x50] sm:$0xff]  ;;  %s1608_s17 = sshll.u32 %s2311_s10, 1 }
  0x1b   : > { %560 = vst.msk [vmem:[#allocation2 + $0x31] sm:$0xff] %vm557_vm1, %v542_v7  ;;  %561 = vst.msk [vmem:[#allocation2 + $0x39] sm:$0xff] %vm557_vm1, %v543_v8  ;;  %v551_v10 = vld [vmem:[%s1931_s28 + $0x58] sm:$0xff]  ;;  %v544_v11 = vld [vmem:[%s1931_s28 + $0x20] sm:$0xff]  ;;  %s477_s18 = sadd.s32 %s1608_s17, %s1910_s16 }
  0x1c   : > { %568 = vst.msk [vmem:[#allocation2 + $0x91] sm:$0xff] %vm557_vm1, %v550_v9  ;;  %v545_v12 = vld [vmem:[%s1931_s28 + $0x28] sm:$0xff]  ;;  %569 = vst.msk [vmem:[#allocation2 + $0x99] sm:$0xff] %vm557_vm1, %v551_v10  ;;  %v552_v13 = vld [vmem:[%s1931_s28 + $0x60] sm:$0xff]  ;;  %s1610_s20 = sshll.u32 %s477_s18, 3 }
  0x1d   : > { %562 = vst.msk [vmem:[#allocation2 + $0x49] sm:$0xff] %vm557_vm1, %v544_v11  ;;  %563 = vst.msk [vmem:[#allocation2 + $0x51] sm:$0xff] %vm557_vm1, %v545_v12  ;;  %v553_v14 = vld [vmem:[%s1931_s28 + $0x68] sm:$0xff]  ;;  %v554_v15 = vld [vmem:[%s1931_s28 + $0x70] sm:$0xff]  ;;  %s479_s26 = scalar_lea.vmem %s2288_s1, %s1610_s20 }
  0x1e   : > { %570 = vst.msk [vmem:[#allocation2 + $0xa9] sm:$0xff] %vm557_vm1, %v552_v13  ;;  %571 = vst.msk [vmem:[#allocation2 + $0xb1] sm:$0xff] %vm557_vm1, %v553_v14  ;;  %v555_v16 = vld [vmem:[%s1931_s28 + $0x78] sm:$0xff]  ;;  %s485_s28 = sadd.s32 8, %s1880_s14  ;;  %v1732_v40 = vld [vmem:[%s479_s26] sm:%s1975_s15]  ;;  %s1787_s14 = smov 8  }
  0x1f   : > { %572 = vst.msk [vmem:[#allocation2 + $0xc1] sm:$0xff] %vm557_vm1, %v554_v15  ;;  %573 = vst.msk [vmem:[#allocation2 + $0xc9] sm:$0xff] %vm557_vm1, %v555_v16  ;;  %v635_v17 = vld [vmem:[#allocation2 + $0x61] sm:$0xff]  ;;  %v636_v18 = vld [vmem:[#allocation2 + $0x69] sm:$0xff]  ;;  %p1998_p11 = scmp.lt.s32.totalorder %s485_s28, 15 }
  0x20   : > { %v629_v19 = vld [vmem:[#allocation2 + $0x19] sm:$0xff]  ;;  %v1979_v20 = vpack.c.bf16 %v636_v18, %v635_v17  ;;  %v630_v21 = vld [vmem:[#allocation2 + $0x21] sm:$0xff]  ;;  %v701_v35 = vld [vmem:[#allocation2 + $0x6a] sm:$0xff]  ;;  %590 = vst.msk [vmem:[#allocation2 + $0x1] sm:$0xff] %vm557_vm1, %v1732_v40  ;;  %s1737_s10 = scalar_select %p582_p10, 255, 0 }
  0x21   : > { %v694_v22 = vld [vmem:[#allocation2 + $0x1a] sm:$0xff]  ;;  %v695_v23 = vld [vmem:[#allocation2 + $0x22] sm:$0xff]  ;;  %v1981_v24 = vpack.c.bf16 %v630_v21, %v629_v19  ;;  %s2313_s28 = smov (!%p1998_p11, %s485_s28), 15 }
  0x22   : > { %v637_v25 = vld [vmem:[#allocation2 + $0x79] sm:$0xff]  ;;  %v638_v26 = vld [vmem:[#allocation2 + $0x81] sm:$0xff]  ;;  %667 = vrot.lane.b32.xlu0 %v1979_v20, %s1786_s27  ;;  %v1988_v28 = vpack.c.bf16 %v695_v23, %v694_v22  ;;  %v759_v33 = vld [vmem:[#allocation2 + $0x30] sm:$0xff]  ;;  %s2315_s28 = smov (!%p1998_p11, %s2313_s28), 15 }
  0x23   : > { %v757_v27 = vld [vmem:[#allocation2 + $0x18] sm:$0xff]  ;;  %v758_v29 = vld [vmem:[#allocation2 + $0x20] sm:$0xff]  ;;  %661 = vrot.lane.b32.xlu1 %v1981_v24, %s1786_s27  ;;  %v1992_v30 = vpack.c.bf16 %v638_v26, %v637_v25  ;;  %v1735_v41 = vld [vmem:[%s479_s26 + $0x8] sm:%s1975_s15]  ;;  %s1788_s15 = smov 12   ;;  %s1615_s17 = sshll.u32 %s2315_s28, 1 }
  0x24   : > { %v773_v31 = vpack.c.bf16 %v758_v29, %v757_v27  ;;  %v700_v32 = vld [vmem:[#allocation2 + $0x62] sm:$0xff]  ;;  %v760_v34 = vld [vmem:[#allocation2 + $0x38] sm:$0xff]  ;;  %v767_v42 = vld [vmem:[#allocation2 + $0x90] sm:$0xff]  ;;  %591 = vst.msk [vmem:[#allocation2 + $0x9] sm:$0xff] %vm557_vm1, %v1735_v41  ;;  %s494_s18 = sadd.s32 %s1615_s17, %s1910_s16  ;;  %s1789_s16 = smov 16  }
  0x25   : > { %v1996_v36 = vpack.c.bf16 %v760_v34, %v759_v33  ;;  %v765_v37 = vld [vmem:[#allocation2 + $0x78] sm:$0xff]  ;;  %v766_v38 = vld [vmem:[#allocation2 + $0x80] sm:$0xff]  ;;  %v2017_v44 = vpack.c.bf16 %v701_v35, %v700_v32  ;;  %v955_v48 = vld [vmem:[#allocation2 + $0x48] sm:$0xff]  ;;  %s1617_s20 = sshll.u32 %s494_s18, 3  ;;  %s1790_s28 = smov 20  }
  0x26   : > { %v2002_v39 = vpack.c.bf16 %v766_v38, %v765_v37  ;;  %620 = vst.msk [vmem:[#allocation3 + $0x8] sm:$0xff] %vm557_vm1, %v773_v31  ;;  %726 = vrot.lane.b32.xlu0 %v1988_v28, %s1787_s14  ;;  %v768_v43 = vld [vmem:[#allocation2 + $0x98] sm:$0xff]  ;;  %v703_v47 = vld [vmem:[#allocation2 + $0x82] sm:$0xff]  ;;  %v956_v49 = vld [vmem:[#allocation2 + $0x50] sm:$0xff]  ;;  %s496_s26 = scalar_lea.vmem %s2289_s2, %s1617_s20  ;;  %s1792_s18 = smov 28  }
  0x27   : > { %621 = vst.msk [vmem:[#allocation3 + $0x10] sm:$0xff] %vm557_vm1, %v1996_v36  ;;  %669 = vrot.lane.b32.xlu1 %v1992_v30, %s1786_s27  ;;  %v2019_v45 = vpack.c.bf16 %v768_v43, %v767_v42  ;;  %v702_v46 = vld [vmem:[#allocation2 + $0x7a] sm:$0xff]  ;;  %v963_v50 = vld [vmem:[#allocation2 + $0xa8] sm:$0xff]  ;;  %v2030_v51 = vpack.c.bf16 %v956_v49, %v955_v48  ;;  %v964_v52 = vld [vmem:[#allocation2 + $0xb0] sm:$0xff] }
  0x28   : > { %624 = vst.msk [vmem:[#allocation3 + $0x28] sm:$0xff] %vm557_vm1, %v2002_v39  ;;  %v2034_v53 = vpack.c.bf16 %v703_v47, %v702_v46  ;;  %v2036_v54 = vpack.c.bf16 %v964_v52, %v963_v50  ;;  %v763_v55 = vld [vmem:[#allocation2 + $0x60] sm:$0xff]  ;;  %v764_v56 = vld [vmem:[#allocation2 + $0x68] sm:$0xff]  ;;  %v824_v5 = vld [vmem:[#allocation2 + $0x31] sm:$0xff] }
  0x29   : > { %625 = vst.msk [vmem:[#allocation3 + $0x30] sm:$0xff] %vm557_vm1, %v2019_v45  ;;  %622 = vst.msk [vmem:[#allocation3 + $0x18] sm:$0xff] %vm557_vm1, %v2030_v51  ;;  %v627_v57 = vld [vmem:[#allocation2 + $0x1] sm:$0xff]  ;;  %v2050_v59 = vpack.c.bf16 %v764_v56, %v763_v55  ;;  %v825_v6 = vld [vmem:[#allocation2 + $0x39] sm:$0xff] }
  0x2a   : > { %789 = vrot.lane.b32.xlu0 %v773_v31, %s1788_s15  ;;  %626 = vst.msk [vmem:[#allocation3 + $0x38] sm:$0xff] %vm557_vm1, %v2036_v54  ;;  %v1738_v60 = vld [vmem:[%s496_s26] sm:%s1737_s10]  ;;  %v832_v7 = vld [vmem:[#allocation2 + $0x91] sm:$0xff]  ;;  %v839_v9 = vpack.c.bf16 %v825_v6, %v824_v5  ;;  %v1020_v17 = vld [vmem:[#allocation2 + $0x49] sm:$0xff] }
  0x2b   : > { %732 = vrot.lane.b32.xlu1 %v2017_v44, %s1787_s14  ;;  %v628_v58 = vld [vmem:[#allocation2 + $0x9] sm:$0xff]  ;;  %623 = vst.msk [vmem:[#allocation3 + $0x20] sm:$0xff] %vm557_vm1, %v2050_v59  ;;  %v595_v62 = vld [vmem:[#allocation2] sm:$0xff]  ;;  %593 = vst.msk [vmem:[#allocation2 + $0xd9] sm:$0xff] %vm557_vm1, %v1738_v60 }
  0x2c   : > { %v1741_v61 = vld [vmem:[%s496_s26 + $0x8] sm:%s1737_s10]  ;;  %v643_v63 = vpack.c.bf16 %v628_v58, %v627_v57  ;;  %v833_v8 = vld [vmem:[#allocation2 + $0x99] sm:$0xff]  ;;  %v1021_v18 = vld [vmem:[#allocation2 + $0x51] sm:$0xff]  ;;  %s1793_s10 = smov 32  }
  0x2d   : > { %594 = vst.msk [vmem:[#allocation2 + $0xe1] sm:$0xff] %vm557_vm1, %v1741_v61  ;;  %v596_v0 = vld [vmem:[#allocation2 + $0x8] sm:$0xff]  ;;  %v843_v10 = vpack.c.bf16 %v833_v8, %v832_v7  ;;  %v889_v11 = vld [vmem:[#allocation2 + $0x32] sm:$0xff]  ;;  %v890_v12 = vld [vmem:[#allocation2 + $0x3a] sm:$0xff]  ;;  %v1035_v23 = vpack.c.bf16 %v1021_v18, %v1020_v17 }
  0x2e   : > { %791 = vrot.lane.b32.xlu0 %v1996_v36, %s1788_s15  ;;  %v692_v1 = vld [vmem:[#allocation2 + $0x2] sm:$0xff]  ;;  %v693_v2 = vld [vmem:[#allocation2 + $0xa] sm:$0xff]  ;;  %v611_v3 = vpack.c.bf16 %v596_v0, %v595_v62  ;;  %v897_v13 = vld [vmem:[#allocation2 + $0x92] sm:$0xff]  ;;  %v904_v15 = vpack.c.bf16 %v890_v12, %v889_v11 }
  0x2f   : > { %734 = vrot.lane.b32.xlu1 %v2034_v53, %s1787_s14  ;;  %v708_v4 = vpack.c.bf16 %v693_v2, %v692_v1  ;;  %v898_v14 = vld [vmem:[#allocation2 + $0x9a] sm:$0xff]  ;;  %v1028_v19 = vld [vmem:[#allocation2 + $0xa9] sm:$0xff]  ;;  %v1029_v21 = vld [vmem:[#allocation2 + $0xb1] sm:$0xff] }
  0x30   : > { %619 = vst.msk [vmem:[#allocation3] sm:$0xff] %vm557_vm1, %v611_v3  ;;  %v908_v16 = vpack.c.bf16 %v898_v14, %v897_v13  ;;  %v1742_v22 = vld [vmem:[%s2290_s3] sm:$0xff]   ;;  %v1743_v25 = vld [vmem:[%s2290_s3 + $0x8] sm:$0xff]   ;;  %v1744_v26 = vld [vmem:[%s2290_s3 + $0x10] ss:$0 sps:$4 sm:$0x33]  }
  0x31   : > { %1650 = vmatprep.subr.bf16.mxu0 %v1742_v22  ;;  %1672 = vmatprep.subr.bf16.mxu1 %v1742_v22  ;;  %v1210_v27 = vsel %vm1208_vm2, %v1744_v26, 0  ;;  %v1086_v29 = vld [vmem:[#allocation2 + $0x52] sm:$0xff]  ;;  %v1093_v31 = vld [vmem:[#allocation2 + $0xaa] sm:$0xff]  ;;  %v771_v35 = vld [vmem:[#allocation2 + $0xc0] sm:$0xff] }
  0x32   : > { %854 = vrot.lane.b32.xlu0 %v1981_v24, %s1789_s16  ;;  %v1039_v24 = vpack.c.bf16 %v1029_v21, %v1028_v19  ;;  %1651 = vmatpush3.bf16.msra.mxu0 %v1742_v22  ;;  %v1094_v32 = vld [vmem:[#allocation2 + $0xb2] sm:$0xff]  ;;  %v836_v38 = vld [vmem:[#allocation2 + $0xc1] sm:$0xff]  ;;  %v837_v40 = vld [vmem:[#allocation2 + $0xc9] sm:$0xff] }
  0x33   : > { %797 = vrot.lane.b32.xlu1 %v2002_v39, %s1788_s15  ;;  %1675 = vmatpush3.bf16.msra.mxu1 %v1742_v22  ;;  %v1104_v34 = vpack.c.bf16 %v1094_v32, %v1093_v31  ;;  %v845_v41 = vpack.c.bf16 %v837_v40, %v836_v38  ;;  %v901_v42 = vld [vmem:[#allocation2 + $0xc2] sm:$0xff]  ;;  %v902_v43 = vld [vmem:[#allocation2 + $0xca] sm:$0xff]  ;;  %v967_v46 = vld [vmem:[#allocation2 + $0xd8] sm:$0xff] }
  0x34   : > { %1652 = vmatprep.subr.bf16.mxu0 %v1743_v25  ;;  %1673 = vmatprep.subr.bf16.mxu1 %v1743_v25  ;;  %v968_v47 = vld [vmem:[#allocation2 + $0xe0] sm:$0xff] }
  0x35   : > { %v976_v48 = vpack.c.bf16 %v968_v47, %v967_v46  ;;  %v1032_v49 = vld [vmem:[#allocation2 + $0xd9] sm:$0xff]  ;;  %v1033_v50 = vld [vmem:[#allocation2 + $0xe1] sm:$0xff] }
  0x36   : > { %659 = vrot.lane.b32.xlu0 %v643_v63, %s1786_s27  ;;  %1653 = vmatpush3.bf16.msra.mxu0 %v1743_v25  ;;  %v1097_v55 = vld [vmem:[#allocation2 + $0xda] sm:$0xff]  ;;  %v1098_v56 = vld [vmem:[#allocation2 + $0xe2] sm:$0xff] }
  0x37   : > { %799 = vrot.lane.b32.xlu1 %v2019_v45, %s1788_s15  ;;  %1676 = vmatpush3.bf16.msra.mxu1 %v1743_v25  ;;  %v1106_v57 = vpack.c.bf16 %v1098_v56, %v1097_v55 }
  0x38   : > { %1678 = vmatprep.subr.msk.bf16.mxu0 %vm1208_vm2, %v1744_v26  ;;  %1679 = vmatprep.subr.msk.bf16.mxu1 %vm1208_vm2, %v1744_v26 }
  0x3a   : > { %724 = vrot.lane.b32.xlu0 %v708_v4, %s1787_s14  ;;  %1655 = vmatpush3.bf16.msra.mxu0 %v1210_v27 }
  0x3b   : > { %862 = vrot.lane.b32.xlu1 %v1992_v30, %s1789_s16  ;;  %1677 = vmatpush3.bf16.msra.mxu1 %v1210_v27 }
  0x3e   : > { %856 = vrot.lane.b32.xlu0 %v839_v9, %s1789_s16 }
  0x3f   : > { %864 = vrot.lane.b32.xlu1 %v843_v10, %s1789_s16 }
  0x42   : > { %919 = vrot.lane.b32.xlu0 %v1988_v28, %s1790_s28  ;;  %v1085_v28 = vld [vmem:[#allocation2 + $0x4a] sm:$0xff] }
  0x43   : > { %927 = vrot.lane.b32.xlu1 %v2034_v53, %s1790_s28  ;;  %v1100_v33 = vpack.c.bf16 %v1086_v29, %v1085_v28 }
  0x46   : > { %921 = vrot.lane.b32.xlu0 %v904_v15, %s1790_s28 }
  0x47   : > { %929 = vrot.lane.b32.xlu1 %v908_v16, %s1790_s28 }
  0x4a   : > { %985 = vrot.lane.b32.xlu0 %v1996_v36, %s1791_s29  ;;  %v772_v36 = vld [vmem:[#allocation2 + $0xc8] sm:$0xff] }
  0x4b   : > { %993 = vrot.lane.b32.xlu1 %v2019_v45, %s1791_s29  ;;  %v780_v37 = vpack.c.bf16 %v772_v36, %v771_v35  ;;  %v910_v45 = vpack.c.bf16 %v902_v43, %v901_v42 }
  0x4e   : > { %987 = vrot.lane.b32.xlu0 %v2030_v51, %s1791_s29 }
  0x4f   : > { %995 = vrot.lane.b32.xlu1 %v2036_v54, %s1791_s29 }
  0x52   : > { %1050 = vrot.lane.b32.xlu0 %v839_v9, %s1792_s18 }
  0x53   : > { %1058 = vrot.lane.b32.xlu1 %v843_v10, %s1792_s18 }
  0x56   : > { %1052 = vrot.lane.b32.xlu0 %v1035_v23, %s1792_s18 }
  0x57   : > { %1060 = vrot.lane.b32.xlu1 %v1039_v24, %s1792_s18 }
  0x5a   : > { %1115 = vrot.lane.b32.xlu0 %v904_v15, %s1793_s10 }
  0x5b   : > { %1123 = vrot.lane.b32.xlu1 %v908_v16, %s1793_s10 }
  0x5e   : > { %663 = vrot.lane.b32.xlu0 %v839_v9, %s1786_s27 }
  0x5f   : > { %671 = vrot.lane.b32.xlu1 %v843_v10, %s1786_s27 }
  0x62   : > { %1117 = vrot.lane.b32.xlu0 %v1100_v33, %s1793_s10 }
  0x63   : > { %1125 = vrot.lane.b32.xlu1 %v1104_v34, %s1793_s10 }
  0x66   : > { %665 = vrot.lane.b32.xlu0 %v1035_v23, %s1786_s27 }
  0x67   : > { %673 = vrot.lane.b32.xlu1 %v1039_v24, %s1786_s27 }
  0x6a   : > { %728 = vrot.lane.b32.xlu0 %v904_v15, %s1787_s14 }
  0x6b   : > { %736 = vrot.lane.b32.xlu1 %v908_v16, %s1787_s14 }
  0x6e   : > { %730 = vrot.lane.b32.xlu0 %v1100_v33, %s1787_s14 }
  0x6f   : > { %738 = vrot.lane.b32.xlu1 %v1104_v34, %s1787_s14 }
  0x72   : > { %793 = vrot.lane.b32.xlu0 %v2030_v51, %s1788_s15  ;;  %v1041_v51 = vpack.c.bf16 %v1033_v50, %v1032_v49 }
  0x73   : > { %801 = vrot.lane.b32.xlu1 %v2036_v54, %s1788_s15 }
  0x76   : > { %795 = vrot.lane.b32.xlu0 %v2050_v59, %s1788_s15 }
  0x77   : > { %803 = vrot.lane.b32.xlu1 %v780_v37, %s1788_s15 }
  0x7a   : > { %858 = vrot.lane.b32.xlu0 %v1035_v23, %s1789_s16 }
  0x7b   : > { %866 = vrot.lane.b32.xlu1 %v1039_v24, %s1789_s16 }
  0x7e   : > { %860 = vrot.lane.b32.xlu0 %v1979_v20, %s1789_s16 }
  0x7f   : > { %868 = vrot.lane.b32.xlu1 %v845_v41, %s1789_s16 }
  0x82   : > { %923 = vrot.lane.b32.xlu0 %v1100_v33, %s1790_s28 }
  0x83   : > { %931 = vrot.lane.b32.xlu1 %v1104_v34, %s1790_s28 }
  0x86   : > { %925 = vrot.lane.b32.xlu0 %v2017_v44, %s1790_s28 }
  0x87   : > { %933 = vrot.lane.b32.xlu1 %v910_v45, %s1790_s28  ;;  %s2223_s28 = scalar_lea.vmem %s2294_s7, %s1600_s25 }
  0x8a   : > { %989 = vrot.lane.b32.xlu0 %v2050_v59, %s1791_s29 }
  0x8b   : > { %997 = vrot.lane.b32.xlu1 %v780_v37, %s1791_s29 }
  0x8e   : > { %991 = vrot.lane.b32.xlu0 %v2002_v39, %s1791_s29 }
  0x8f   : > { %999 = vrot.lane.b32.xlu1 %v976_v48, %s1791_s29 }
  0x92   : > { %1054 = vrot.lane.b32.xlu0 %v1979_v20, %s1792_s18 }
  0x93   : > { %1062 = vrot.lane.b32.xlu1 %v845_v41, %s1792_s18 }
  0x94   : > { %v668_v52 = vpop.permute.xlu0 %667 }
  0x95   : > { %688 = vst.msk [vmem:[#allocation3 + $0x20] sm:$0xff] %vm683_vm3, %v668_v52  ;;  %v662_v54 = vpop.permute.xlu1 %661 }
  0x96   : > { %685 = vst.msk [vmem:[#allocation3 + $0x8] sm:$0xff] %vm683_vm3, %v662_v54  ;;  %1056 = vrot.lane.b32.xlu0 %v1992_v30, %s1792_s18 }
  0x97   : > { %1064 = vrot.lane.b32.xlu1 %v1041_v51, %s1792_s18 }
  0x98   : > { %v727_v39 = vpop.permute.xlu0 %726 }
  0x99   : > { %750 = vst.msk [vmem:[#allocation3 + $0x8] sm:$0xff] %vm748_vm4, %v727_v39  ;;  %v670_v20 = vpop.permute.xlu1 %669 }
  0x9a   : > { %689 = vst.msk [vmem:[#allocation3 + $0x28] sm:$0xff] %vm683_vm3, %v670_v20  ;;  %1119 = vrot.lane.b32.xlu0 %v2017_v44, %s1793_s10 }
  0x9b   : > { %1127 = vrot.lane.b32.xlu1 %v910_v45, %s1793_s10 }
  0x9c   : > { %v790_v58 = vpop.permute.xlu0 %789 }
  0x9d   : > { %v733_v59 = vpop.permute.xlu1 %732 }
  0x9e   : > { %753 = vst.msk [vmem:[#allocation3 + $0x20] sm:$0xff] %vm748_vm4, %v733_v59  ;;  %1121 = vrot.lane.b32.xlu0 %v2034_v53, %s1793_s10 }
  0x9f   : > { %1129 = vrot.lane.b32.xlu1 %v1106_v57, %s1793_s10 }
  0xa0   : > { %v792_v30 = vpop.permute.xlu0 %791 }
  0xa1   : > { %815 = vst.msk [vmem:[#allocation3 + $0x8] sm:$0xff] %vm813_vm5, %v792_v30  ;;  %v735_v60 = vpop.permute.xlu1 %734 }
  0xa2   : > { %754 = vst.msk [vmem:[#allocation3 + $0x28] sm:$0xff] %vm748_vm4, %v735_v60 }
  0xa4   : > { %v855_v44 = vpop.permute.xlu0 %854 }
  0xa5   : > { %v798_v61 = vpop.permute.xlu1 %797 }
  0xa6   : > { %818 = vst.msk [vmem:[#allocation3 + $0x20] sm:$0xff] %vm813_vm5, %v798_v61 }
  0xa8   : > { %v660_v62 = vpop.permute.xlu0 %659 }
  0xa9   : > { %684 = vst.msk [vmem:[#allocation3] sm:$0xff] %vm683_vm3, %v660_v62  ;;  %v800_v63 = vpop.permute.xlu1 %799 }
  0xaa   : > { %819 = vst.msk [vmem:[#allocation3 + $0x28] sm:$0xff] %vm813_vm5, %v800_v63 }
  0xac   : > { %v725_v53 = vpop.permute.xlu0 %724 }
  0xad   : > { %749 = vst.msk [vmem:[#allocation3] sm:$0xff] %vm748_vm4, %v725_v53  ;;  %v863_v0 = vpop.permute.xlu1 %862 }
  0xae   : > { %814 = vst.msk [vmem:[#allocation3] sm:$0xff] %vm813_vm5, %v790_v58 }
  0xaf   : > { %883 = vst.msk [vmem:[#allocation3 + $0x20] sm:$0xff] %vm878_vm6, %v863_v0  ;;  %879 = vst.msk [vmem:[#allocation3] sm:$0xff] %vm878_vm6, %v855_v44  ;;  %v1622_v44 = vld [vmem:[%s2291_s4] ss:$0 sm:$0xff] }
  0xb0   : > { %v857_v1 = vpop.permute.xlu0 %856 }
  0xb1   : > { %880 = vst.msk [vmem:[#allocation3 + $0x8] sm:$0xff] %vm878_vm6, %v857_v1  ;;  %v865_v2 = vpop.permute.xlu1 %864 }
  0xb2   : > { %884 = vst.msk [vmem:[#allocation3 + $0x28] sm:$0xff] %vm878_vm6, %v865_v2 }
  0xb4   : > { %v920_v3 = vpop.permute.xlu0 %919 }
  0xb5   : > { %944 = vst.msk [vmem:[#allocation3] sm:$0xff] %vm943_vm7, %v920_v3  ;;  %v928_v4 = vpop.permute.xlu1 %927 }
  0xb6   : > { %948 = vst.msk [vmem:[#allocation3 + $0x20] sm:$0xff] %vm943_vm7, %v928_v4 }
  0xb8   : > { %v922_v5 = vpop.permute.xlu0 %921 }
  0xb9   : > { %945 = vst.msk [vmem:[#allocation3 + $0x8] sm:$0xff] %vm943_vm7, %v922_v5  ;;  %v930_v6 = vpop.permute.xlu1 %929 }
  0xba   : > { %949 = vst.msk [vmem:[#allocation3 + $0x28] sm:$0xff] %vm943_vm7, %v930_v6 }
  0xbc   : > { %v986_v7 = vpop.permute.xlu0 %985 }
  0xbd   : > { %1010 = vst.msk [vmem:[#allocation3] sm:$0xff] %vm1009_vm8, %v986_v7  ;;  %v994_v8 = vpop.permute.xlu1 %993 }
  0xbe   : > { %1014 = vst.msk [vmem:[#allocation3 + $0x20] sm:$0xff] %vm1009_vm8, %v994_v8 }
  0xc0   : > { %v988_v9 = vpop.permute.xlu0 %987 }
  0xc1   : > { %1011 = vst.msk [vmem:[#allocation3 + $0x8] sm:$0xff] %vm1009_vm8, %v988_v9  ;;  %v996_v10 = vpop.permute.xlu1 %995 }
  0xc2   : > { %1015 = vst.msk [vmem:[#allocation3 + $0x28] sm:$0xff] %vm1009_vm8, %v996_v10 }
  0xc4   : > { %v1051_v11 = vpop.permute.xlu0 %1050 }
  0xc5   : > { %1075 = vst.msk [vmem:[#allocation3] sm:$0xff] %vm1074_vm9, %v1051_v11  ;;  %v1059_v12 = vpop.permute.xlu1 %1058 }
  0xc6   : > { %1079 = vst.msk [vmem:[#allocation3 + $0x20] sm:$0xff] %vm1074_vm9, %v1059_v12 }
  0xc8   : > { %v1053_v13 = vpop.permute.xlu0 %1052 }
  0xc9   : > { %1076 = vst.msk [vmem:[#allocation3 + $0x8] sm:$0xff] %vm1074_vm9, %v1053_v13  ;;  %v1061_v14 = vpop.permute.xlu1 %1060 }
  0xca   : > { %1080 = vst.msk [vmem:[#allocation3 + $0x28] sm:$0xff] %vm1074_vm9, %v1061_v14 }
  0xcc   : > { %v1116_v15 = vpop.permute.xlu0 %1115 }
  0xcd   : > { %1140 = vst.msk [vmem:[#allocation3] sm:$0xff] %vm1139_vm10, %v1116_v15  ;;  %v1124_v16 = vpop.permute.xlu1 %1123 }
  0xce   : > { %1144 = vst.msk [vmem:[#allocation3 + $0x20] sm:$0xff] %vm1139_vm10, %v1124_v16 }
  0xd0   : > { %v664_v17 = vpop.permute.xlu0 %663 }
  0xd1   : > { %686 = vst.msk [vmem:[#allocation3 + $0x10] sm:$0xff] %vm683_vm3, %v664_v17  ;;  %v672_v18 = vpop.permute.xlu1 %671 }
  0xd2   : > { %690 = vst.msk [vmem:[#allocation3 + $0x30] sm:$0xff] %vm683_vm3, %v672_v18 }
  0xd4   : > { %v1118_v19 = vpop.permute.xlu0 %1117  ;;  %v1148_v21 = vld [vmem:[#allocation3] sm:$0xff] }
  0xd5   : > { %1141 = vst.msk [vmem:[#allocation3 + $0x8] sm:$0xff] %vm1139_vm10, %v1118_v19  ;;  %v1126_v22 = vpop.permute.xlu1 %1125  ;;  %1656 = vmatprep.mubr.msk.bf16.mxu0 %vm1183_vm11, %v1148_v21  ;;  %v1152_v23 = vld [vmem:[#allocation3 + $0x20] sm:$0xff] }
  0xd6   : > { %1145 = vst.msk [vmem:[#allocation3 + $0x28] sm:$0xff] %vm1139_vm10, %v1126_v22  ;;  %1664 = vmatprep.mubr.msk.bf16.mxu1 %vm1183_vm11, %v1152_v23 }
  0xd8   : > { %v666_v24 = vpop.permute.xlu0 %665 }
  0xd9   : > { %687 = vst.msk [vmem:[#allocation3 + $0x18] sm:$0xff] %vm683_vm3, %v666_v24  ;;  %v674_v25 = vpop.permute.xlu1 %673 }
  0xda   : > { %691 = vst.msk [vmem:[#allocation3 + $0x38] sm:$0xff] %vm683_vm3, %v674_v25 }
  0xdc   : > { %v729_v26 = vpop.permute.xlu0 %728  ;;  %v1149_v27 = vld [vmem:[#allocation3 + $0x8] sm:$0xff] }
  0xdd   : > { %751 = vst.msk [vmem:[#allocation3 + $0x10] sm:$0xff] %vm748_vm4, %v729_v26  ;;  %v737_v28 = vpop.permute.xlu1 %736  ;;  %1657 = vmatmul.mubr.msk.bf16.vlgmr.msra.gmra.mrb[0].mxu0 %vm1183_vm11, %v1149_v27  ;;  %v1153_v29 = vld [vmem:[#allocation3 + $0x28] sm:$0xff] }
  0xde   : > { %755 = vst.msk [vmem:[#allocation3 + $0x30] sm:$0xff] %vm748_vm4, %v737_v28  ;;  %1665 = vmatmul.mubr.msk.bf16.vlgmr.msra.gmra.mrb[0].mxu1 %vm1183_vm11, %v1153_v29  ;;  %v1794_v29 = vmov (!%p1634_p12), 0.0  }
  0xdf   : > { %1329 = vst [vmem:[%s1915_s19] sm:$0x1] (!%p1634_p12), %v1794_v29  ;;  %1330 = vst [vmem:[%s1920_s23] sm:$0x1] (!%p1634_p12), %v1794_v29 }
  0xe0   : > { %v731_v31 = vpop.permute.xlu0 %730 }
  0xe1   : > { %752 = vst.msk [vmem:[#allocation3 + $0x18] sm:$0xff] %vm748_vm4, %v731_v31  ;;  %v739_v32 = vpop.permute.xlu1 %738 }
  0xe2   : > { %756 = vst.msk [vmem:[#allocation3 + $0x38] sm:$0xff] %vm748_vm4, %v739_v32 }
  0xe4   : > { %v794_v33 = vpop.permute.xlu0 %793 }
  0xe5   : > { %816 = vst.msk [vmem:[#allocation3 + $0x10] sm:$0xff] %vm813_vm5, %v794_v33  ;;  %v802_v34 = vpop.permute.xlu1 %801 }
  0xe6   : > { %820 = vst.msk [vmem:[#allocation3 + $0x30] sm:$0xff] %vm813_vm5, %v802_v34 }
  0xe8   : > { %v796_v35 = vpop.permute.xlu0 %795 }
  0xe9   : > { %817 = vst.msk [vmem:[#allocation3 + $0x18] sm:$0xff] %vm813_vm5, %v796_v35  ;;  %v804_v36 = vpop.permute.xlu1 %803 }
  0xea   : > { %821 = vst.msk [vmem:[#allocation3 + $0x38] sm:$0xff] %vm813_vm5, %v804_v36 }
  0xec   : > { %v859_v37 = vpop.permute.xlu0 %858 }
  0xed   : > { %881 = vst.msk [vmem:[#allocation3 + $0x10] sm:$0xff] %vm878_vm6, %v859_v37  ;;  %v867_v38 = vpop.permute.xlu1 %866 }
  0xee   : > { %885 = vst.msk [vmem:[#allocation3 + $0x30] sm:$0xff] %vm878_vm6, %v867_v38 }
  0xf0   : > { %v861_v40 = vpop.permute.xlu0 %860 }
  0xf1   : > { %882 = vst.msk [vmem:[#allocation3 + $0x18] sm:$0xff] %vm878_vm6, %v861_v40  ;;  %v869_v41 = vpop.permute.xlu1 %868 }
  0xf2   : > { %886 = vst.msk [vmem:[#allocation3 + $0x38] sm:$0xff] %vm878_vm6, %v869_v41 }
  0xf4   : > { %v924_v42 = vpop.permute.xlu0 %923 }
  0xf5   : > { %946 = vst.msk [vmem:[#allocation3 + $0x10] sm:$0xff] %vm943_vm7, %v924_v42  ;;  %v932_v43 = vpop.permute.xlu1 %931 }
  0xf6   : > { %950 = vst.msk [vmem:[#allocation3 + $0x30] sm:$0xff] %vm943_vm7, %v932_v43 }
  0xf8   : > { %v926_v45 = vpop.permute.xlu0 %925 }
  0xf9   : > { %947 = vst.msk [vmem:[#allocation3 + $0x18] sm:$0xff] %vm943_vm7, %v926_v45  ;;  %v934_v46 = vpop.permute.xlu1 %933 }
  0xfa   : > { %951 = vst.msk [vmem:[#allocation3 + $0x38] sm:$0xff] %vm943_vm7, %v934_v46 }
  0xfc   : > { %v990_v47 = vpop.permute.xlu0 %989 }
  0xfd   : > { %1012 = vst.msk [vmem:[#allocation3 + $0x10] sm:$0xff] %vm1009_vm8, %v990_v47  ;;  %v998_v48 = vpop.permute.xlu1 %997 }
  0xfe   : > { %1016 = vst.msk [vmem:[#allocation3 + $0x30] sm:$0xff] %vm1009_vm8, %v998_v48 }
 0x100   : > { %v992_v49 = vpop.permute.xlu0 %991 }
 0x101   : > { %1013 = vst.msk [vmem:[#allocation3 + $0x18] sm:$0xff] %vm1009_vm8, %v992_v49  ;;  %v1000_v50 = vpop.permute.xlu1 %999 }
 0x102   : > { %1017 = vst.msk [vmem:[#allocation3 + $0x38] sm:$0xff] %vm1009_vm8, %v1000_v50 }
 0x104   : > { %v1055_v51 = vpop.permute.xlu0 %1054 }
 0x105   : > { %1077 = vst.msk [vmem:[#allocation3 + $0x10] sm:$0xff] %vm1074_vm9, %v1055_v51  ;;  %v1063_v52 = vpop.permute.xlu1 %1062 }
 0x106   : > { %1081 = vst.msk [vmem:[#allocation3 + $0x30] sm:$0xff] %vm1074_vm9, %v1063_v52 }
 0x108   : > { %v1057_v54 = vpop.permute.xlu0 %1056 }
 0x109   : > { %1078 = vst.msk [vmem:[#allocation3 + $0x18] sm:$0xff] %vm1074_vm9, %v1057_v54  ;;  %v1065_v39 = vpop.permute.xlu1 %1064 }
 0x10a   : > { %1082 = vst.msk [vmem:[#allocation3 + $0x38] sm:$0xff] %vm1074_vm9, %v1065_v39 }
 0x10c   : > { %v1120_v55 = vpop.permute.xlu0 %1119 }
 0x10d   : > { %1142 = vst.msk [vmem:[#allocation3 + $0x10] sm:$0xff] %vm1139_vm10, %v1120_v55  ;;  %v1128_v56 = vpop.permute.xlu1 %1127 }
 0x10e   : > { %1146 = vst.msk [vmem:[#allocation3 + $0x30] sm:$0xff] %vm1139_vm10, %v1128_v56 }
 0x110   : > { %v1122_v20 = vpop.permute.xlu0 %1121 }
 0x111   : > { %1143 = vst.msk [vmem:[#allocation3 + $0x18] sm:$0xff] %vm1139_vm10, %v1122_v20  ;;  %v1130_v57 = vpop.permute.xlu1 %1129 }
 0x112   : > { %1147 = vst.msk [vmem:[#allocation3 + $0x38] sm:$0xff] %vm1139_vm10, %v1130_v57 }
 0x114   : > { %v1150_v58 = vld [vmem:[#allocation3 + $0x10] sm:$0xff] }
 0x115   : > { %1660 = vmatprep.mubr.msk.bf16.mxu0 %vm1183_vm11, %v1150_v58  ;;  %v1154_v59 = vld [vmem:[#allocation3 + $0x30] sm:$0xff] }
 0x116   : > { %1668 = vmatprep.mubr.msk.bf16.mxu1 %vm1183_vm11, %v1154_v59 }
 0x118   : > { %v1151_v30 = vld [vmem:[#allocation3 + $0x18] sm:$0xff] }
 0x119   : > { %1661 = vmatmul.mubr.msk.bf16.gmra.mrb[4].mxu0 %vm1183_vm11, %v1151_v30  ;;  %v1155_v60 = vld [vmem:[#allocation3 + $0x38] sm:$0xff] }
 0x11a   : > { %1669 = vmatmul.mubr.msk.bf16.gmra.mrb[4].mxu1 %vm1183_vm11, %v1155_v60 }
 0x1b0   : > { %v1658_v61 = vpop.f32.mrb[0].mxu0 }
 0x1b1   : > { %v1255_v62 = vadd.f32 %v1658_v61, %v1622_v44  ;;  %v1666_v63 = vpop.f32.mrb[0].mxu1  ;;  %v1246_v53 = vpop.f32.mrb[1].mxu0 }
 0x1b2   : > { %v2225_v0 = vadd.f32 %v1666_v63, %v1622_v44  ;;  %v1247_v1 = vadd.f32 %v1622_v44, %v1246_v53  ;;  %v1278_v2 = vpop.f32.mrb[1].mxu1  ;;  %v1659_v3 = vpop.f32.mrb[2].mxu0 }
 0x1b3   : > { %1311 = vst [vmem:[%s2223_s28 + $0x10] sm:$0xff] %v1255_v62  ;;  %v2228_v4 = vadd.f32 %v1622_v44, %v1278_v2  ;;  %v1258_v5 = vadd.f32 %v1659_v3, %v1622_v44  ;;  %v1667_v6 = vpop.f32.mrb[2].mxu1  ;;  %v1249_v7 = vpop.f32.mrb[3].mxu0 }
 0x1b4   : > { %1319 = vst [vmem:[%s2223_s28 + $0x50] sm:$0xff] %v2225_v0  ;;  %1309 = vst [vmem:[%s2223_s28] sm:$0xff] %v1247_v1  ;;  %v2233_v8 = vadd.f32 %v1667_v6, %v1622_v44  ;;  %v1250_v9 = vadd.f32 %v1622_v44, %v1249_v7  ;;  %v1281_v10 = vpop.f32.mrb[3].mxu1 }
 0x1b5   : > { %1317 = vst [vmem:[%s2223_s28 + $0x40] sm:$0xff] %v2228_v4  ;;  %1312 = vst [vmem:[%s2223_s28 + $0x18] sm:$0xff] %v1258_v5  ;;  %v1282_v11 = vadd.f32 %v1622_v44, %v1281_v10 }
 0x1b6   : > { %1320 = vst [vmem:[%s2223_s28 + $0x58] sm:$0xff] %v2233_v8  ;;  %1310 = vst [vmem:[%s2223_s28 + $0x8] sm:$0xff] %v1250_v9 }
 0x1b7   : > { %1318 = vst [vmem:[%s2223_s28 + $0x48] sm:$0xff] %v1282_v11 }
 0x1ec   : > { %v1662_v12 = vpop.f32.mrb[4].mxu0 }
 0x1ed   : > { %v1271_v13 = vadd.f32 %v1662_v12, %v1622_v44  ;;  %v1670_v14 = vpop.f32.mrb[4].mxu1  ;;  %v1262_v15 = vpop.f32.mrb[5].mxu0  ;;  %1328 = sbr.rel (%p1634_p12) target bundleno = 500 (0x1f4), region = 52 }
 0x1ee   : > { %v2242_v16 = vadd.f32 %v1670_v14, %v1622_v44  ;;  %v1263_v17 = vadd.f32 %v1622_v44, %v1262_v15  ;;  %v1294_v18 = vpop.f32.mrb[5].mxu1  ;;  %v1663_v19 = vpop.f32.mrb[6].mxu0 }
 0x1ef   : > { %1315 = vst [vmem:[%s2223_s28 + $0x30] sm:$0xff] %v1271_v13  ;;  %v1295_v21 = vadd.f32 %v1622_v44, %v1294_v18  ;;  %v1274_v22 = vadd.f32 %v1663_v19, %v1622_v44  ;;  %v1671_v23 = vpop.f32.mrb[6].mxu1  ;;  %v1265_v24 = vpop.f32.mrb[7].mxu0 }
 0x1f0   : > { %1323 = vst [vmem:[%s2223_s28 + $0x70] sm:$0xff] %v2242_v16  ;;  %1313 = vst [vmem:[%s2223_s28 + $0x20] sm:$0xff] %v1263_v17  ;;  %v1306_v25 = vadd.f32 %v1671_v23, %v1622_v44  ;;  %v1266_v26 = vadd.f32 %v1622_v44, %v1265_v24  ;;  %v1297_v27 = vpop.f32.mrb[7].mxu1 }
 0x1f1   : > { %1321 = vst [vmem:[%s2223_s28 + $0x60] sm:$0xff] %v1295_v21  ;;  %1316 = vst [vmem:[%s2223_s28 + $0x38] sm:$0xff] %v1274_v22  ;;  %v1298_v28 = vadd.f32 %v1622_v44, %v1297_v27 }
 0x1f2   : > { %1324 = vst [vmem:[%s2223_s28 + $0x78] sm:$0xff] %v1306_v25  ;;  %1314 = vst [vmem:[%s2223_s28 + $0x28] sm:$0xff] %v1266_v26 }
 0x1f3   : > { %1322 = vst [vmem:[%s2223_s28 + $0x68] sm:$0xff] %v1298_v28 }
 0x1f4 PF: > { %v1332_v31 = vadd.f32 %v1250_v9, %v1247_v1  ;;  %v1356_v32 = vmul.f32 %v1247_v1, %v1247_v1  ;;  %v1357_v33 = vmul.f32 %v1250_v9, %v1250_v9  ;;  %v1358_v35 = vmul.f32 %v1255_v62, %v1255_v62 }
 0x1f5   : > { %v1359_v37 = vmul.f32 %v1258_v5, %v1258_v5  ;;  %v1360_v41 = vmul.f32 %v1263_v17, %v1263_v17  ;;  %v1361_v45 = vmul.f32 %v1266_v26, %v1266_v26  ;;  %v1362_v48 = vmul.f32 %v1271_v13, %v1271_v13 }
 0x1f6   : > { %v1333_v34 = vadd.f32 %v1332_v31, %v1255_v62  ;;  %v1372_v38 = vadd.f32 %v1357_v33, %v1356_v32  ;;  %v1363_v51 = vmul.f32 %v1274_v22, %v1274_v22  ;;  %v1364_v39 = vmul.f32 %v2228_v4, %v2228_v4 }
 0x1f7   : > { %v1365_v20 = vmul.f32 %v1282_v11, %v1282_v11  ;;  %v1366_v59 = vmul.f32 %v2225_v0, %v2225_v0  ;;  %v1367_v44 = vmul.f32 %v2233_v8, %v2233_v8  ;;  %v1368_v63 = vmul.f32 %v1295_v21, %v1295_v21 }
 0x1f8   : > { %v1334_v36 = vadd.f32 %v1333_v34, %v1258_v5  ;;  %v1373_v42 = vadd.f32 %v1372_v38, %v1358_v35  ;;  %v1369_v2 = vmul.f32 %v1298_v28, %v1298_v28  ;;  %v1370_v5 = vmul.f32 %v2242_v16, %v2242_v16 }
 0x1f9   : > { %v1371_v7 = vmul.f32 %v1306_v25, %v1306_v25 }
 0x1fa   : > { %v1335_v40 = vadd.f32 %v1334_v36, %v1263_v17  ;;  %v1374_v46 = vadd.f32 %v1373_v42, %v1359_v37 }
 0x1fc   : > { %v1336_v43 = vadd.f32 %v1335_v40, %v1266_v26  ;;  %v1375_v49 = vadd.f32 %v1374_v46, %v1360_v41 }
 0x1fe   : > { %v1337_v47 = vadd.f32 %v1336_v43, %v1271_v13  ;;  %v1376_v52 = vadd.f32 %v1375_v49, %v1361_v45 }
 0x200   : > { %v1338_v50 = vadd.f32 %v1337_v47, %v1274_v22  ;;  %v1377_v55 = vadd.f32 %v1376_v52, %v1362_v48 }
 0x202   : > { %v1339_v54 = vadd.f32 %v1338_v50, %v2228_v4  ;;  %v1378_v57 = vadd.f32 %v1377_v55, %v1363_v51 }
 0x204   : > { %v1340_v56 = vadd.f32 %v1339_v54, %v1282_v11  ;;  %v1379_v30 = vadd.f32 %v1378_v57, %v1364_v39 }
 0x206   : > { %v1341_v58 = vadd.f32 %v1340_v56, %v2225_v0  ;;  %v1380_v61 = vadd.f32 %v1379_v30, %v1365_v20 }
 0x208   : > { %v1342_v60 = vadd.f32 %v1341_v58, %v2233_v8  ;;  %v1381_v53 = vadd.f32 %v1380_v61, %v1366_v59 }
 0x20a   : > { %v1343_v62 = vadd.f32 %v1342_v60, %v1295_v21  ;;  %v1382_v3 = vadd.f32 %v1381_v53, %v1367_v44  ;;  %v1331_v21 = vld [vmem:[%s1915_s19] sm:$0x1] }
 0x20c   : > { %v1344_v1 = vadd.f32 %v1343_v62, %v1298_v28  ;;  %v1383_v0 = vadd.f32 %v1382_v3, %v1368_v63 }
 0x20e   : > { %v1345_v4 = vadd.f32 %v1344_v1, %v2242_v16  ;;  %v1384_v9 = vadd.f32 %v1383_v0, %v1369_v2 }
 0x210   : > { %v1346_v6 = vadd.f32 %v1345_v4, %v1306_v25  ;;  %v1385_v8 = vadd.f32 %v1384_v9, %v1370_v5  ;;  %v1355_v25 = vld [vmem:[%s1920_s23] sm:$0x1] }
 0x212   : > { %v1347_v10 = vrot.slane %v1346_v6, 4  ;;  %v1386_v12 = vadd.f32 %v1385_v8, %v1371_v7 }
 0x214   : > { %v1348_v11 = vadd.f32 %v1347_v10, %v1346_v6  ;;  %v1387_v14 = vrot.slane %v1386_v12, 4 }
 0x216   : > { %v1349_v13 = vrot.slane %v1348_v11, 2  ;;  %v1388_v17 = vadd.f32 %v1387_v14, %v1386_v12 }
 0x218   : > { %v1350_v15 = vadd.f32 %v1349_v13, %v1348_v11  ;;  %v1389_v19 = vrot.slane %v1388_v17, 2 }
 0x21a   : > { %v1351_v18 = vrot.slane %v1350_v15, 1  ;;  %v1390_v16 = vadd.f32 %v1389_v19, %v1388_v17 }
 0x21c   : > { %v1352_v22 = vadd.f32 %v1351_v18, %v1350_v15  ;;  %v1391_v24 = vrot.slane %v1390_v16, 1 }
 0x21e   : > { %v1353_v23 = vadd.f32 %v1352_v22, %v1331_v21  ;;  %v1392_v26 = vadd.f32 %v1391_v24, %v1390_v16 }
 0x220   : > { %1354 = vst [vmem:[%s1915_s19] sm:$0x1] %v1353_v23  ;;  %v1393_v27 = vadd.f32 %v1392_v26, %v1355_v25 }
 0x222   : > { %1394 = vst [vmem:[%s1920_s23] sm:$0x1] %v1393_v27 }
 0x223 PF: > { %s20_s5 = sadd.s32 1, %s1783_s5   ;;  %s2298_s30 = smov %s1775_s11 }
 0x224   : > { %p17_p13 = scmp.ge.s32.totalorder %s20_s5, 6   ;;  %s2299_s10 = smov %s1779_s12 }
 0x225   : > { %s2300_s11 = smov %s2303_s6  ;;  %s2301_s12 = smov %s2307_s13 }
 0x226   :  { %19 = sbr.rel (!%p17_p13) target bundleno = 3 (0x3), region = 115 }

// kernel: double_conv.4
= control target key start
LH: loop header
LB: loop body
LE: loop exit
PB: predicated region body
PF: predicated region fallthrough
CT: control target
= control target key end

     0   :  { %s3037_s30 = smov 0   ;;  %s3039_s10 = smov 0   ;;  %s3803_s0 = inlined_call_operand.vmem [shape: f32[2,16,16,128], index: 0, kind: input, shape index: {}, may-alias: {0,1,2}]   ;;  %s3804_s1 = inlined_call_operand.vmem [shape: f32[2,16,16,128], index: 1, kind: input, shape index: {}, may-alias: {0,1,2}]   ;;  %s3805_s2 = inlined_call_operand.vmem [shape: f32[2,16,16,128], index: 2, kind: input, shape index: {}, may-alias: {0,1,2}]   ;;  %s3806_s3 = inlined_call_operand.vmem [shape: bf16[1152,128], index: 3, kind: input, shape index: {}]   ;;  %s3807_s4 = inlined_call_operand.vmem [shape: f32[1,128], index: 4, kind: input, shape index: {}]   ;;  %s3808_s5 = inlined_call_operand.vmem [shape: f32[1,128], index: 5, kind: input, shape index: {}]   ;;  %s3809_s6 = inlined_call_operand.vmem [shape: f32[1,128], index: 6, kind: input, shape index: {}]   ;;  %s3810_s7 = inlined_call_operand.vmem [shape: f32[2,16,16,128], index: 7, kind: output, shape index: {0}]   ;;  %s3811_s8 = inlined_call_operand.vmem [shape: f32[2,1,128], index: 8, kind: output, shape index: {1}]   ;;  %s3812_s9 = inlined_call_operand.vmem [shape: f32[2,1,128], index: 9, kind: output, shape index: {2}]  }
   0x1   :  { %3813 = sst [smem:[#allocation5_spill]] %s3811_s8  ;;  %s3041_s11 = smov 0  }
   0x2   :  { %3814 = sst [smem:[#allocation6_spill]] %s3812_s9  ;;  %s3043_s12 = smov 0  }
   0x3   :  { %s3045_s13 = smov 0  }
   0x4 LB: > { %s29_s14 = sadd.s32 1, %s2975_s11  ;;  %s32_s15 = sadd.s32 1, %s2979_s12  ;;  %s2983_s13 = sphi %s3045_s13, %s20_s13   ;;  %s2979_s12 = sphi %s3043_s12, %s3827_s12   ;;  %s2975_s11 = sphi %s3041_s11, %s3826_s11   ;;  %s2971_s10 = sphi %s3039_s10, %s3825_s10   ;;  %s2967_s30 = sphi %s3037_s30, %s3824_s30  }
   0x5   : > { %p30_p0 = scmp.ge.s32.totalorder %s29_s14, 2  ;;  %p2397_p1 = scmp.ge.s32.totalorder %s2983_s13, 1 }
   0x6   : > { %p378_p2 = scmp.lt.s32.totalorder %s2983_s13, 5 }
   0x7   : > { %s3829_s14 = smov (%p30_p0, %s29_s14), 0  ;;  %s3831_s15 = smov (!%p30_p0, %s32_s15), %s2979_s12 }
   0x8   : > { %p379_p3 = pnand %p2397_p1, %p378_p2  ;;  %p34_p4 = scmp.ge.s32.totalorder %s3831_s15, 2 }
   0x9   : > { %v2867_v0 = vld [vmem:[%s3806_s3 + $0x40] sm:$0xff] (!%p379_p3)   ;;  %p457_p5 = scmp.lt.s32.totalorder (!%p379_p3), %s2971_s10, 1  ;;  %v2871_v4 = vld [vmem:[%s3806_s3 + $0x48] sm:$0xff] (!%p379_p3)   ;;  %s3087_s26 = sshll.u32 (!%p379_p3), %s2967_s30, 3  ;;  %v2875_v8 = vld [vmem:[%s3806_s3 + $0x50] sm:$0xff] (!%p379_p3)   ;;  %v2985_v16 = vmov (!%p379_p3), 0.0  }
   0xa   : > { %s3833_s15 = smov (%p34_p4, %s3831_s15), 0  ;;  %382 = sbr.rel (%p379_p3) target bundleno = 448 (0x1c0), region = 48 }
   0xb   : > { %3815 = sst [smem:[#allocation4_spill]] %s3833_s15  ;;  %v2868_v1 = vld [vmem:[%s3806_s3 + $0xc0] sm:$0xff] (!%p379_p3)   ;;  %2505 = vmatprep.subr.bf16.mxu0 (!%p379_p3), %v2867_v0  ;;  %v2872_v5 = vld [vmem:[%s3806_s3 + $0xc8] sm:$0xff] (!%p379_p3)   ;;  %s3816_s8 = sld [smem:[#allocation5_spill]] (!%p379_p3)  ;;  %v2876_v9 = vld [vmem:[%s3806_s3 + $0xd0] sm:$0xff] (!%p379_p3)  }
   0xc   : > { %v2869_v2 = vld [vmem:[%s3806_s3] sm:$0xff] (!%p379_p3)   ;;  %2569 = vmatprep.subr.bf16.mxu1 (!%p379_p3), %v2868_v1  ;;  %v2873_v6 = vld [vmem:[%s3806_s3 + $0x8] sm:$0xff] (!%p379_p3)   ;;  %s3817_s9 = sld [smem:[#allocation6_spill]] (!%p379_p3)  ;;  %s3111_s25 = sadd.s32 (!%p379_p3), 4294967295, %s3087_s26  ;;  %v2877_v10 = vld [vmem:[%s3806_s3 + $0x10] sm:$0xff] (!%p379_p3)  }
   0xd   : > { %v2870_v3 = vld [vmem:[%s3806_s3 + $0x80] sm:$0xff] (!%p379_p3)   ;;  %2506 = vmatpush3.bf16.msra.mxu0 (!%p379_p3), %v2869_v2  ;;  %v2874_v7 = vld [vmem:[%s3806_s3 + $0x88] sm:$0xff] (!%p379_p3)   ;;  %p469_p6 = scmp.gt.s32.totalorder (!%p379_p3), %s3111_s25, 0  ;;  %v2878_v11 = vld [vmem:[%s3806_s3 + $0x90] sm:$0xff] (!%p379_p3)   ;;  %p2404_p7 = scmp.lt.s32.totalorder (!%p379_p3), %s3111_s25, 15 }
   0xe   : > { %2570 = vmatpush3.bf16.msra.mxu1 (!%p379_p3), %v2870_v3  ;;  %2507 = vmatprep.subr.bf16.mxu0 (!%p379_p3), %v2871_v4  ;;  %v2879_v12 = vld [vmem:[%s3806_s3 + $0x58] sm:$0xff] (!%p379_p3)   ;;  %p459_p8 = scmp.lt.s32.totalorder (!%p379_p3), %s3087_s26, 15  ;;  %520 = vst [vmem:[#allocation2 + $0x18] sm:$0x1] (!%p379_p3), %v2985_v16  ;;  %519 = vst [vmem:[#allocation2] sm:$0x1] (!%p379_p3), %v2985_v16 }
   0xf   : > { %2571 = vmatprep.subr.bf16.mxu1 (!%p379_p3), %v2872_v5  ;;  %v2880_v13 = vld [vmem:[%s3806_s3 + $0xd8] sm:$0xff] (!%p379_p3)   ;;  %521 = vst [vmem:[#allocation2 + $0x30] sm:$0x1] (!%p379_p3), %v2985_v16  ;;  %522 = vst [vmem:[#allocation2 + $0x48] sm:$0x1] (!%p379_p3), %v2985_v16  ;;  %v2883_v17 = vld [vmem:[%s3806_s3 + $0x60] sm:$0xff] (!%p379_p3)  }
  0x10   : > { %v2881_v14 = vld [vmem:[%s3806_s3 + $0x18] sm:$0xff] (!%p379_p3)   ;;  %523 = vst [vmem:[#allocation2 + $0x60] sm:$0x1] (!%p379_p3), %v2985_v16  ;;  %524 = vst [vmem:[#allocation2 + $0x78] sm:$0x1] (!%p379_p3), %v2985_v16  ;;  %v2884_v18 = vld [vmem:[%s3806_s3 + $0xe0] sm:$0xff] (!%p379_p3)  }
  0x11   : > { %s3835_s10 = smov (!%p457_p5, %s2971_s10), 1  ;;  %2508 = vmatpush3.bf16.msra.mxu0 %v2873_v6  ;;  %v2882_v15 = vld [vmem:[%s3806_s3 + $0x98] sm:$0xff]   ;;  %525 = vst [vmem:[#allocation2 + $0x90] sm:$0x1] %v2985_v16  ;;  %526 = vst [vmem:[#allocation2 + $0xa8] sm:$0x1] %v2985_v16 }
  0x12   : > { %s3096_s17 = scalar_lea.vmem %s3816_s8, %s3835_s10  ;;  %s3105_s22 = scalar_lea.vmem %s3817_s9, %s3835_s10  ;;  %2572 = vmatpush3.bf16.msra.mxu1 %v2874_v7  ;;  %2509 = vmatprep.subr.bf16.mxu0 %v2875_v8  ;;  %527 = vst [vmem:[#allocation2 + $0xc0] sm:$0x1] %v2985_v16  ;;  %528 = vst [vmem:[#allocation2 + $0xd8] sm:$0x1] %v2985_v16  ;;  %v2885_v19 = vld [vmem:[%s3806_s3 + $0x20] sm:$0xff]   ;;  %v2887_v21 = vld [vmem:[%s3806_s3 + $0x68] sm:$0xff]  }
  0x13   : > { %2573 = vmatprep.subr.bf16.mxu1 %v2876_v9  ;;  %s3131_s27 = scalar_select %p469_p6, %s3111_s25, 0  ;;  %529 = vst [vmem:[#allocation2 + $0x11] sm:$0x1] %v2985_v16  ;;  %530 = vst [vmem:[#allocation2 + $0x29] sm:$0x1] %v2985_v16  ;;  %v2886_v20 = vld [vmem:[%s3806_s3 + $0xa0] sm:$0xff]  }
  0x14   : > { %531 = vst [vmem:[#allocation2 + $0x41] sm:$0x1] %v2985_v16  ;;  %532 = vst [vmem:[#allocation2 + $0x59] sm:$0x1] %v2985_v16  ;;  %s460_s29 = scalar_select %p459_p8, %s3087_s26, 15  ;;  %v2888_v22 = vld [vmem:[%s3806_s3 + $0xe8] sm:$0xff]  }
  0x15   : > { %2510 = vmatpush3.bf16.msra.mxu0 %v2877_v10  ;;  %533 = vst [vmem:[#allocation2 + $0x71] sm:$0x1] %v2985_v16  ;;  %534 = vst [vmem:[#allocation2 + $0x89] sm:$0x1] %v2985_v16  ;;  %s3837_s27 = smov (!%p2404_p7, %s3131_s27), 15  ;;  %s3162_s21 = sshll.u32 %s3835_s10, 5 }
  0x16   : > { %2574 = vmatpush3.bf16.msra.mxu1 %v2878_v11  ;;  %2511 = vmatprep.subr.bf16.mxu0 %v2879_v12  ;;  %535 = vst [vmem:[#allocation2 + $0xa1] sm:$0x1] %v2985_v16  ;;  %536 = vst [vmem:[#allocation2 + $0xb9] sm:$0x1] %v2985_v16  ;;  %s2409_s24 = sshll.u32 %s3837_s27, 1  ;;  %s2399_s16 = sshll.u32 %s460_s29, 1 }
  0x17   : > { %2575 = vmatprep.subr.bf16.mxu1 %v2880_v13  ;;  %537 = vst [vmem:[#allocation2 + $0xd1] sm:$0x1] %v2985_v16  ;;  %538 = vst [vmem:[#allocation2 + $0xe9] sm:$0x1] %v2985_v16  ;;  %v2889_v23 = vld [vmem:[%s3806_s3 + $0x28] sm:$0xff]   ;;  %s477_s25 = sadd.s32 %s2409_s24, %s3162_s21  ;;  %v2891_v25 = vld [vmem:[%s3806_s3 + $0x70] sm:$0xff]   ;;  %s3181_s8 = sadd.s32 %s3162_s21, %s2399_s16 }
  0x18   : > { %v2890_v24 = vld [vmem:[%s3806_s3 + $0xa8] sm:$0xff]   ;;  %v2892_v26 = vld [vmem:[%s3806_s3 + $0xf0] sm:$0xff]   ;;  %s2411_s24 = sshll.u32 %s477_s25, 3  ;;  %s2401_s16 = sshll.u32 %s3181_s8, 3  ;;  %v2895_v29 = vld [vmem:[%s3806_s3 + $0x78] sm:$0xff]  }
  0x19   : > { %2512 = vmatpush3.bf16.msra.mxu0 %v2881_v14  ;;  %v2893_v27 = vld [vmem:[%s3806_s3 + $0x30] sm:$0xff]   ;;  %p634_p9 = scmp.gt.s32.totalorder %s2967_s30, 0  ;;  %v2896_v30 = vld [vmem:[%s3806_s3 + $0xf8] sm:$0xff]   ;;  %s479_s25 = scalar_lea.vmem %s3804_s1, %s2411_s24  ;;  %v3219_v35 = vld [vmem:[%s3808_s5] ss:$0 sm:$0xff] }
  0x1a   : > { %2576 = vmatpush3.bf16.msra.mxu1 %v2882_v15  ;;  %2513 = vmatprep.subr.bf16.mxu0 %v2883_v17  ;;  %v2894_v28 = vld [vmem:[%s3806_s3 + $0xb0] sm:$0xff]   ;;  %v2897_v31 = vld [vmem:[%s3806_s3 + $0x38] sm:$0xff]   ;;  %s3211_s27 = scalar_lea.vmem %s3803_s0, %s2401_s16  ;;  %v635_v33 = vld [vmem:[%s479_s25] sm:$0xff]  ;;  %s485_s18 = sadd.s32 8, %s3087_s26 }
  0x1b   : > { %2577 = vmatprep.subr.bf16.mxu1 %v2884_v18  ;;  %v2898_v32 = vld [vmem:[%s3806_s3 + $0xb8] sm:$0xff]   ;;  %v636_v34 = vld [vmem:[%s479_s25 + $0x8] sm:$0xff]  ;;  %s657_s9 = scalar_select %p634_p9, 1, 0  ;;  %v644_v36 = vmul.f32 %v3219_v35, %v635_v33  ;;  %v3226_v38 = vld [vmem:[%s3809_s6] ss:$0 sm:$0xff] }
  0x1c   : > { %v645_v37 = vmul.f32 %v3219_v35, %v636_v34  ;;  %v539_v39 = vld [vmem:[%s3211_s27] sm:$0xff]  ;;  %v540_v40 = vld [vmem:[%s3211_s27 + $0x8] sm:$0xff]  ;;  %v541_v55 = vld [vmem:[%s3211_s27 + $0x10] sm:$0xff]  ;;  %p3389_p10 = scmp.lt.s32.totalorder %s485_s18, 15  ;;  %p662_p11 = scmp.lt.s32.totalorder %s2967_s30, 1 }
  0x1d   : > { %2514 = vmatpush3.bf16.msra.mxu0 %v2885_v19  ;;  %v658_v41 = vstv %s657_s9  ;;  %v562_v42 = vmul.f32 %v3219_v35, %v539_v39  ;;  %v563_v43 = vmul.f32 %v3219_v35, %v540_v40  ;;  %v2899_v44 = vld [vmem:[%s3806_s3 + $0x140] sm:$0xff]   ;;  %v653_v45 = vadd.f32 %v3226_v38, %v644_v36  ;;  %v542_v56 = vld [vmem:[%s3211_s27 + $0x18] sm:$0xff]  ;;  %v544_v3 = vld [vmem:[%s3211_s27 + $0x28] sm:$0xff]  ;;  %p2500_p12 = scmp.ne.s32.totalorder %s2967_s30, 0 }
  0x1e   : > { %2578 = vmatpush3.bf16.msra.mxu1 %v2886_v20  ;;  %2515 = vmatprep.subr.bf16.mxu0 %v2887_v21  ;;  %v654_v46 = vadd.f32 %v3226_v38, %v645_v37  ;;  %v2900_v47 = vld [vmem:[%s3806_s3 + $0x1c0] sm:$0xff]   ;;  %vm3240_vm0 = vcmp.eq.s32.totalorder %v658_v41, 1  ;;  %v564_v59 = vmul.f32 %v3219_v35, %v541_v55  ;;  %v565_v60 = vmul.f32 %v3219_v35, %v542_v56  ;;  %v2907_v36 = vld [vmem:[%s3806_s3 + $0x150] sm:$0xff]   ;;  %v2912_v55 = vld [vmem:[%s3806_s3 + $0x1d8] sm:$0xff]   ;;  %s3839_s18 = smov (!%p3389_p10, %s485_s18), 15 }
  0x1f   : > { %2579 = vmatprep.subr.bf16.mxu1 %v2888_v22  ;;  %v585_v49 = vadd.f32 %v3226_v38, %v562_v42  ;;  %v586_v50 = vadd.f32 %v3226_v38, %v563_v43  ;;  %v655_v51 = vmax.f32 %v653_v45, 0.0  ;;  %vm2939_vm1 = vmpackc.low %vm3240_vm0, %vm3240_vm0  ;;  %v543_v2 = vld [vmem:[%s3211_s27 + $0x20] sm:$0xff]  ;;  %v567_v5 = vmul.f32 %v3219_v35, %v544_v3  ;;  %v2903_v22 = vld [vmem:[%s3806_s3 + $0x148] sm:$0xff]   ;;  %s3841_s18 = smov (!%p3389_p10, %s3839_s18), 15 }
  0x20   : > { %v656_v52 = vmax.f32 %v654_v46, 0.0  ;;  %v3255_v61 = vadd.f32 %v3226_v38, %v564_v59  ;;  %v588_v62 = vadd.f32 %v3226_v38, %v565_v60  ;;  %v566_v4 = vmul.f32 %v3219_v35, %v543_v2  ;;  %v2901_v6 = vld [vmem:[%s3806_s3 + $0x100] sm:$0xff]   ;;  %v2908_v37 = vld [vmem:[%s3806_s3 + $0x1d0] sm:$0xff]   ;;  %v548_v56 = vld [vmem:[%s3211_s27 + $0x48] sm:$0xff] }
  0x21   : > { %2516 = vmatpush3.bf16.msra.mxu0 %v2889_v23  ;;  %v601_v53 = vmax.f32 %v585_v49, 0.0  ;;  %v602_v54 = vmax.f32 %v586_v50, 0.0  ;;  %v660_v57 = vsel %vm3240_vm0, %v655_v51, 0.0  ;;  %v2902_v7 = vld [vmem:[%s3806_s3 + $0x180] sm:$0xff]   ;;  %v3276_v9 = vadd.f32 %v3226_v38, %v567_v5  ;;  %v2904_v23 = vld [vmem:[%s3806_s3 + $0x1c8] sm:$0xff]   ;;  %v2909_v42 = vld [vmem:[%s3806_s3 + $0x110] sm:$0xff]  }
  0x22   : > { %2580 = vmatpush3.bf16.msra.mxu1 %v2890_v24  ;;  %2517 = vmatprep.subr.bf16.mxu0 %v2891_v25  ;;  %v661_v58 = vsel %vm3240_vm0, %v656_v52, 0.0  ;;  %676 = vst [vmem:[#allocation2 + $0x1] sm:$0xff] %v660_v57  ;;  %v2940_v63 = vpack.c.bf16 %v656_v52, %v655_v51  ;;  %v603_v0 = vmax.f32 %v3255_v61, 0.0  ;;  %v604_v1 = vmax.f32 %v588_v62, 0.0  ;;  %v2905_v25 = vld [vmem:[%s3806_s3 + $0x108] sm:$0xff]   ;;  %v2910_v45 = vld [vmem:[%s3806_s3 + $0x190] sm:$0xff]  }
  0x23   : > { %2581 = vmatprep.subr.bf16.mxu1 %v2892_v26  ;;  %677 = vst [vmem:[#allocation2 + $0x9] sm:$0xff] %v661_v58  ;;  %618 = vst [vmem:[#allocation2 + $0x19] sm:$0xff] %v601_v53  ;;  %v3273_v8 = vadd.f32 %v3226_v38, %v566_v4  ;;  %v606_v18 = vmax.f32 %v3276_v9, 0.0  ;;  %v3280_v21 = vpack.c.bf16 %v602_v54, %v601_v53  ;;  %v2906_v26 = vld [vmem:[%s3806_s3 + $0x188] sm:$0xff]   ;;  %v2911_v50 = vld [vmem:[%s3806_s3 + $0x158] sm:$0xff]  }
  0x24   : > { %619 = vst [vmem:[#allocation2 + $0x21] sm:$0xff] %v602_v54  ;;  %2941 = vmatprep.mubr.msk.bf16.mxu0 %vm2939_vm1, %v2940_v63  ;;  %620 = vst [vmem:[#allocation2 + $0x31] sm:$0xff] %v603_v0  ;;  %v2913_v57 = vld [vmem:[%s3806_s3 + $0x118] sm:$0xff]   ;;  %v571_v58 = vmul.f32 %v3219_v35, %v548_v56  ;;  %v2915_v63 = vld [vmem:[%s3806_s3 + $0x160] sm:$0xff]  }
  0x25   : > { %2518 = vmatpush3.bf16.msra.mxu0 %v2893_v27  ;;  %621 = vst [vmem:[#allocation2 + $0x39] sm:$0xff] %v604_v1  ;;  %v605_v17 = vmax.f32 %v3273_v8, 0.0  ;;  %623 = vst [vmem:[#allocation2 + $0x51] sm:$0xff] %v606_v18  ;;  %v545_v27 = vld [vmem:[%s3211_s27 + $0x30] sm:$0xff]  ;;  %v2914_v60 = vld [vmem:[%s3806_s3 + $0x198] sm:$0xff]  }
  0x26   : > { %2582 = vmatpush3.bf16.msra.mxu1 %v2894_v28  ;;  %2519 = vmatprep.subr.bf16.mxu0 %v2895_v29  ;;  %v546_v28 = vld [vmem:[%s3211_s27 + $0x38] sm:$0xff]  ;;  %v568_v29 = vmul.f32 %v3219_v35, %v545_v27  ;;  %v3360_v61 = vadd.f32 %v3226_v38, %v571_v58  ;;  %v2918_v8 = vld [vmem:[%s3806_s3 + $0x1a0] sm:$0xff]  }
  0x27   : > { %2583 = vmatprep.subr.bf16.mxu1 %v2896_v30  ;;  %622 = vst [vmem:[#allocation2 + $0x49] sm:$0xff] %v605_v17  ;;  %v569_v33 = vmul.f32 %v3219_v35, %v546_v28  ;;  %v550_v4 = vld [vmem:[%s3211_s27 + $0x58] sm:$0xff] }
  0x28   : > { %v3312_v39 = vadd.f32 %v3226_v38, %v568_v29  ;;  %v610_v3 = vmax.f32 %v3360_v61, 0.0  ;;  %v2923_v29 = vld [vmem:[%s3806_s3 + $0x170] sm:$0xff]   ;;  %v2928_v58 = vld [vmem:[%s3806_s3 + $0x1f8] sm:$0xff]  }
  0x29   : > { %2520 = vmatpush3.bf16.msra.mxu0 %v2897_v31  ;;  %v681_v12 = vld [vmem:[#allocation2] sm:$0xff]  ;;  %v3315_v40 = vadd.f32 %v3226_v38, %v569_v33 }
  0x2a   : > { %2584 = vmatpush3.bf16.msra.mxu1 %v2898_v32  ;;  %2633 = vmatprep.subr.bf16.mxu0 %v2899_v44  ;;  %v777_v10 = vld [vmem:[#allocation2 + $0x18] sm:$0xff]  ;;  %v682_v14 = vld [vmem:[#allocation2 + $0x8] sm:$0xff]  ;;  %v607_v43 = vmax.f32 %v3312_v39, 0.0  ;;  %v3324_v44 = vpack.c.bf16 %v604_v1, %v603_v0  ;;  %v2916_v0 = vld [vmem:[%s3806_s3 + $0x1e0] sm:$0xff]   ;;  %627 = vst [vmem:[#allocation2 + $0x81] sm:$0xff] %v610_v3 }
  0x2b   : > { %2697 = vmatprep.subr.bf16.mxu1 %v2900_v47  ;;  %v778_v11 = vld [vmem:[#allocation2 + $0x20] sm:$0xff]  ;;  %v746_v16 = vld [vmem:[#allocation2 + $0xa] sm:$0xff]  ;;  %v697_v19 = vpack.c.bf16 %v682_v14, %v681_v12  ;;  %v608_v46 = vmax.f32 %v3315_v40, 0.0 }
  0x2c   : > { %v793_v13 = vpack.c.bf16 %v778_v11, %v777_v10  ;;  %v745_v15 = vld [vmem:[#allocation2 + $0x2] sm:$0xff]  ;;  %v747_v24 = vld [vmem:[#allocation2 + $0x1a] sm:$0xff]  ;;  %v779_v30 = vld [vmem:[#allocation2 + $0x30] sm:$0xff]  ;;  %624 = vst [vmem:[#allocation2 + $0x61] sm:$0xff] %v607_v43  ;;  %v573_v11 = vmul.f32 %v3219_v35, %v550_v4 }
  0x2d   : > { %v761_v20 = vpack.c.bf16 %v746_v16, %v745_v15  ;;  %1658 = vmatmul.mubr.bf16.vlgmr.msra.gmra.mrb[0].mxu0 %v697_v19  ;;  %v780_v31 = vld [vmem:[#allocation2 + $0x38] sm:$0xff]  ;;  %v748_v32 = vld [vmem:[#allocation2 + $0x22] sm:$0xff]  ;;  %625 = vst [vmem:[#allocation2 + $0x69] sm:$0xff] %v608_v46  ;;  %v549_v1 = vld [vmem:[%s3211_s27 + $0x50] sm:$0xff]  ;;  %v3453_v33 = vpack.c.bf16 %v608_v46, %v607_v43 }
  0x2e   : > { %1754 = vmatprep.mubr.bf16.mxu1 %v793_v13  ;;  %2634 = vmatpush3.bf16.msra.mxu0 %v2901_v6  ;;  %v3303_v34 = vpack.c.bf16 %v780_v31, %v779_v30  ;;  %v3318_v41 = vpack.c.bf16 %v748_v32, %v747_v24  ;;  %v547_v47 = vld [vmem:[%s3211_s27 + $0x40] sm:$0xff]  ;;  %v781_v48 = vld [vmem:[#allocation2 + $0x48] sm:$0xff]  ;;  %v782_v49 = vld [vmem:[#allocation2 + $0x50] sm:$0xff]  ;;  %v572_v5 = vmul.f32 %v3219_v35, %v549_v1 }
  0x2f   : > { %1755 = vmatmul.mubr.bf16.vlgmr.msra.gmra.mrb[0].mxu1 %v761_v20  ;;  %1665 = vmatprep.mubr.bf16.mxu0 %v3280_v21  ;;  %v570_v51 = vmul.f32 %v3219_v35, %v547_v47  ;;  %v3337_v52 = vpack.c.bf16 %v782_v49, %v781_v48  ;;  %v749_v53 = vld [vmem:[#allocation2 + $0x32] sm:$0xff]  ;;  %v750_v54 = vld [vmem:[#allocation2 + $0x3a] sm:$0xff]  ;;  %v3381_v6 = vpack.c.bf16 %v606_v18, %v605_v17  ;;  %v751_v15 = vld [vmem:[#allocation2 + $0x4a] sm:$0xff] }
  0x30   : > { %2698 = vmatpush3.bf16.msra.mxu1 %v2902_v7  ;;  %2635 = vmatprep.subr.bf16.mxu0 %v2903_v22  ;;  %v3370_v2 = vpack.c.bf16 %v750_v54, %v749_v53  ;;  %v2917_v10 = vld [vmem:[%s3806_s3 + $0x120] sm:$0xff]   ;;  %v3399_v9 = vadd.f32 %v3226_v38, %v572_v5  ;;  %v752_v16 = vld [vmem:[#allocation2 + $0x52] sm:$0xff]  ;;  %v3407_v17 = vadd.f32 %v3226_v38, %v573_v11  ;;  %v2920_v18 = vld [vmem:[%s3806_s3 + $0x1e8] sm:$0xff]  }
  0x31   : > { %2699 = vmatprep.subr.bf16.mxu1 %v2904_v23  ;;  %1762 = vmatprep.mubr.bf16.mxu1 %v3303_v34  ;;  %v3351_v59 = vadd.f32 %v3226_v38, %v570_v51  ;;  %v2921_v20 = vld [vmem:[%s3806_s3 + $0x128] sm:$0xff]   ;;  %v551_v24 = vld [vmem:[%s3211_s27 + $0x60] sm:$0xff]  ;;  %v3441_v30 = vpack.c.bf16 %v752_v16, %v751_v15  ;;  %v2924_v32 = vld [vmem:[%s3806_s3 + $0x1f0] sm:$0xff]  }
  0x32   : > { %2636 = vmatpush3.bf16.msra.mxu0 %v2905_v25  ;;  %v611_v19 = vmax.f32 %v3399_v9, 0.0  ;;  %v612_v22 = vmax.f32 %v3407_v17, 0.0  ;;  %v2922_v23 = vld [vmem:[%s3806_s3 + $0x1a8] sm:$0xff]   ;;  %v2925_v39 = vld [vmem:[%s3806_s3 + $0x130] sm:$0xff]   ;;  %v554_v48 = vld [vmem:[%s3211_s27 + $0x78] sm:$0xff] }
  0x33   : > { %2637 = vmatprep.subr.bf16.mxu0 %v2907_v36  ;;  %v609_v62 = vmax.f32 %v3351_v59, 0.0  ;;  %v783_v7 = vld [vmem:[#allocation2 + $0x60] sm:$0xff]  ;;  %v552_v25 = vld [vmem:[%s3211_s27 + $0x68] sm:$0xff]  ;;  %v2926_v46 = vld [vmem:[%s3806_s3 + $0x1b0] sm:$0xff]   ;;  %v577_v51 = vmul.f32 %v3219_v35, %v554_v48 }
  0x34   : > { %2700 = vmatpush3.bf16.msra.mxu1 %v2906_v26  ;;  %v784_v12 = vld [vmem:[#allocation2 + $0x68] sm:$0xff]  ;;  %628 = vst [vmem:[#allocation2 + $0x91] sm:$0xff] %v611_v19  ;;  %v574_v26 = vmul.f32 %v3219_v35, %v551_v24  ;;  %629 = vst [vmem:[#allocation2 + $0x99] sm:$0xff] %v612_v22  ;;  %v575_v28 = vmul.f32 %v3219_v35, %v552_v25  ;;  %v553_v47 = vld [vmem:[%s3211_s27 + $0x70] sm:$0xff]  ;;  %s2416_s27 = sshll.u32 %s3841_s18, 1  ;;  %s3730_s18 = scalar_lea.vmem %s3810_s7, %s2401_s16 }
  0x35   : > { %2701 = vmatprep.subr.bf16.mxu1 %v2908_v37  ;;  %1666 = vmatmul.mubr.bf16.gmra.mrb[4].mxu0 %v793_v13  ;;  %626 = vst [vmem:[#allocation2 + $0x79] sm:$0xff] %v609_v62  ;;  %v2919_v13 = vld [vmem:[%s3806_s3 + $0x168] sm:$0xff]   ;;  %v3404_v14 = vpack.c.bf16 %v784_v12, %v783_v7  ;;  %v576_v49 = vmul.f32 %v3219_v35, %v553_v47  ;;  %v2927_v53 = vld [vmem:[%s3806_s3 + $0x178] sm:$0xff]   ;;  %s494_s25 = sadd.s32 %s2416_s27, %s3162_s21  ;;  %v2931_v59 = vld [vmem:[%s3806_s3 + $0x200] sm:$0xff]  }
  0x36   : > { %1673 = vmatprep.mubr.bf16.mxu0 %v3324_v44  ;;  %2638 = vmatpush3.bf16.msra.mxu0 %v2909_v42  ;;  %v3444_v31 = vadd.f32 %v3226_v38, %v574_v26  ;;  %v3456_v37 = vadd.f32 %v3226_v38, %v575_v28  ;;  %v753_v40 = vld [vmem:[#allocation2 + $0x62] sm:$0xff]  ;;  %v3500_v1 = vpack.c.bf16 %v610_v3, %v609_v62  ;;  %v2930_v7 = vld [vmem:[%s3806_s3 + $0x1b8] sm:$0xff]   ;;  %s2418_s23 = sshll.u32 %s494_s25, 3 }
  0x37   : > { %1763 = vmatmul.mubr.bf16.gmra.mrb[4].mxu1 %v3318_v41  ;;  %2639 = vmatprep.subr.bf16.mxu0 %v2911_v50  ;;  %v754_v50 = vld [vmem:[#allocation2 + $0x6a] sm:$0xff]  ;;  %v599_v56 = vadd.f32 %v3226_v38, %v576_v49  ;;  %v756_v3 = vld [vmem:[#allocation2 + $0x82] sm:$0xff]  ;;  %s496_s29 = scalar_lea.vmem %s3805_s2, %s2418_s23 }
  0x38   : > { %1770 = vmatprep.mubr.bf16.mxu1 %v3337_v52  ;;  %2702 = vmatpush3.bf16.msra.mxu1 %v2910_v45  ;;  %v613_v45 = vmax.f32 %v3444_v31, 0.0  ;;  %v614_v43 = vmax.f32 %v3456_v37, 0.0  ;;  %s671_s27 = scalar_select %p662_p11, 1, 0  ;;  %v663_v15 = vld [vmem:[%s496_s29] sm:$0xff]  ;;  %v664_v16 = vld [vmem:[%s496_s29 + $0x8] sm:$0xff] }
  0x39   : > { %2703 = vmatprep.subr.bf16.mxu1 %v2912_v55 }
  0x3a   : > { %2640 = vmatpush3.bf16.msra.mxu0 %v2913_v57  ;;  %630 = vst [vmem:[#allocation2 + $0xa9] sm:$0xff] %v613_v45  ;;  %631 = vst [vmem:[#allocation2 + $0xb1] sm:$0xff] %v614_v43  ;;  %v600_v57 = vadd.f32 %v3226_v38, %v577_v51 }
  0x3b   : > { %2641 = vmatprep.subr.bf16.mxu0 %v2915_v63  ;;  %v787_v54 = vld [vmem:[#allocation2 + $0x90] sm:$0xff]  ;;  %v788_v55 = vld [vmem:[#allocation2 + $0x98] sm:$0xff]  ;;  %v615_v63 = vmax.f32 %v599_v56, 0.0 }
  0x3c   : > { %2704 = vmatpush3.bf16.msra.mxu1 %v2914_v60  ;;  %v785_v27 = vld [vmem:[#allocation2 + $0x78] sm:$0xff]  ;;  %v786_v36 = vld [vmem:[#allocation2 + $0x80] sm:$0xff]  ;;  %v3491_v60 = vpack.c.bf16 %v754_v50, %v753_v40  ;;  %v3502_v4 = vpack.c.bf16 %v788_v55, %v787_v54  ;;  %v616_v5 = vmax.f32 %v600_v57, 0.0 }
  0x3d   : > { %2705 = vmatprep.subr.bf16.mxu1 %v2916_v0  ;;  %1674 = vmatmul.mubr.bf16.gmra.mrb[8].mxu0 %v3303_v34  ;;  %v3461_v42 = vpack.c.bf16 %v786_v36, %v785_v27  ;;  %v2929_v0 = vld [vmem:[%s3806_s3 + $0x138] sm:$0xff]   ;;  %632 = vst [vmem:[#allocation2 + $0xc1] sm:$0xff] %v615_v63 }
  0x3e   : > { %1681 = vmatprep.mubr.bf16.mxu0 %v3381_v6  ;;  %2642 = vmatpush3.bf16.msra.mxu0 %v2917_v10  ;;  %633 = vst [vmem:[#allocation2 + $0xc9] sm:$0xff] %v616_v5  ;;  %v3511_v61 = vpack.c.bf16 %v616_v5, %v615_v63  ;;  %v755_v62 = vld [vmem:[#allocation2 + $0x7a] sm:$0xff]  ;;  %v757_v9 = vld [vmem:[#allocation2 + $0x92] sm:$0xff] }
  0x3f   : > { %1771 = vmatmul.mubr.bf16.gmra.mrb[8].mxu1 %v3370_v2  ;;  %2643 = vmatprep.subr.bf16.mxu0 %v2919_v13  ;;  %v3521_v12 = vpack.c.bf16 %v756_v3, %v755_v62  ;;  %v758_v17 = vld [vmem:[#allocation2 + $0x9a] sm:$0xff] }
  0x40   : > { %1778 = vmatprep.mubr.bf16.mxu1 %v3404_v14  ;;  %2706 = vmatpush3.bf16.msra.mxu1 %v2918_v8  ;;  %v3527_v8 = vpack.c.bf16 %v612_v22, %v611_v19 }
  0x41   : > { %2707 = vmatprep.subr.bf16.mxu1 %v2920_v18  ;;  %v789_v10 = vld [vmem:[#allocation2 + $0xa8] sm:$0xff]  ;;  %v790_v11 = vld [vmem:[#allocation2 + $0xb0] sm:$0xff]  ;;  %v665_v18 = vmul.f32 %v3219_v35, %v663_v15 }
  0x42   : > { %2644 = vmatpush3.bf16.msra.mxu0 %v2921_v20  ;;  %v3529_v13 = vpack.c.bf16 %v790_v11, %v789_v10  ;;  %v666_v20 = vmul.f32 %v3219_v35, %v664_v16  ;;  %v3547_v35 = vpack.c.bf16 %v758_v17, %v757_v9  ;;  %v759_v31 = vld [vmem:[#allocation2 + $0xaa] sm:$0xff]  ;;  %v760_v37 = vld [vmem:[#allocation2 + $0xb2] sm:$0xff] }
  0x43   : > { %2645 = vmatprep.subr.bf16.mxu0 %v2923_v29  ;;  %v3538_v24 = vadd.f32 %v3226_v38, %v665_v18  ;;  %v3555_v29 = vpack.c.bf16 %v614_v43, %v613_v45  ;;  %v3571_v45 = vpack.c.bf16 %v760_v37, %v759_v31 }
  0x44   : > { %2708 = vmatpush3.bf16.msra.mxu1 %v2922_v23  ;;  %v672_v23 = vstv %s671_s27  ;;  %v791_v19 = vld [vmem:[#allocation2 + $0xc0] sm:$0xff]  ;;  %v3541_v25 = vadd.f32 %v3226_v38, %v666_v20 }
  0x45   : > { %2709 = vmatprep.subr.bf16.mxu1 %v2924_v32  ;;  %1682 = vmatmul.mubr.bf16.gmra.mrb[12].mxu0 %v3337_v52  ;;  %v792_v22 = vld [vmem:[#allocation2 + $0xc8] sm:$0xff]  ;;  %vm3543_vm2 = vcmp.eq.s32.totalorder %v672_v23, 1  ;;  %v669_v27 = vmax.f32 %v3538_v24, 0.0 }
  0x46   : > { %1689 = vmatprep.mubr.bf16.mxu0 %v3453_v33  ;;  %2646 = vmatpush3.bf16.msra.mxu0 %v2925_v39  ;;  %v670_v28 = vmax.f32 %v3541_v25, 0.0  ;;  %v3557_v32 = vpack.c.bf16 %v792_v22, %v791_v19  ;;  %v2932_v39 = vld [vmem:[%s3806_s3 + $0x208] sm:$0xff]   ;;  %vm2942_vm3 = vmpackc.low %vm3543_vm2, %vm3543_vm2 }
  0x47   : > { %1779 = vmatmul.mubr.bf16.gmra.mrb[12].mxu1 %v3441_v30  ;;  %2647 = vmatprep.subr.bf16.mxu0 %v2927_v53  ;;  %v674_v38 = vsel %vm3543_vm2, %v669_v27, 0.0 }
  0x48   : > { %1786 = vmatprep.mubr.bf16.mxu1 %v3461_v42  ;;  %2710 = vmatpush3.bf16.msra.mxu1 %v2926_v46  ;;  %v675_v36 = vsel %vm3543_vm2, %v670_v28, 0.0  ;;  %679 = vst [vmem:[#allocation2 + $0xd9] sm:$0xff] %v674_v38  ;;  %v2943_v40 = vpack.c.bf16 %v670_v28, %v669_v27 }
  0x49   : > { %2711 = vmatprep.subr.bf16.mxu1 %v2928_v58  ;;  %680 = vst [vmem:[#allocation2 + $0xe1] sm:$0xff] %v675_v36 }
  0x4a   : > { %2648 = vmatpush3.bf16.msra.mxu0 %v2929_v0 }
  0x4b   : > { %2777 = vmatprep.subr.bf16.mxu0 %v2931_v59 }
  0x4c   : > { %2712 = vmatpush3.bf16.msra.mxu1 %v2930_v7 }
  0x4d   : > { %1690 = vmatmul.mubr.bf16.gmra.mrb[16].mxu0 %v3404_v14  ;;  %2809 = vmatprep.subr.bf16.mxu1 %v2931_v59 }
  0x4e   : > { %1697 = vmatprep.mubr.bf16.mxu0 %v3500_v1 }
  0x4f   : > { %1787 = vmatmul.mubr.bf16.gmra.mrb[16].mxu1 %v3491_v60  ;;  %v888_v43 = vld [vmem:[#allocation2 + $0xd8] sm:$0xff] }
  0x50   : > { %1794 = vmatprep.mubr.bf16.mxu1 %v3502_v4  ;;  %v889_v46 = vld [vmem:[#allocation2 + $0xe0] sm:$0xff] }
  0x51   : > { %v897_v47 = vpack.c.bf16 %v889_v46, %v888_v43  ;;  %v952_v48 = vld [vmem:[#allocation2 + $0xda] sm:$0xff]  ;;  %v953_v49 = vld [vmem:[#allocation2 + $0xe2] sm:$0xff] }
  0x52   : > { %v961_v50 = vpack.c.bf16 %v953_v49, %v952_v48 }
  0x55   : > { %1698 = vmatmul.mubr.bf16.gmra.mrb[20].mxu0 %v3461_v42 }
  0x56   : > { %1705 = vmatprep.mubr.bf16.mxu0 %v3527_v8 }
  0x57   : > { %1795 = vmatmul.mubr.bf16.gmra.mrb[20].mxu1 %v3521_v12 }
  0x58   : > { %1802 = vmatprep.mubr.bf16.mxu1 %v3529_v13 }
  0x5d   : > { %1706 = vmatmul.mubr.bf16.gmra.mrb[24].mxu0 %v3502_v4 }
  0x5e   : > { %1713 = vmatprep.mubr.bf16.mxu0 %v3555_v29 }
  0x5f   : > { %1803 = vmatmul.mubr.bf16.gmra.mrb[24].mxu1 %v3547_v35 }
  0x60   : > { %1810 = vmatprep.mubr.bf16.mxu1 %v3557_v32 }
  0x65   : > { %1714 = vmatmul.mubr.bf16.gmra.mrb[28].mxu0 %v3529_v13 }
  0x66   : > { %1851 = vmatprep.mubr.bf16.mxu0 %v3318_v41  ;;  %v2933_v41 = vld [vmem:[%s3806_s3 + $0x210] sm:$0xff]  }
  0x67   : > { %1811 = vmatmul.mubr.bf16.gmra.mrb[28].mxu1 %v3571_v45 }
  0x68   : > { %1948 = vmatprep.mubr.bf16.mxu1 %v3324_v44 }
  0x6d   : > { %1852 = vmatmul.mubr.bf16.vlgmr.msra.gmra.mrb[32].mxu0 %v3280_v21  ;;  %v2934_v21 = vld [vmem:[%s3806_s3 + $0x218] sm:$0xff]  }
  0x6e   : > { %2778 = vmatpush3.bf16.msra.mxu0 %v2931_v59  ;;  %1859 = vmatprep.mubr.bf16.mxu0 %v3370_v2 }
  0x6f   : > { %1949 = vmatmul.mubr.bf16.vlgmr.msra.gmra.mrb[32].mxu1 %v3303_v34  ;;  %2779 = vmatprep.subr.bf16.mxu0 %v2932_v39  ;;  %v2935_v34 = vld [vmem:[%s3806_s3 + $0x220] sm:$0xff]  }
  0x70   : > { %2817 = vmatpush3.bf16.msra.mxu1 %v2931_v59  ;;  %1956 = vmatprep.mubr.bf16.mxu1 %v3381_v6 }
  0x71   : > { %2810 = vmatprep.subr.bf16.mxu1 %v2932_v39 }
  0x72   : > { %2780 = vmatpush3.bf16.msra.mxu0 %v2932_v39 }
  0x73   : > { %2781 = vmatprep.subr.bf16.mxu0 %v2933_v41 }
  0x74   : > { %2818 = vmatpush3.bf16.msra.mxu1 %v2932_v39 }
  0x75   : > { %2811 = vmatprep.subr.bf16.mxu1 %v2933_v41  ;;  %1860 = vmatmul.mubr.bf16.gmra.mrb[36].mxu0 %v3324_v44  ;;  %v2936_v44 = vld [vmem:[%s3806_s3 + $0x228] sm:$0xff]  }
  0x76   : > { %1867 = vmatprep.mubr.bf16.mxu0 %v3441_v30  ;;  %2782 = vmatpush3.bf16.msra.mxu0 %v2933_v41 }
  0x77   : > { %1957 = vmatmul.mubr.bf16.gmra.mrb[36].mxu1 %v3337_v52  ;;  %2783 = vmatprep.subr.bf16.mxu0 %v2934_v21  ;;  %v2937_v52 = vld [vmem:[%s3806_s3 + $0x230] sm:$0xff]  }
  0x78   : > { %1964 = vmatprep.mubr.bf16.mxu1 %v3453_v33  ;;  %2819 = vmatpush3.bf16.msra.mxu1 %v2933_v41 }
  0x79   : > { %2812 = vmatprep.subr.bf16.mxu1 %v2934_v21 }
  0x7a   : > { %2784 = vmatpush3.bf16.msra.mxu0 %v2934_v21 }
  0x7b   : > { %2785 = vmatprep.subr.bf16.mxu0 %v2935_v34 }
  0x7c   : > { %2820 = vmatpush3.bf16.msra.mxu1 %v2934_v21 }
  0x7d   : > { %2813 = vmatprep.subr.bf16.mxu1 %v2935_v34  ;;  %1868 = vmatmul.mubr.bf16.gmra.mrb[40].mxu0 %v3381_v6  ;;  %v2938_v6 = vld [vmem:[%s3806_s3 + $0x238] sm:$0xff]  }
  0x7e   : > { %1875 = vmatprep.mubr.bf16.mxu0 %v3491_v60  ;;  %2786 = vmatpush3.bf16.msra.mxu0 %v2935_v34 }
  0x7f   : > { %1965 = vmatmul.mubr.bf16.gmra.mrb[40].mxu1 %v3404_v14  ;;  %2787 = vmatprep.subr.bf16.mxu0 %v2936_v44  ;;  %v855_v14 = vld [vmem:[#allocation2 + $0xc2] sm:$0xff] }
  0x80   : > { %1972 = vmatprep.mubr.bf16.mxu1 %v3500_v1  ;;  %2821 = vmatpush3.bf16.msra.mxu1 %v2935_v34 }
  0x81   : > { %2814 = vmatprep.subr.bf16.mxu1 %v2936_v44 }
  0x82   : > { %2788 = vmatpush3.bf16.msra.mxu0 %v2936_v44 }
  0x83   : > { %2789 = vmatprep.subr.bf16.mxu0 %v2937_v52 }
  0x84   : > { %2822 = vmatpush3.bf16.msra.mxu1 %v2936_v44 }
  0x85   : > { %2815 = vmatprep.subr.bf16.mxu1 %v2937_v52  ;;  %1876 = vmatmul.mubr.bf16.gmra.mrb[44].mxu0 %v3453_v33  ;;  %v856_v33 = vld [vmem:[#allocation2 + $0xca] sm:$0xff] }
  0x86   : > { %1883 = vmatprep.mubr.bf16.mxu0 %v3521_v12  ;;  %2790 = vmatpush3.bf16.msra.mxu0 %v2937_v52 }
  0x87   : > { %1973 = vmatmul.mubr.bf16.gmra.mrb[44].mxu1 %v3461_v42  ;;  %2791 = vmatprep.subr.bf16.mxu0 %v2938_v6  ;;  %v864_v42 = vpack.c.bf16 %v856_v33, %v855_v14 }
  0x88   : > { %1980 = vmatprep.mubr.bf16.mxu1 %v3527_v8  ;;  %2823 = vmatpush3.bf16.msra.mxu1 %v2937_v52 }
  0x89   : > { %2816 = vmatprep.subr.bf16.mxu1 %v2938_v6 }
  0x8a   : > { %2792 = vmatpush3.bf16.msra.mxu0 %v2938_v6 }
  0x8c   : > { %2824 = vmatpush3.bf16.msra.mxu1 %v2938_v6 }
  0x8d   : > { %1884 = vmatmul.mubr.bf16.gmra.mrb[48].mxu0 %v3500_v1 }
  0x8e   : > { %1891 = vmatprep.mubr.bf16.mxu0 %v3547_v35 }
  0x8f   : > { %1981 = vmatmul.mubr.bf16.gmra.mrb[48].mxu1 %v3502_v4 }
  0x90   : > { %1988 = vmatprep.mubr.bf16.mxu1 %v3555_v29 }
  0x95   : > { %1892 = vmatmul.mubr.bf16.gmra.mrb[52].mxu0 %v3527_v8 }
  0x96   : > { %1899 = vmatprep.mubr.bf16.mxu0 %v3571_v45 }
  0x97   : > { %1989 = vmatmul.mubr.bf16.gmra.mrb[52].mxu1 %v3529_v13 }
  0x98   : > { %1996 = vmatprep.mubr.bf16.mxu1 %v3511_v61 }
  0x9d   : > { %1900 = vmatmul.mubr.bf16.gmra.mrb[56].mxu0 %v3555_v29 }
  0x9e   : > { %1907 = vmatprep.mubr.bf16.mxu0 %v864_v42 }
  0x9f   : > { %1997 = vmatmul.mubr.bf16.gmra.mrb[56].mxu1 %v3557_v32 }
  0xa0   : > { %2944 = vmatprep.mubr.msk.bf16.mxu1 %vm2942_vm3, %v2943_v40 }
  0xa5   : > { %1908 = vmatmul.mubr.bf16.gmra.mrb[60].mxu0 %v3511_v61 }
  0xa6   : > { %2793 = vmatprep.mubr.bf16.mxu0 %v3370_v2  ;;  %v3641_v2 = vld [vmem:[%s3807_s4] ss:$0 sm:$0xff] }
  0xa7   : > { %2005 = vmatmul.mubr.bf16.gmra.mrb[60].mxu1 %v897_v47 }
  0xa8   : > { %2801 = vmatprep.mubr.bf16.mxu1 %v3547_v35 }
  0xad   : > { %2794 = vmatmul.mubr.bf16.vlgmr.msra.gmra.mrb[64].mxu0 %v3441_v30 }
  0xae   : > { %2797 = vmatprep.mubr.bf16.mxu0 %v3491_v60 }
  0xaf   : > { %2802 = vmatmul.mubr.bf16.vlgmr.msra.gmra.mrb[64].mxu1 %v3571_v45 }
  0xb0   : > { %2805 = vmatprep.mubr.bf16.mxu1 %v864_v42 }
  0xb5   : > { %2798 = vmatmul.mubr.bf16.gmra.mrb[68].mxu0 %v3521_v12 }
  0xb7   : > { %2806 = vmatmul.mubr.bf16.gmra.mrb[68].mxu1 %v961_v50 }
 0x100   : > { %v2521_v51 = vpop.f32.mrb[0].mxu0 }
 0x101   : > { %v2522_v54 = vpop.f32.mrb[1].mxu0 }
 0x102   : > { %v2585_v53 = vpop.f32.mrb[0].mxu1  ;;  %v2523_v55 = vadd.f32 %v2522_v54, %v2521_v51  ;;  %v2524_v57 = vpop.f32.mrb[2].mxu0 }
 0x103   : > { %v2586_v30 = vpop.f32.mrb[1].mxu1  ;;  %v2525_v60 = vpop.f32.mrb[3].mxu0 }
 0x104   : > { %v2587_v56 = vadd.f32 %v2586_v30, %v2585_v53  ;;  %v2588_v58 = vpop.f32.mrb[2].mxu1  ;;  %v1660_v0 = vadd.f32 %v2523_v55, %v3641_v2  ;;  %v2526_v1 = vadd.f32 %v2525_v60, %v2524_v57 }
 0x105   : > { %v2589_v63 = vpop.f32.mrb[3].mxu1 }
 0x106   : > { %v2590_v4 = vadd.f32 %v2589_v63, %v2588_v58  ;;  %v3644_v5 = vadd.f32 %v2587_v56, %v1660_v0  ;;  %v1663_v7 = vadd.f32 %v2526_v1, %v3641_v2 }
 0x108   : > { %v3647_v59 = vadd.f32 %v2590_v4, %v1663_v7  ;;  %v2527_v61 = vpop.f32.mrb[4].mxu0 }
 0x109   : > { %v2528_v3 = vpop.f32.mrb[5].mxu0 }
 0x10a   : > { %v2591_v62 = vpop.f32.mrb[4].mxu1  ;;  %v2529_v11 = vadd.f32 %v2528_v3, %v2527_v61  ;;  %v2530_v8 = vpop.f32.mrb[6].mxu0 }
 0x10b   : > { %v2592_v10 = vpop.f32.mrb[5].mxu1  ;;  %v2531_v15 = vpop.f32.mrb[7].mxu0 }
 0x10c   : > { %v2593_v12 = vadd.f32 %v2592_v10, %v2591_v62  ;;  %v2594_v13 = vpop.f32.mrb[6].mxu1  ;;  %v1668_v18 = vadd.f32 %v2529_v11, %v3641_v2  ;;  %v2532_v20 = vadd.f32 %v2531_v15, %v2530_v8 }
 0x10d   : > { %v2595_v16 = vpop.f32.mrb[7].mxu1 }
 0x10e   : > { %v2596_v23 = vadd.f32 %v2595_v16, %v2594_v13  ;;  %v3650_v9 = vadd.f32 %v2593_v12, %v1668_v18  ;;  %v1671_v17 = vadd.f32 %v2532_v20, %v3641_v2 }
 0x110   : > { %v3653_v19 = vadd.f32 %v2596_v23, %v1671_v17  ;;  %v2533_v22 = vpop.f32.mrb[8].mxu0 }
 0x111   : > { %v2534_v25 = vpop.f32.mrb[9].mxu0 }
 0x112   : > { %v2597_v24 = vpop.f32.mrb[8].mxu1  ;;  %v2535_v35 = vadd.f32 %v2534_v25, %v2533_v22  ;;  %v2536_v28 = vpop.f32.mrb[10].mxu0 }
 0x113   : > { %v2598_v26 = vpop.f32.mrb[9].mxu1  ;;  %v2537_v32 = vpop.f32.mrb[11].mxu0 }
 0x114   : > { %v2599_v27 = vadd.f32 %v2598_v26, %v2597_v24  ;;  %v2600_v29 = vpop.f32.mrb[10].mxu1  ;;  %v1676_v36 = vadd.f32 %v2535_v35, %v3641_v2  ;;  %v2538_v31 = vadd.f32 %v2537_v32, %v2536_v28 }
 0x115   : > { %v2601_v38 = vpop.f32.mrb[11].mxu1 }
 0x116   : > { %v2602_v37 = vadd.f32 %v2601_v38, %v2600_v29  ;;  %v3656_v45 = vadd.f32 %v2599_v27, %v1676_v36  ;;  %v1679_v39 = vadd.f32 %v2538_v31, %v3641_v2 }
 0x118   : > { %v3659_v41 = vadd.f32 %v2602_v37, %v1679_v39  ;;  %v2539_v21 = vpop.f32.mrb[12].mxu0 }
 0x119   : > { %v2540_v44 = vpop.f32.mrb[13].mxu0 }
 0x11a   : > { %v2603_v34 = vpop.f32.mrb[12].mxu1  ;;  %v2541_v6 = vadd.f32 %v2540_v44, %v2539_v21  ;;  %v2542_v33 = vpop.f32.mrb[14].mxu0 }
 0x11b   : > { %v2604_v52 = vpop.f32.mrb[13].mxu1  ;;  %v2543_v40 = vpop.f32.mrb[15].mxu0 }
 0x11c   : > { %v2605_v14 = vadd.f32 %v2604_v52, %v2603_v34  ;;  %v2606_v42 = vpop.f32.mrb[14].mxu1  ;;  %v1684_v46 = vadd.f32 %v2541_v6, %v3641_v2  ;;  %v2544_v47 = vadd.f32 %v2543_v40, %v2542_v33 }
 0x11d   : > { %v2607_v43 = vpop.f32.mrb[15].mxu1 }
 0x11e   : > { %v2608_v48 = vadd.f32 %v2607_v43, %v2606_v42  ;;  %v3662_v49 = vadd.f32 %v2605_v14, %v1684_v46  ;;  %v1687_v50 = vadd.f32 %v2544_v47, %v3641_v2 }
 0x120   : > { %v3665_v51 = vadd.f32 %v2608_v48, %v1687_v50  ;;  %v2545_v53 = vpop.f32.mrb[16].mxu0 }
 0x121   : > { %v2546_v30 = vpop.f32.mrb[17].mxu0 }
 0x122   : > { %v2609_v54 = vpop.f32.mrb[16].mxu1  ;;  %v2547_v56 = vadd.f32 %v2546_v30, %v2545_v53  ;;  %v2548_v58 = vpop.f32.mrb[18].mxu0 }
 0x123   : > { %v2610_v55 = vpop.f32.mrb[17].mxu1  ;;  %v2549_v63 = vpop.f32.mrb[19].mxu0 }
 0x124   : > { %v2611_v57 = vadd.f32 %v2610_v55, %v2609_v54  ;;  %v2612_v60 = vpop.f32.mrb[18].mxu1  ;;  %v1692_v1 = vadd.f32 %v2547_v56, %v3641_v2  ;;  %v2550_v4 = vadd.f32 %v2549_v63, %v2548_v58 }
 0x125   : > { %v2613_v0 = vpop.f32.mrb[19].mxu1 }
 0x126   : > { %v2614_v7 = vadd.f32 %v2613_v0, %v2612_v60  ;;  %v3668_v61 = vadd.f32 %v2611_v57, %v1692_v1  ;;  %v1695_v62 = vadd.f32 %v2550_v4, %v3641_v2 }
 0x128   : > { %v3671_v3 = vadd.f32 %v2614_v7, %v1695_v62  ;;  %v2551_v10 = vpop.f32.mrb[20].mxu0 }
 0x129   : > { %v2552_v12 = vpop.f32.mrb[21].mxu0 }
 0x12a   : > { %v2615_v11 = vpop.f32.mrb[20].mxu1  ;;  %v2553_v13 = vadd.f32 %v2552_v12, %v2551_v10  ;;  %v2554_v16 = vpop.f32.mrb[22].mxu0 }
 0x12b   : > { %v2616_v8 = vpop.f32.mrb[21].mxu1  ;;  %v2555_v20 = vpop.f32.mrb[23].mxu0 }
 0x12c   : > { %v2617_v15 = vadd.f32 %v2616_v8, %v2615_v11  ;;  %v2618_v18 = vpop.f32.mrb[22].mxu1  ;;  %v1700_v17 = vadd.f32 %v2553_v13, %v3641_v2  ;;  %v2556_v22 = vadd.f32 %v2555_v20, %v2554_v16 }
 0x12d   : > { %v2619_v23 = vpop.f32.mrb[23].mxu1 }
 0x12e   : > { %v2620_v24 = vadd.f32 %v2619_v23, %v2618_v18  ;;  %v3674_v25 = vadd.f32 %v2617_v15, %v1700_v17  ;;  %v1703_v26 = vadd.f32 %v2556_v22, %v3641_v2 }
 0x130   : > { %v3677_v35 = vadd.f32 %v2620_v24, %v1703_v26  ;;  %v2557_v27 = vpop.f32.mrb[24].mxu0 }
 0x131   : > { %v2558_v29 = vpop.f32.mrb[25].mxu0 }
 0x132   : > { %v2621_v28 = vpop.f32.mrb[24].mxu1  ;;  %v2559_v38 = vadd.f32 %v2558_v29, %v2557_v27  ;;  %v2560_v31 = vpop.f32.mrb[26].mxu0 }
 0x133   : > { %v2622_v32 = vpop.f32.mrb[25].mxu1  ;;  %v2561_v39 = vpop.f32.mrb[27].mxu0 }
 0x134   : > { %v2623_v36 = vadd.f32 %v2622_v32, %v2621_v28  ;;  %v2624_v37 = vpop.f32.mrb[26].mxu1  ;;  %v1708_v34 = vadd.f32 %v2559_v38, %v3641_v2  ;;  %v2562_v44 = vadd.f32 %v2561_v39, %v2560_v31 }
 0x135   : > { %v2625_v21 = vpop.f32.mrb[27].mxu1 }
 0x136   : > { %v2626_v52 = vadd.f32 %v2625_v21, %v2624_v37  ;;  %v3680_v6 = vadd.f32 %v2623_v36, %v1708_v34  ;;  %v1711_v14 = vadd.f32 %v2562_v44, %v3641_v2 }
 0x138   : > { %v3683_v33 = vadd.f32 %v2626_v52, %v1711_v14  ;;  %v2563_v42 = vpop.f32.mrb[28].mxu0 }
 0x139   : > { %v2564_v43 = vpop.f32.mrb[29].mxu0 }
 0x13a   : > { %v2627_v40 = vpop.f32.mrb[28].mxu1  ;;  %v2565_v47 = vadd.f32 %v2564_v43, %v2563_v42  ;;  %v2566_v50 = vpop.f32.mrb[30].mxu0 }
 0x13b   : > { %v2628_v46 = vpop.f32.mrb[29].mxu1  ;;  %v2567_v54 = vpop.f32.mrb[31].mxu0 }
 0x13c   : > { %v2629_v48 = vadd.f32 %v2628_v46, %v2627_v40  ;;  %v2630_v53 = vpop.f32.mrb[30].mxu1  ;;  %v1716_v55 = vadd.f32 %v2565_v47, %v3641_v2  ;;  %v2568_v56 = vadd.f32 %v2567_v54, %v2566_v50 }
 0x13d   : > { %v2631_v30 = vpop.f32.mrb[31].mxu1 }
 0x13e   : > { %v2632_v57 = vadd.f32 %v2631_v30, %v2630_v53  ;;  %v3686_v58 = vadd.f32 %v2629_v48, %v1716_v55  ;;  %v1719_v60 = vadd.f32 %v2568_v56, %v3641_v2 }
 0x140   : > { %v3689_v63 = vadd.f32 %v2632_v57, %v1719_v60  ;;  %v2649_v0 = vpop.f32.mrb[32].mxu0 }
 0x141   : > { %v2650_v4 = vpop.f32.mrb[33].mxu0 }
 0x142   : > { %v2713_v1 = vpop.f32.mrb[32].mxu1  ;;  %v2651_v62 = vadd.f32 %v2650_v4, %v2649_v0  ;;  %v2652_v11 = vpop.f32.mrb[34].mxu0 }
 0x143   : > { %v2714_v7 = vpop.f32.mrb[33].mxu1  ;;  %v2653_v8 = vpop.f32.mrb[35].mxu0 }
 0x144   : > { %v2715_v10 = vadd.f32 %v2714_v7, %v2713_v1  ;;  %v2716_v12 = vpop.f32.mrb[34].mxu1  ;;  %v1854_v15 = vadd.f32 %v2651_v62, %v3644_v5  ;;  %v2654_v16 = vadd.f32 %v2653_v8, %v2652_v11 }
 0x145   : > { %v2717_v13 = vpop.f32.mrb[35].mxu1 }
 0x146   : > { %v2718_v18 = vadd.f32 %v2717_v13, %v2716_v12  ;;  %v1857_v20 = vadd.f32 %v2654_v16, %v3647_v59  ;;  %v3693_v23 = vadd.f32 %v2715_v10, %v1854_v15 }
 0x148   : > { %v2655_v2 = vpop.f32.mrb[36].mxu0  ;;  %v3695_v22 = vadd.f32 %v2718_v18, %v1857_v20 }
 0x149   : > { %v2656_v24 = vpop.f32.mrb[37].mxu0 }
 0x14a   : > { %v2719_v17 = vpop.f32.mrb[36].mxu1  ;;  %v2657_v27 = vadd.f32 %v2656_v24, %v2655_v2  ;;  %v2658_v29 = vpop.f32.mrb[38].mxu0 }
 0x14b   : > { %v2720_v26 = vpop.f32.mrb[37].mxu1  ;;  %v2659_v38 = vpop.f32.mrb[39].mxu0 }
 0x14c   : > { %v2721_v28 = vadd.f32 %v2720_v26, %v2719_v17  ;;  %v2722_v32 = vpop.f32.mrb[38].mxu1  ;;  %v1862_v5 = vadd.f32 %v2657_v27, %v3650_v9  ;;  %v2660_v31 = vadd.f32 %v2659_v38, %v2658_v29 }
 0x14d   : > { %v2723_v36 = vpop.f32.mrb[39].mxu1 }
 0x14e   : > { %v2724_v37 = vadd.f32 %v2723_v36, %v2722_v32  ;;  %v1865_v59 = vadd.f32 %v2660_v31, %v3653_v19  ;;  %v3699_v39 = vadd.f32 %v2721_v28, %v1862_v5 }
 0x150   : > { %v2661_v21 = vpop.f32.mrb[40].mxu0  ;;  %v3701_v44 = vadd.f32 %v2724_v37, %v1865_v59 }
 0x151   : > { %v2662_v52 = vpop.f32.mrb[41].mxu0 }
 0x152   : > { %v2725_v34 = vpop.f32.mrb[40].mxu1  ;;  %v2663_v42 = vadd.f32 %v2662_v52, %v2661_v21  ;;  %v2664_v43 = vpop.f32.mrb[42].mxu0 }
 0x153   : > { %v2726_v14 = vpop.f32.mrb[41].mxu1  ;;  %v2665_v47 = vpop.f32.mrb[43].mxu0 }
 0x154   : > { %v2727_v40 = vadd.f32 %v2726_v14, %v2725_v34  ;;  %v2728_v46 = vpop.f32.mrb[42].mxu1  ;;  %v1870_v9 = vadd.f32 %v2663_v42, %v3656_v45  ;;  %v2666_v50 = vadd.f32 %v2665_v47, %v2664_v43 }
 0x155   : > { %v2729_v48 = vpop.f32.mrb[43].mxu1 }
 0x156   : > { %v2730_v53 = vadd.f32 %v2729_v48, %v2728_v46  ;;  %v1873_v19 = vadd.f32 %v2666_v50, %v3659_v41  ;;  %v3705_v54 = vadd.f32 %v2727_v40, %v1870_v9 }
 0x158   : > { %v2667_v30 = vpop.f32.mrb[44].mxu0  ;;  %v3707_v56 = vadd.f32 %v2730_v53, %v1873_v19 }
 0x159   : > { %v2668_v57 = vpop.f32.mrb[45].mxu0 }
 0x15a   : > { %v2731_v55 = vpop.f32.mrb[44].mxu1  ;;  %v2669_v0 = vadd.f32 %v2668_v57, %v2667_v30  ;;  %v2670_v4 = vpop.f32.mrb[46].mxu0 }
 0x15b   : > { %v2732_v60 = vpop.f32.mrb[45].mxu1  ;;  %v2671_v62 = vpop.f32.mrb[47].mxu0 }
 0x15c   : > { %v2733_v1 = vadd.f32 %v2732_v60, %v2731_v55  ;;  %v2734_v7 = vpop.f32.mrb[46].mxu1  ;;  %v1878_v45 = vadd.f32 %v2669_v0, %v3662_v49  ;;  %v2672_v11 = vadd.f32 %v2671_v62, %v2670_v4 }
 0x15d   : > { %v2735_v10 = vpop.f32.mrb[47].mxu1 }
 0x15e   : > { %v2736_v12 = vadd.f32 %v2735_v10, %v2734_v7  ;;  %v1881_v41 = vadd.f32 %v2672_v11, %v3665_v51  ;;  %v3711_v8 = vadd.f32 %v2733_v1, %v1878_v45 }
 0x160   : > { %v2673_v13 = vpop.f32.mrb[48].mxu0  ;;  %v3713_v16 = vadd.f32 %v2736_v12, %v1881_v41 }
 0x161   : > { %v2674_v18 = vpop.f32.mrb[49].mxu0 }
 0x162   : > { %v2737_v15 = vpop.f32.mrb[48].mxu1  ;;  %v2675_v2 = vadd.f32 %v2674_v18, %v2673_v13  ;;  %v2676_v24 = vpop.f32.mrb[50].mxu0 }
 0x163   : > { %v2738_v20 = vpop.f32.mrb[49].mxu1  ;;  %v2677_v27 = vpop.f32.mrb[51].mxu0 }
 0x164   : > { %v2739_v17 = vadd.f32 %v2738_v20, %v2737_v15  ;;  %v2740_v26 = vpop.f32.mrb[50].mxu1  ;;  %v1886_v49 = vadd.f32 %v2675_v2, %v3668_v61  ;;  %v2678_v29 = vadd.f32 %v2677_v27, %v2676_v24 }
 0x165   : > { %v2741_v28 = vpop.f32.mrb[51].mxu1 }
 0x166   : > { %v2742_v32 = vadd.f32 %v2741_v28, %v2740_v26  ;;  %v1889_v51 = vadd.f32 %v2678_v29, %v3671_v3  ;;  %v1983_v38 = vadd.f32 %v2739_v17, %v1886_v49 }
 0x168   : > { %v2679_v36 = vpop.f32.mrb[52].mxu0  ;;  %v3717_v31 = vadd.f32 %v2742_v32, %v1889_v51 }
 0x169   : > { %v2680_v37 = vpop.f32.mrb[53].mxu0 }
 0x16a   : > { %v2743_v5 = vpop.f32.mrb[52].mxu1  ;;  %v2681_v21 = vadd.f32 %v2680_v37, %v2679_v36  ;;  %v2682_v52 = vpop.f32.mrb[54].mxu0 }
 0x16b   : > { %v2744_v59 = vpop.f32.mrb[53].mxu1  ;;  %v2683_v42 = vpop.f32.mrb[55].mxu0 }
 0x16c   : > { %v2745_v34 = vadd.f32 %v2744_v59, %v2743_v5  ;;  %v2746_v14 = vpop.f32.mrb[54].mxu1  ;;  %v1894_v43 = vadd.f32 %v2681_v21, %v3674_v25  ;;  %v2684_v61 = vadd.f32 %v2683_v42, %v2682_v52 }
 0x16d   : > { %v2747_v40 = vpop.f32.mrb[55].mxu1 }
 0x16e   : > { %v2748_v46 = vadd.f32 %v2747_v40, %v2746_v14  ;;  %v1897_v47 = vadd.f32 %v2684_v61, %v3677_v35  ;;  %v1991_v3 = vadd.f32 %v2745_v34, %v1894_v43 }
 0x170   : > { %v2685_v48 = vpop.f32.mrb[56].mxu0  ;;  %v1994_v50 = vadd.f32 %v2748_v46, %v1897_v47 }
 0x171   : > { %v2686_v53 = vpop.f32.mrb[57].mxu0 }
 0x172   : > { %v2749_v9 = vpop.f32.mrb[56].mxu1  ;;  %v2687_v30 = vadd.f32 %v2686_v53, %v2685_v48  ;;  %v2688_v57 = vpop.f32.mrb[58].mxu0 }
 0x173   : > { %v2750_v19 = vpop.f32.mrb[57].mxu1  ;;  %v2689_v0 = vpop.f32.mrb[59].mxu0 }
 0x174   : > { %v2751_v55 = vadd.f32 %v2750_v19, %v2749_v9  ;;  %v2752_v60 = vpop.f32.mrb[58].mxu1  ;;  %v1902_v4 = vadd.f32 %v2687_v30, %v3680_v6  ;;  %v2690_v7 = vadd.f32 %v2689_v0, %v2688_v57 }
 0x175   : > { %v2753_v1 = vpop.f32.mrb[59].mxu1 }
 0x176   : > { %v2754_v25 = vadd.f32 %v2753_v1, %v2752_v60  ;;  %v1905_v62 = vadd.f32 %v2690_v7, %v3683_v33  ;;  %v1999_v10 = vadd.f32 %v2751_v55, %v1902_v4 }
 0x178   : > { %v2691_v35 = vpop.f32.mrb[60].mxu0  ;;  %v2002_v11 = vadd.f32 %v2754_v25, %v1905_v62 }
 0x179   : > { %v2692_v12 = vpop.f32.mrb[61].mxu0 }
 0x17a   : > { %v2755_v45 = vpop.f32.mrb[60].mxu1  ;;  %v2693_v13 = vadd.f32 %v2692_v12, %v2691_v35  ;;  %v2694_v18 = vpop.f32.mrb[62].mxu0 }
 0x17b   : > { %v2756_v41 = vpop.f32.mrb[61].mxu1  ;;  %v2695_v2 = vpop.f32.mrb[63].mxu0 }
 0x17c   : > { %v2757_v15 = vadd.f32 %v2756_v41, %v2755_v45  ;;  %v2758_v20 = vpop.f32.mrb[62].mxu1  ;;  %v1910_v24 = vadd.f32 %v2693_v13, %v3686_v58  ;;  %v2696_v6 = vadd.f32 %v2695_v2, %v2694_v18 }
 0x17d   : > { %v2759_v17 = vpop.f32.mrb[63].mxu1 }
 0x17e   : > { %v2760_v26 = vadd.f32 %v2759_v17, %v2758_v20  ;;  %v1913_v27 = vadd.f32 %v2696_v6, %v3689_v63  ;;  %v2007_v33 = vadd.f32 %v2757_v15, %v1910_v24 }
 0x180   : > { %v2795_v28 = vpop.f32.mrb[64].mxu0  ;;  %v2010_v29 = vadd.f32 %v2760_v26, %v1913_v27 }
 0x181   : > { %v2056_v58 = vadd.f32 %v2795_v28, %v3699_v39  ;;  %v2047_v51 = vpop.f32.mrb[65].mxu0 }
 0x182   : > { %v2803_v49 = vpop.f32.mrb[64].mxu1  ;;  %v2048_v36 = vadd.f32 %v2047_v51, %v3693_v23  ;;  %v2796_v37 = vpop.f32.mrb[66].mxu0 }
 0x183   : > { %v3733_v32 = vadd.f32 %v2803_v49, %v1991_v3  ;;  %v2079_v63 = vpop.f32.mrb[65].mxu1  ;;  %2112 = vst [vmem:[%s3730_s18 + $0x10] sm:$0xff] %v2056_v58  ;;  %v2059_v21 = vadd.f32 %v2796_v37, %v3701_v44  ;;  %v2050_v34 = vpop.f32.mrb[67].mxu0 }
 0x184   : > { %v3736_v5 = vadd.f32 %v2079_v63, %v1983_v38  ;;  %v2804_v59 = vpop.f32.mrb[66].mxu1  ;;  %2110 = vst [vmem:[%s3730_s18] sm:$0xff] %v2048_v36  ;;  %v2051_v23 = vadd.f32 %v2050_v34, %v3695_v22 }
 0x185   : > { %2120 = vst [vmem:[%s3730_s18 + $0x50] sm:$0xff] %v3733_v32  ;;  %v3742_v39 = vadd.f32 %v2804_v59, %v1994_v50  ;;  %v2082_v52 = vpop.f32.mrb[67].mxu1  ;;  %2113 = vst [vmem:[%s3730_s18 + $0x18] sm:$0xff] %v2059_v21 }
 0x186   : > { %2118 = vst [vmem:[%s3730_s18 + $0x40] sm:$0xff] %v3736_v5  ;;  %v2083_v38 = vadd.f32 %v2082_v52, %v3717_v31  ;;  %2111 = vst [vmem:[%s3730_s18 + $0x8] sm:$0xff] %v2051_v23 }
 0x187   : > { %2121 = vst [vmem:[%s3730_s18 + $0x58] sm:$0xff] %v3742_v39 }
 0x188   : > { %2119 = vst [vmem:[%s3730_s18 + $0x48] sm:$0xff] %v2083_v38  ;;  %v2799_v14 = vpop.f32.mrb[68].mxu0 }
 0x189   : > { %v2072_v42 = vadd.f32 %v2799_v14, %v3711_v8  ;;  %v2063_v43 = vpop.f32.mrb[69].mxu0 }
 0x18a   : > { %v2807_v44 = vpop.f32.mrb[68].mxu1  ;;  %v2064_v31 = vadd.f32 %v2063_v43, %v3705_v54  ;;  %v2800_v46 = vpop.f32.mrb[70].mxu0  ;;  %2129 = sbr.rel (%p2500_p12) target bundleno = 401 (0x191), region = 52  ;;  %v2986_v54 = vmov (!%p2500_p12), 0.0  }
 0x18b   : > { %v3755_v40 = vadd.f32 %v2807_v44, %v2007_v33  ;;  %v2095_v22 = vpop.f32.mrb[69].mxu1  ;;  %2116 = vst [vmem:[%s3730_s18 + $0x30] sm:$0xff] %v2072_v42  ;;  %v2075_v3 = vadd.f32 %v2800_v46, %v3713_v16  ;;  %v2066_v8 = vpop.f32.mrb[71].mxu0  ;;  %2130 = vst [vmem:[%s3096_s17] sm:$0x1] (!%p2500_p12), %v2986_v54 }
 0x18c   : > { %v2096_v61 = vadd.f32 %v2095_v22, %v1999_v10  ;;  %v2808_v47 = vpop.f32.mrb[70].mxu1  ;;  %2114 = vst [vmem:[%s3730_s18 + $0x20] sm:$0xff] %v2064_v31  ;;  %v2067_v50 = vadd.f32 %v2066_v8, %v3707_v56  ;;  %2131 = vst [vmem:[%s3105_s22] sm:$0x1] (!%p2500_p12), %v2986_v54 }
 0x18d   : > { %2124 = vst [vmem:[%s3730_s18 + $0x70] sm:$0xff] %v3755_v40  ;;  %v2107_v48 = vadd.f32 %v2808_v47, %v2010_v29  ;;  %v2098_v9 = vpop.f32.mrb[71].mxu1  ;;  %2117 = vst [vmem:[%s3730_s18 + $0x38] sm:$0xff] %v2075_v3 }
 0x18e   : > { %2122 = vst [vmem:[%s3730_s18 + $0x60] sm:$0xff] %v2096_v61  ;;  %v2099_v53 = vadd.f32 %v2098_v9, %v2002_v11  ;;  %2115 = vst [vmem:[%s3730_s18 + $0x28] sm:$0xff] %v2067_v50 }
 0x18f   : > { %2125 = vst [vmem:[%s3730_s18 + $0x78] sm:$0xff] %v2107_v48 }
 0x190   : > { %2123 = vst [vmem:[%s3730_s18 + $0x68] sm:$0xff] %v2099_v53 }
 0x191 PF: > { %v2133_v16 = vadd.f32 %v2051_v23, %v2048_v36  ;;  %v2157_v19 = vmul.f32 %v2048_v36, %v2048_v36  ;;  %v2158_v30 = vmul.f32 %v2051_v23, %v2051_v23  ;;  %v2159_v57 = vmul.f32 %v2056_v58, %v2056_v58 }
 0x192   : > { %v2160_v60 = vmul.f32 %v2059_v21, %v2059_v21  ;;  %v2161_v4 = vmul.f32 %v2064_v31, %v2064_v31  ;;  %v2162_v62 = vmul.f32 %v2067_v50, %v2067_v50  ;;  %v2163_v45 = vmul.f32 %v2072_v42, %v2072_v42  ;;  %v2132_v46 = vld [vmem:[%s3096_s17] sm:$0x1] }
 0x193   : > { %v2134_v55 = vadd.f32 %v2133_v16, %v2056_v58  ;;  %v2173_v0 = vadd.f32 %v2158_v30, %v2157_v19  ;;  %v2164_v41 = vmul.f32 %v2075_v3, %v2075_v3  ;;  %v2165_v18 = vmul.f32 %v3736_v5, %v3736_v5 }
 0x194   : > { %v2166_v17 = vmul.f32 %v2083_v38, %v2083_v38  ;;  %v2167_v26 = vmul.f32 %v3733_v32, %v3733_v32  ;;  %v2168_v28 = vmul.f32 %v3742_v39, %v3742_v39  ;;  %v2169_v58 = vmul.f32 %v2096_v61, %v2096_v61 }
 0x195   : > { %v2135_v56 = vadd.f32 %v2134_v55, %v2059_v21  ;;  %v2174_v7 = vadd.f32 %v2173_v0, %v2159_v57  ;;  %v2170_v36 = vmul.f32 %v2099_v53, %v2099_v53  ;;  %v2171_v59 = vmul.f32 %v3755_v40, %v3755_v40 }
 0x196   : > { %v2172_v34 = vmul.f32 %v2107_v48, %v2107_v48 }
 0x197   : > { %v2136_v1 = vadd.f32 %v2135_v56, %v2064_v31  ;;  %v2175_v10 = vadd.f32 %v2174_v7, %v2160_v60 }
 0x199   : > { %v2137_v25 = vadd.f32 %v2136_v1, %v2067_v50  ;;  %v2176_v11 = vadd.f32 %v2175_v10, %v2161_v4 }
 0x19b   : > { %v2138_v35 = vadd.f32 %v2137_v25, %v2072_v42  ;;  %v2177_v13 = vadd.f32 %v2176_v11, %v2162_v62 }
 0x19d   : > { %v2139_v12 = vadd.f32 %v2138_v35, %v2075_v3  ;;  %v2178_v20 = vadd.f32 %v2177_v13, %v2163_v45 }
 0x19f   : > { %v2140_v15 = vadd.f32 %v2139_v12, %v3736_v5  ;;  %v2179_v24 = vadd.f32 %v2178_v20, %v2164_v41 }
 0x1a1   : > { %v2141_v2 = vadd.f32 %v2140_v15, %v2083_v38  ;;  %v2180_v27 = vadd.f32 %v2179_v24, %v2165_v18 }
 0x1a3   : > { %v2142_v6 = vadd.f32 %v2141_v2, %v3733_v32  ;;  %v2181_v49 = vadd.f32 %v2180_v27, %v2166_v17 }
 0x1a5   : > { %v2143_v33 = vadd.f32 %v2142_v6, %v3742_v39  ;;  %v2182_v51 = vadd.f32 %v2181_v49, %v2167_v26 }
 0x1a7   : > { %v2144_v29 = vadd.f32 %v2143_v33, %v2096_v61  ;;  %v2183_v5 = vadd.f32 %v2182_v51, %v2168_v28 }
 0x1a9   : > { %v2145_v63 = vadd.f32 %v2144_v29, %v2099_v53  ;;  %v2184_v32 = vadd.f32 %v2183_v5, %v2169_v58 }
 0x1ab   : > { %v2146_v37 = vadd.f32 %v2145_v63, %v3755_v40  ;;  %v2185_v52 = vadd.f32 %v2184_v32, %v2170_v36 }
 0x1ad   : > { %v2147_v21 = vadd.f32 %v2146_v37, %v2107_v48  ;;  %v2186_v39 = vadd.f32 %v2185_v52, %v2171_v59  ;;  %v2156_v48 = vld [vmem:[%s3105_s22] sm:$0x1] }
 0x1af   : > { %v2148_v23 = vrot.slane %v2147_v21, 4  ;;  %v2187_v14 = vadd.f32 %v2186_v39, %v2172_v34 }
 0x1b1   : > { %v2149_v38 = vadd.f32 %v2148_v23, %v2147_v21  ;;  %v2188_v42 = vrot.slane %v2187_v14, 4 }
 0x1b3   : > { %v2150_v44 = vrot.slane %v2149_v38, 2  ;;  %v2189_v22 = vadd.f32 %v2188_v42, %v2187_v14 }
 0x1b5   : > { %v2151_v43 = vadd.f32 %v2150_v44, %v2149_v38  ;;  %v2190_v61 = vrot.slane %v2189_v22, 2 }
 0x1b7   : > { %v2152_v31 = vrot.slane %v2151_v43, 1  ;;  %v2191_v40 = vadd.f32 %v2190_v61, %v2189_v22 }
 0x1b9   : > { %v2153_v47 = vadd.f32 %v2152_v31, %v2151_v43  ;;  %v2192_v8 = vrot.slane %v2191_v40, 1 }
 0x1bb   : > { %v2154_v3 = vadd.f32 %v2153_v47, %v2132_v46  ;;  %v2193_v9 = vadd.f32 %v2192_v8, %v2191_v40 }
 0x1bd   : > { %2155 = vst [vmem:[%s3096_s17] sm:$0x1] %v2154_v3  ;;  %v2194_v50 = vadd.f32 %v2193_v9, %v2156_v48 }
 0x1bf   : > { %2195 = vst [vmem:[%s3105_s22] sm:$0x1] %v2194_v50 }
 0x1c0 PF: > { %s20_s13 = sadd.s32 1, %s2983_s13   ;;  %s3823_s8 = sld [smem:[#allocation4_spill]] }
 0x1c1   : > { %p17_p13 = scmp.ge.s32.totalorder %s20_s13, 6   ;;  %s3824_s30 = smov %s2975_s11 }
 0x1c2   : > { %s3825_s10 = smov %s2979_s12  ;;  %s3826_s11 = smov %s3829_s14 }
 0x1c3   :  { %19 = sbr.rel (!%p17_p13) target bundleno = 4 (0x4), region = 115 }
 0x1c6   : > { %s3827_s12 = smov %s3823_s8 }

</bundles_post_ra>
